<compile_context>
chip_gen: v7x
topology: tpu7x:2x2x1
jax: 0.10.0
libtpu: 0.0.40
codegen_flags: <defaults>
</compile_context>

<pallas_src>
import functools

import jax
import jax.numpy as jnp
from jax import lax
from jax.experimental import pallas as pl
from jax.experimental.pallas import tpu as pltpu


def _fmap_kernel(feat_x_ref, feat_y_ref, evals_x_ref, evals_y_ref,
                 etx_ref, ety_ref, out_ref, *, lambda_param, K, Nb):
    """One grid step = Nb batch samples; Nb*K systems packed on the lane axis."""
    f32 = jnp.float32
    dn_ct_last = (((1,), (1,)), ((), ()))   # contract last dim of both operands

    # lambda * I on (row, col) — used once to place the diagonal regularizer.
    lam_eye = lambda_param * (
        lax.broadcasted_iota(jnp.int32, (K, K), 0) ==
        lax.broadcasted_iota(jnp.int32, (K, K), 1)).astype(f32)          # [K, K]

    blocks = []
    for nb in range(Nb):
        fx = feat_x_ref[nb]        # [Vx, C]
        fy = feat_y_ref[nb]        # [Vy, C]
        etx = etx_ref[nb]          # [K, Vx]
        ety = ety_ref[nb]          # [K, Vy]

        # F_hat = evecs_trans_x @ feat_x ; G_hat = evecs_trans_y @ feat_y   (MXU)
        A = jnp.dot(etx, fx, preferred_element_type=f32)                 # [K, C]
        Bm = jnp.dot(ety, fy, preferred_element_type=f32)                # [K, C]

        # Fused A@A^T and A@B^T in a single MXU call on a [K, 2K] result.
        AB = jnp.concatenate([A, Bm], axis=0)                            # [2K, C]
        G = lax.dot_general(A, AB, dn_ct_last,
                            preferred_element_type=f32)                  # [K, 2K]
        AAt = G[:, :K]             # [K, K]  (r, c)  = A A^T
        ABt = G[:, K:]             # [K, K]  (r, i)  = A B^T = (B A^T)^T

        # D in (row, system) layout: Dri[r, i] = (evals_x[r] - evals_y[i])^2
        ex = evals_x_ref[nb]       # [K, 1]
        ey = evals_y_ref[nb]       # [1, K]
        Dri = (ex - ey) ** 2       # [K, K]

        # Augmented per-sample system block, systems on the trailing axis:
        #   M[r, c, i] = AAt[r, c] + lambda * (r == c) * Dri[r, i]
        #   M[r, K, i] = rhs[r, i] = ABt[r, i]
        M = AAt[:, :, None] + lam_eye[:, :, None] * Dri[:, None, :]      # [K, K, K]
        aug = jnp.concatenate([M, ABt[:, None, :]], axis=1)              # [K, K+1, K]
        blocks.append(aug)

    # Pack all Nb*K systems onto lanes.
    act = blocks[0] if Nb == 1 else jnp.concatenate(blocks, axis=-1)     # [K, K+1, S]

    # ---- forward elimination (unpivoted; valid for SPD A A^T + lambda diag(D)) ----
    u_rows, inv_d = [], []
    for p in range(K):
        piv_row = act[0:1]                             # [1, K+1, S]
        ipv = 1.0 / piv_row[:, p:p + 1, :]             # [1, 1, S]
        u_rows.append(piv_row)
        inv_d.append(ipv)
        if p < K - 1:
            factor = act[1:, p:p + 1, :] * ipv         # [K-p-1, 1, S]
            act = act[1:] - factor * piv_row           # [K-p-1, K+1, S]

    # ---- back substitution ----
    xs = [None] * K
    for r in range(K - 1, -1, -1):
        acc = u_rows[r][:, K:K + 1, :]                 # eliminated rhs, [1, 1, S]
        for c in range(r + 1, K):
            acc = acc - u_rows[r][:, c:c + 1, :] * xs[c]
        xs[r] = acc * inv_d[r]                         # [1, 1, S]

    sol = jnp.concatenate(xs, axis=1)                  # [1, K, S]; sol[0, r, s]
    out_ref[...] = sol.astype(out_ref.dtype)           # lane-dense store


def compute_functional_map(feat_x, feat_y, evals_x, evals_y,
                           evecs_trans_x, evecs_trans_y,
                           lambda_param=0.001, samples_per_step=1,
                           matmul_dtype=None):
    B, Vx, C = feat_x.shape
    Vy = feat_y.shape[1]
    K = evals_x.shape[1]
    Nb = int(samples_per_step)
    if B % Nb != 0:
        raise ValueError(f"samples_per_step={Nb} must divide batch={B}")
    G = B // Nb
    S = Nb * K

    if matmul_dtype is not None:
        # bf16 inputs halve HBM traffic for the memory-bound V-contractions;
        # accumulation (preferred_element_type=f32) and the solve stay in f32.
        feat_x = feat_x.astype(matmul_dtype)
        feat_y = feat_y.astype(matmul_dtype)
        evecs_trans_x = evecs_trans_x.astype(matmul_dtype)
        evecs_trans_y = evecs_trans_y.astype(matmul_dtype)

    # Lay evals out so the kernel broadcasts without in-kernel transposes:
    # evals_x along sublanes (rows r), evals_y along lanes (systems i).
    evals_x3 = evals_x.astype(jnp.float32).reshape(B, K, 1)
    evals_y3 = evals_y.astype(jnp.float32).reshape(B, 1, K)

    kernel = functools.partial(_fmap_kernel, lambda_param=float(lambda_param),
                               K=K, Nb=Nb)

    # TODO(synk): for very large meshes (Vx/Vy in the tens of thousands, C>=128) add a
    # V-reduction grid axis ("arbitrary") that tiles feat/evecs over V and accumulates
    # A/Bm in VMEM scratch, so blocks stay within the 64 MiB VMEM of v7x.
    out = pl.pallas_call(
        kernel,
        out_shape=jax.ShapeDtypeStruct((G, K, S), jnp.float32),
        grid_spec=pltpu.PrefetchScalarGridSpec(
            num_scalar_prefetch=0,
            grid=(G,),
            in_specs=[
                pl.BlockSpec((Nb, Vx, C), lambda g: (g, 0, 0)),
                pl.BlockSpec((Nb, Vy, C), lambda g: (g, 0, 0)),
                pl.BlockSpec((Nb, K, 1), lambda g: (g, 0, 0)),
                pl.BlockSpec((Nb, 1, K), lambda g: (g, 0, 0)),
                pl.BlockSpec((Nb, K, Vx), lambda g: (g, 0, 0)),
                pl.BlockSpec((Nb, K, Vy), lambda g: (g, 0, 0)),
            ],
            out_specs=pl.BlockSpec((1, K, S), lambda g: (g, 0, 0)),
        ),
        compiler_params=pltpu.CompilerParams(
            dimension_semantics=("parallel",)),
    )(feat_x, feat_y, evals_x3, evals_y3, evecs_trans_x, evecs_trans_y)

    # out[g, r, nb*K + i] = Cxy[g*Nb + nb, i, r]   (wrapper-side layout plumbing)
    Cxy = jnp.transpose(out.reshape(G, K, Nb, K), (0, 2, 3, 1)).reshape(B, K, K)
    return Cxy


def standard_fmnet_forward(feat_x, feat_y, evals_x, evals_y,
                           evecs_trans_x, evecs_trans_y,
                           lambda_param=0.001, bidirectional=False,
                           samples_per_step=1, matmul_dtype=None):
    """Mirror of StandardFMNet.forward. Returns (Cxy, Cyx)."""
    Cxy = compute_functional_map(feat_x, feat_y, evals_x, evals_y,
                                 evecs_trans_x, evecs_trans_y,
                                 lambda_param=lambda_param,
                                 samples_per_step=samples_per_step,
                                 matmul_dtype=matmul_dtype)
    if bidirectional:
        Cyx = compute_functional_map(feat_y, feat_x, evals_y, evals_x,
                                     evecs_trans_y, evecs_trans_x,
                                     lambda_param=lambda_param,
                                     samples_per_step=samples_per_step,
                                     matmul_dtype=matmul_dtype)
    else:
        Cyx = None
    return Cxy, Cyx


def _reference_fmap(feat_x, feat_y, evals_x, evals_y, etx, ety, lam):
    """Pure-JAX reference (same math as the PyTorch module)."""
    A = jnp.einsum('bkv,bvc->bkc', etx, feat_x)
    Bm = jnp.einsum('bkv,bvc->bkc', ety, feat_y)
    AAt = jnp.einsum('bic,bjc->bij', A, A)
    BAt = jnp.einsum('bic,bjc->bij', Bm, A)
    D = (evals_x[:, None, :] - evals_y[:, :, None]) ** 2            # [B,K,K]
    K = evals_x.shape[1]
    eye = jnp.eye(K, dtype=feat_x.dtype)
    M = AAt[:, None, :, :] + lam * D[:, :, :, None] * eye[None, None]
    sol = jnp.linalg.solve(M, BAt[..., None])[..., 0]
    return sol


if __name__ == "__main__":
    # StandardFMNet has no learnable weights; its only "parameter" is lambda_param.
    B, Vx, Vy, C, K = 2, 128, 128, 32, 16
    lambda_param = 0.001

    key = jax.random.PRNGKey(0)
    k1, k2, k3, k4, k5, k6 = jax.random.split(key, 6)
    feat_x = jax.random.normal(k1, (B, Vx, C), jnp.float32)
    feat_y = jax.random.normal(k2, (B, Vy, C), jnp.float32)
    evals_x = jnp.sort(jnp.abs(jax.random.normal(k3, (B, K), jnp.float32)), axis=-1)
    evals_y = jnp.sort(jnp.abs(jax.random.normal(k4, (B, K), jnp.float32)), axis=-1)
    evecs_trans_x = jax.random.normal(k5, (B, K, Vx), jnp.float32)
    evecs_trans_y = jax.random.normal(k6, (B, K, Vy), jnp.float32)

    ref = _reference_fmap(feat_x, feat_y, evals_x, evals_y,
                          evecs_trans_x, evecs_trans_y, lambda_param)

    # Default path: 1 sample per grid step (grid = B = 2 -> both v7x TCs get work).
    Cxy, Cyx = standard_fmnet_forward(feat_x, feat_y, evals_x, evals_y,
                                      evecs_trans_x, evecs_trans_y,
                                      lambda_param=lambda_param,
                                      bidirectional=False)
    Cxy = jax.block_until_ready(Cxy)
    assert Cxy.shape == (B, K, K) and Cyx is None
    rel = float(jnp.max(jnp.abs(Cxy - ref)) / (jnp.max(jnp.abs(ref)) + 1e-8))
    assert rel < 1e-2, f"kernel/reference mismatch (Nb=1), rel err = {rel}"

    # Lane-packed path: 2 samples per grid step (systems axis = 2*K on lanes).
    Cxy2 = compute_functional_map(feat_x, feat_y, evals_x, evals_y,
                                  evecs_trans_x, evecs_trans_y,
                                  lambda_param=lambda_param, samples_per_step=2)
    Cxy2 = jax.block_until_ready(Cxy2)
    rel2 = float(jnp.max(jnp.abs(Cxy2 - ref)) / (jnp.max(jnp.abs(ref)) + 1e-8))
    assert rel2 < 1e-2, f"kernel/reference mismatch (Nb=2), rel err = {rel2}"

    print("KERNEL_OK")
</pallas_src>

<mosaic_0001>
module attributes {stable_mosaic.version = 11 : i64} {
  func.func @_fmap_kernel(%arg0: i32, %arg1: memref<1x128x32xf32, #tpu.memory_space<vmem>>, %arg2: memref<1x128x32xf32, #tpu.memory_space<vmem>>, %arg3: memref<1x16x1xf32, #tpu.memory_space<vmem>>, %arg4: memref<1x1x16xf32, #tpu.memory_space<vmem>>, %arg5: memref<1x16x128xf32, #tpu.memory_space<vmem>>, %arg6: memref<1x16x128xf32, #tpu.memory_space<vmem>>, %arg7: memref<1x16x16xf32, #tpu.memory_space<vmem>>) attributes {dimension_semantics = [#tpu.dimension_semantics<parallel>], iteration_bounds = array<i64: 2>, scalar_prefetch = 0 : i64, scratch_operands = 0 : i64, tpu.core_type = #tpu.core_type<tc>, window_params = [{transform_indices = @transform_0, window_bounds = array<i64: 1, 128, 32>}, {transform_indices = @transform_1, window_bounds = array<i64: 1, 128, 32>}, {transform_indices = @transform_2, window_bounds = array<i64: 1, 16, 1>}, {transform_indices = @transform_3, window_bounds = array<i64: 1, 1, 16>}, {transform_indices = @transform_4, window_bounds = array<i64: 1, 16, 128>}, {transform_indices = @transform_5, window_bounds = array<i64: 1, 16, 128>}, {transform_indices = @transform_6, window_bounds = array<i64: 1, 16, 16>}]} {
    %0 = tpu.iota {dimensions = array<i32: 0>} : vector<16x16xi32>
    %1 = tpu.iota {dimensions = array<i32: 1>} : vector<16x16xi32>
    %2 = arith.cmpi eq, %0, %1 : vector<16x16xi32>
    %3 = arith.extui %2 : vector<16x16xi1> to vector<16x16xi32>
    %4 = arith.sitofp %3 : vector<16x16xi32> to vector<16x16xf32>
    %cst = arith.constant 1.000000e-03 : f32
    %5 = vector.broadcast %cst : f32 to vector<16x16xf32>
    %6 = arith.mulf %5, %4 : vector<16x16xf32>
    %c0 = arith.constant 0 : index
    %c0_0 = arith.constant 0 : index
    %c0_1 = arith.constant 0 : index
    %7 = vector.load %arg1[%c0, %c0_0, %c0_1] : memref<1x128x32xf32, #tpu.memory_space<vmem>>, vector<1x128x32xf32>
    %8 = vector.shape_cast %7 : vector<1x128x32xf32> to vector<128x32xf32>
    %c0_2 = arith.constant 0 : index
    %c0_3 = arith.constant 0 : index
    %c0_4 = arith.constant 0 : index
    %9 = vector.load %arg2[%c0_2, %c0_3, %c0_4] : memref<1x128x32xf32, #tpu.memory_space<vmem>>, vector<1x128x32xf32>
    %10 = vector.shape_cast %9 : vector<1x128x32xf32> to vector<128x32xf32>
    %c0_5 = arith.constant 0 : index
    %c0_6 = arith.constant 0 : index
    %c0_7 = arith.constant 0 : index
    %11 = vector.load %arg5[%c0_5, %c0_6, %c0_7] : memref<1x16x128xf32, #tpu.memory_space<vmem>>, vector<1x16x128xf32>
    %12 = vector.shape_cast %11 : vector<1x16x128xf32> to vector<16x128xf32>
    %c0_8 = arith.constant 0 : index
    %c0_9 = arith.constant 0 : index
    %c0_10 = arith.constant 0 : index
    %13 = vector.load %arg6[%c0_8, %c0_9, %c0_10] : memref<1x16x128xf32, #tpu.memory_space<vmem>>, vector<1x16x128xf32>
    %14 = vector.shape_cast %13 : vector<1x16x128xf32> to vector<16x128xf32>
    %cst_11 = arith.constant dense<0.000000e+00> : vector<16x32xf32>
    %15 = tpu.matmul %12, %8, %cst_11 {dimension_numbers = #tpu.dot_dimension_numbers<[1], [0], [0], [1], [0, 0, 1, 1], [], []>} : vector<16x128xf32>, vector<128x32xf32>, vector<16x32xf32> -> vector<16x32xf32>
    %cst_12 = arith.constant dense<0.000000e+00> : vector<16x32xf32>
    %16 = tpu.matmul %14, %10, %cst_12 {dimension_numbers = #tpu.dot_dimension_numbers<[1], [0], [0], [1], [0, 0, 1, 1], [], []>} : vector<16x128xf32>, vector<128x32xf32>, vector<16x32xf32> -> vector<16x32xf32>
    %17 = tpu.concatenate %15, %16 in 0 : vector<16x32xf32>, vector<16x32xf32> -> vector<32x32xf32>
    %cst_13 = arith.constant dense<0.000000e+00> : vector<16x32xf32>
    %18 = tpu.matmul %15, %17, %cst_13 {dimension_numbers = #tpu.dot_dimension_numbers<[1], [1], [0], [0], [0, 0, 1, 0], [], []>} : vector<16x32xf32>, vector<32x32xf32>, vector<16x32xf32> -> vector<16x32xf32>
    %19 = vector.extract_strided_slice %18 {offsets = [0, 0], sizes = [16, 16], strides = [1, 1]} : vector<16x32xf32> to vector<16x16xf32>
    %20 = vector.extract_strided_slice %18 {offsets = [0, 16], sizes = [16, 16], strides = [1, 1]} : vector<16x32xf32> to vector<16x16xf32>
    %c0_14 = arith.constant 0 : index
    %c0_15 = arith.constant 0 : index
    %c0_16 = arith.constant 0 : index
    %21 = vector.load %arg3[%c0_14, %c0_15, %c0_16] : memref<1x16x1xf32, #tpu.memory_space<vmem>>, vector<1x16x1xf32>
    %22 = vector.shape_cast %21 : vector<1x16x1xf32> to vector<16x1xf32>
    %c0_17 = arith.constant 0 : index
    %c0_18 = arith.constant 0 : index
    %c0_19 = arith.constant 0 : index
    %23 = vector.load %arg4[%c0_17, %c0_18, %c0_19] : memref<1x1x16xf32, #tpu.memory_space<vmem>>, vector<1x1x16xf32>
    %24 = vector.shape_cast %23 : vector<1x1x16xf32> to vector<1x16xf32>
    %25 = vector.broadcast %22 : vector<16x1xf32> to vector<16x16xf32>
    %26 = vector.broadcast %24 : vector<1x16xf32> to vector<16x16xf32>
    %27 = arith.subf %25, %26 : vector<16x16xf32>
    %28 = arith.mulf %27, %27 : vector<16x16xf32>
    %29 = vector.shape_cast %19 : vector<16x16xf32> to vector<16x16x1xf32>
    %30 = vector.shape_cast %6 : vector<16x16xf32> to vector<16x16x1xf32>
    %31 = vector.shape_cast %28 : vector<16x16xf32> to vector<16x1x16xf32>
    %32 = vector.broadcast %30 : vector<16x16x1xf32> to vector<16x16x16xf32>
    %33 = vector.broadcast %31 : vector<16x1x16xf32> to vector<16x16x16xf32>
    %34 = arith.mulf %32, %33 : vector<16x16x16xf32>
    %35 = vector.broadcast %29 : vector<16x16x1xf32> to vector<16x16x16xf32>
    %36 = arith.addf %35, %34 : vector<16x16x16xf32>
    %37 = vector.shape_cast %20 : vector<16x16xf32> to vector<16x1x16xf32>
    %38 = tpu.concatenate %36, %37 in 1 : vector<16x16x16xf32>, vector<16x1x16xf32> -> vector<16x17x16xf32>
    %39 = vector.extract_strided_slice %38 {offsets = [0, 0, 0], sizes = [1, 17, 16], strides = [1, 1, 1]} : vector<16x17x16xf32> to vector<1x17x16xf32>
    %40 = vector.extract_strided_slice %39 {offsets = [0, 0, 0], sizes = [1, 1, 16], strides = [1, 1, 1]} : vector<1x17x16xf32> to vector<1x1x16xf32>
    %cst_20 = arith.constant 1.000000e+00 : f32
    %41 = vector.broadcast %cst_20 : f32 to vector<1x1x16xf32>
    %42 = arith.divf %41, %40 : vector<1x1x16xf32>
    %43 = vector.extract_strided_slice %38 {offsets = [1, 0, 0], sizes = [15, 1, 16], strides = [1, 1, 1]} : vector<16x17x16xf32> to vector<15x1x16xf32>
    %44 = vector.broadcast %42 : vector<1x1x16xf32> to vector<15x1x16xf32>
    %45 = arith.mulf %43, %44 : vector<15x1x16xf32>
    %46 = vector.extract_strided_slice %38 {offsets = [1, 0, 0], sizes = [15, 17, 16], strides = [1, 1, 1]} : vector<16x17x16xf32> to vector<15x17x16xf32>
    %47 = vector.broadcast %45 : vector<15x1x16xf32> to vector<15x17x16xf32>
    %48 = vector.broadcast %39 : vector<1x17x16xf32> to vector<15x17x16xf32>
    %49 = arith.mulf %47, %48 : vector<15x17x16xf32>
    %50 = arith.subf %46, %49 : vector<15x17x16xf32>
    %51 = vector.extract_strided_slice %50 {offsets = [0, 0, 0], sizes = [1, 17, 16], strides = [1, 1, 1]} : vector<15x17x16xf32> to vector<1x17x16xf32>
    %52 = vector.extract_strided_slice %51 {offsets = [0, 1, 0], sizes = [1, 1, 16], strides = [1, 1, 1]} : vector<1x17x16xf32> to vector<1x1x16xf32>
    %cst_21 = arith.constant 1.000000e+00 : f32
    %53 = vector.broadcast %cst_21 : f32 to vector<1x1x16xf32>
    %54 = arith.divf %53, %52 : vector<1x1x16xf32>
    %55 = vector.extract_strided_slice %50 {offsets = [1, 1, 0], sizes = [14, 1, 16], strides = [1, 1, 1]} : vector<15x17x16xf32> to vector<14x1x16xf32>
    %56 = vector.broadcast %54 : vector<1x1x16xf32> to vector<14x1x16xf32>
    %57 = arith.mulf %55, %56 : vector<14x1x16xf32>
    %58 = vector.extract_strided_slice %50 {offsets = [1, 0, 0], sizes = [14, 17, 16], strides = [1, 1, 1]} : vector<15x17x16xf32> to vector<14x17x16xf32>
    %59 = vector.broadcast %57 : vector<14x1x16xf32> to vector<14x17x16xf32>
    %60 = vector.broadcast %51 : vector<1x17x16xf32> to vector<14x17x16xf32>
    %61 = arith.mulf %59, %60 : vector<14x17x16xf32>
    %62 = arith.subf %58, %61 : vector<14x17x16xf32>
    %63 = vector.extract_strided_slice %62 {offsets = [0, 0, 0], sizes = [1, 17, 16], strides = [1, 1, 1]} : vector<14x17x16xf32> to vector<1x17x16xf32>
    %64 = vector.extract_strided_slice %63 {offsets = [0, 2, 0], sizes = [1, 1, 16], strides = [1, 1, 1]} : vector<1x17x16xf32> to vector<1x1x16xf32>
    %cst_22 = arith.constant 1.000000e+00 : f32
    %65 = vector.broadcast %cst_22 : f32 to vector<1x1x16xf32>
    %66 = arith.divf %65, %64 : vector<1x1x16xf32>
    %67 = vector.extract_strided_slice %62 {offsets = [1, 2, 0], sizes = [13, 1, 16], strides = [1, 1, 1]} : vector<14x17x16xf32> to vector<13x1x16xf32>
    %68 = vector.broadcast %66 : vector<1x1x16xf32> to vector<13x1x16xf32>
    %69 = arith.mulf %67, %68 : vector<13x1x16xf32>
    %70 = vector.extract_strided_slice %62 {offsets = [1, 0, 0], sizes = [13, 17, 16], strides = [1, 1, 1]} : vector<14x17x16xf32> to vector<13x17x16xf32>
    %71 = vector.broadcast %69 : vector<13x1x16xf32> to vector<13x17x16xf32>
    %72 = vector.broadcast %63 : vector<1x17x16xf32> to vector<13x17x16xf32>
    %73 = arith.mulf %71, %72 : vector<13x17x16xf32>
    %74 = arith.subf %70, %73 : vector<13x17x16xf32>
    %75 = vector.extract_strided_slice %74 {offsets = [0, 0, 0], sizes = [1, 17, 16], strides = [1, 1, 1]} : vector<13x17x16xf32> to vector<1x17x16xf32>
    %76 = vector.extract_strided_slice %75 {offsets = [0, 3, 0], sizes = [1, 1, 16], strides = [1, 1, 1]} : vector<1x17x16xf32> to vector<1x1x16xf32>
    %cst_23 = arith.constant 1.000000e+00 : f32
    %77 = vector.broadcast %cst_23 : f32 to vector<1x1x16xf32>
    %78 = arith.divf %77, %76 : vector<1x1x16xf32>
    %79 = vector.extract_strided_slice %74 {offsets = [1, 3, 0], sizes = [12, 1, 16], strides = [1, 1, 1]} : vector<13x17x16xf32> to vector<12x1x16xf32>
    %80 = vector.broadcast %78 : vector<1x1x16xf32> to vector<12x1x16xf32>
    %81 = arith.mulf %79, %80 : vector<12x1x16xf32>
    %82 = vector.extract_strided_slice %74 {offsets = [1, 0, 0], sizes = [12, 17, 16], strides = [1, 1, 1]} : vector<13x17x16xf32> to vector<12x17x16xf32>
    %83 = vector.broadcast %81 : vector<12x1x16xf32> to vector<12x17x16xf32>
    %84 = vector.broadcast %75 : vector<1x17x16xf32> to vector<12x17x16xf32>
    %85 = arith.mulf %83, %84 : vector<12x17x16xf32>
    %86 = arith.subf %82, %85 : vector<12x17x16xf32>
    %87 = vector.extract_strided_slice %86 {offsets = [0, 0, 0], sizes = [1, 17, 16], strides = [1, 1, 1]} : vector<12x17x16xf32> to vector<1x17x16xf32>
    %88 = vector.extract_strided_slice %87 {offsets = [0, 4, 0], sizes = [1, 1, 16], strides = [1, 1, 1]} : vector<1x17x16xf32> to vector<1x1x16xf32>
    %cst_24 = arith.constant 1.000000e+00 : f32
    %89 = vector.broadcast %cst_24 : f32 to vector<1x1x16xf32>
    %90 = arith.divf %89, %88 : vector<1x1x16xf32>
    %91 = vector.extract_strided_slice %86 {offsets = [1, 4, 0], sizes = [11, 1, 16], strides = [1, 1, 1]} : vector<12x17x16xf32> to vector<11x1x16xf32>
    %92 = vector.broadcast %90 : vector<1x1x16xf32> to vector<11x1x16xf32>
    %93 = arith.mulf %91, %92 : vector<11x1x16xf32>
    %94 = vector.extract_strided_slice %86 {offsets = [1, 0, 0], sizes = [11, 17, 16], strides = [1, 1, 1]} : vector<12x17x16xf32> to vector<11x17x16xf32>
    %95 = vector.broadcast %93 : vector<11x1x16xf32> to vector<11x17x16xf32>
    %96 = vector.broadcast %87 : vector<1x17x16xf32> to vector<11x17x16xf32>
    %97 = arith.mulf %95, %96 : vector<11x17x16xf32>
    %98 = arith.subf %94, %97 : vector<11x17x16xf32>
    %99 = vector.extract_strided_slice %98 {offsets = [0, 0, 0], sizes = [1, 17, 16], strides = [1, 1, 1]} : vector<11x17x16xf32> to vector<1x17x16xf32>
    %100 = vector.extract_strided_slice %99 {offsets = [0, 5, 0], sizes = [1, 1, 16], strides = [1, 1, 1]} : vector<1x17x16xf32> to vector<1x1x16xf32>
    %cst_25 = arith.constant 1.000000e+00 : f32
    %101 = vector.broadcast %cst_25 : f32 to vector<1x1x16xf32>
    %102 = arith.divf %101, %100 : vector<1x1x16xf32>
    %103 = vector.extract_strided_slice %98 {offsets = [1, 5, 0], sizes = [10, 1, 16], strides = [1, 1, 1]} : vector<11x17x16xf32> to vector<10x1x16xf32>
    %104 = vector.broadcast %102 : vector<1x1x16xf32> to vector<10x1x16xf32>
    %105 = arith.mulf %103, %104 : vector<10x1x16xf32>
    %106 = vector.extract_strided_slice %98 {offsets = [1, 0, 0], sizes = [10, 17, 16], strides = [1, 1, 1]} : vector<11x17x16xf32> to vector<10x17x16xf32>
    %107 = vector.broadcast %105 : vector<10x1x16xf32> to vector<10x17x16xf32>
    %108 = vector.broadcast %99 : vector<1x17x16xf32> to vector<10x17x16xf32>
    %109 = arith.mulf %107, %108 : vector<10x17x16xf32>
    %110 = arith.subf %106, %109 : vector<10x17x16xf32>
    %111 = vector.extract_strided_slice %110 {offsets = [0, 0, 0], sizes = [1, 17, 16], strides = [1, 1, 1]} : vector<10x17x16xf32> to vector<1x17x16xf32>
    %112 = vector.extract_strided_slice %111 {offsets = [0, 6, 0], sizes = [1, 1, 16], strides = [1, 1, 1]} : vector<1x17x16xf32> to vector<1x1x16xf32>
    %cst_26 = arith.constant 1.000000e+00 : f32
    %113 = vector.broadcast %cst_26 : f32 to vector<1x1x16xf32>
    %114 = arith.divf %113, %112 : vector<1x1x16xf32>
    %115 = vector.extract_strided_slice %110 {offsets = [1, 6, 0], sizes = [9, 1, 16], strides = [1, 1, 1]} : vector<10x17x16xf32> to vector<9x1x16xf32>
    %116 = vector.broadcast %114 : vector<1x1x16xf32> to vector<9x1x16xf32>
    %117 = arith.mulf %115, %116 : vector<9x1x16xf32>
    %118 = vector.extract_strided_slice %110 {offsets = [1, 0, 0], sizes = [9, 17, 16], strides = [1, 1, 1]} : vector<10x17x16xf32> to vector<9x17x16xf32>
    %119 = vector.broadcast %117 : vector<9x1x16xf32> to vector<9x17x16xf32>
    %120 = vector.broadcast %111 : vector<1x17x16xf32> to vector<9x17x16xf32>
    %121 = arith.mulf %119, %120 : vector<9x17x16xf32>
    %122 = arith.subf %118, %121 : vector<9x17x16xf32>
    %123 = vector.extract_strided_slice %122 {offsets = [0, 0, 0], sizes = [1, 17, 16], strides = [1, 1, 1]} : vector<9x17x16xf32> to vector<1x17x16xf32>
    %124 = vector.extract_strided_slice %123 {offsets = [0, 7, 0], sizes = [1, 1, 16], strides = [1, 1, 1]} : vector<1x17x16xf32> to vector<1x1x16xf32>
    %cst_27 = arith.constant 1.000000e+00 : f32
    %125 = vector.broadcast %cst_27 : f32 to vector<1x1x16xf32>
    %126 = arith.divf %125, %124 : vector<1x1x16xf32>
    %127 = vector.extract_strided_slice %122 {offsets = [1, 7, 0], sizes = [8, 1, 16], strides = [1, 1, 1]} : vector<9x17x16xf32> to vector<8x1x16xf32>
    %128 = vector.broadcast %126 : vector<1x1x16xf32> to vector<8x1x16xf32>
    %129 = arith.mulf %127, %128 : vector<8x1x16xf32>
    %130 = vector.extract_strided_slice %122 {offsets = [1, 0, 0], sizes = [8, 17, 16], strides = [1, 1, 1]} : vector<9x17x16xf32> to vector<8x17x16xf32>
    %131 = vector.broadcast %129 : vector<8x1x16xf32> to vector<8x17x16xf32>
    %132 = vector.broadcast %123 : vector<1x17x16xf32> to vector<8x17x16xf32>
    %133 = arith.mulf %131, %132 : vector<8x17x16xf32>
    %134 = arith.subf %130, %133 : vector<8x17x16xf32>
    %135 = vector.extract_strided_slice %134 {offsets = [0, 0, 0], sizes = [1, 17, 16], strides = [1, 1, 1]} : vector<8x17x16xf32> to vector<1x17x16xf32>
    %136 = vector.extract_strided_slice %135 {offsets = [0, 8, 0], sizes = [1, 1, 16], strides = [1, 1, 1]} : vector<1x17x16xf32> to vector<1x1x16xf32>
    %cst_28 = arith.constant 1.000000e+00 : f32
    %137 = vector.broadcast %cst_28 : f32 to vector<1x1x16xf32>
    %138 = arith.divf %137, %136 : vector<1x1x16xf32>
    %139 = vector.extract_strided_slice %134 {offsets = [1, 8, 0], sizes = [7, 1, 16], strides = [1, 1, 1]} : vector<8x17x16xf32> to vector<7x1x16xf32>
    %140 = vector.broadcast %138 : vector<1x1x16xf32> to vector<7x1x16xf32>
    %141 = arith.mulf %139, %140 : vector<7x1x16xf32>
    %142 = vector.extract_strided_slice %134 {offsets = [1, 0, 0], sizes = [7, 17, 16], strides = [1, 1, 1]} : vector<8x17x16xf32> to vector<7x17x16xf32>
    %143 = vector.broadcast %141 : vector<7x1x16xf32> to vector<7x17x16xf32>
    %144 = vector.broadcast %135 : vector<1x17x16xf32> to vector<7x17x16xf32>
    %145 = arith.mulf %143, %144 : vector<7x17x16xf32>
    %146 = arith.subf %142, %145 : vector<7x17x16xf32>
    %147 = vector.extract_strided_slice %146 {offsets = [0, 0, 0], sizes = [1, 17, 16], strides = [1, 1, 1]} : vector<7x17x16xf32> to vector<1x17x16xf32>
    %148 = vector.extract_strided_slice %147 {offsets = [0, 9, 0], sizes = [1, 1, 16], strides = [1, 1, 1]} : vector<1x17x16xf32> to vector<1x1x16xf32>
    %cst_29 = arith.constant 1.000000e+00 : f32
    %149 = vector.broadcast %cst_29 : f32 to vector<1x1x16xf32>
    %150 = arith.divf %149, %148 : vector<1x1x16xf32>
    %151 = vector.extract_strided_slice %146 {offsets = [1, 9, 0], sizes = [6, 1, 16], strides = [1, 1, 1]} : vector<7x17x16xf32> to vector<6x1x16xf32>
    %152 = vector.broadcast %150 : vector<1x1x16xf32> to vector<6x1x16xf32>
    %153 = arith.mulf %151, %152 : vector<6x1x16xf32>
    %154 = vector.extract_strided_slice %146 {offsets = [1, 0, 0], sizes = [6, 17, 16], strides = [1, 1, 1]} : vector<7x17x16xf32> to vector<6x17x16xf32>
    %155 = vector.broadcast %153 : vector<6x1x16xf32> to vector<6x17x16xf32>
    %156 = vector.broadcast %147 : vector<1x17x16xf32> to vector<6x17x16xf32>
    %157 = arith.mulf %155, %156 : vector<6x17x16xf32>
    %158 = arith.subf %154, %157 : vector<6x17x16xf32>
    %159 = vector.extract_strided_slice %158 {offsets = [0, 0, 0], sizes = [1, 17, 16], strides = [1, 1, 1]} : vector<6x17x16xf32> to vector<1x17x16xf32>
    %160 = vector.extract_strided_slice %159 {offsets = [0, 10, 0], sizes = [1, 1, 16], strides = [1, 1, 1]} : vector<1x17x16xf32> to vector<1x1x16xf32>
    %cst_30 = arith.constant 1.000000e+00 : f32
    %161 = vector.broadcast %cst_30 : f32 to vector<1x1x16xf32>
    %162 = arith.divf %161, %160 : vector<1x1x16xf32>
    %163 = vector.extract_strided_slice %158 {offsets = [1, 10, 0], sizes = [5, 1, 16], strides = [1, 1, 1]} : vector<6x17x16xf32> to vector<5x1x16xf32>
    %164 = vector.broadcast %162 : vector<1x1x16xf32> to vector<5x1x16xf32>
    %165 = arith.mulf %163, %164 : vector<5x1x16xf32>
    %166 = vector.extract_strided_slice %158 {offsets = [1, 0, 0], sizes = [5, 17, 16], strides = [1, 1, 1]} : vector<6x17x16xf32> to vector<5x17x16xf32>
    %167 = vector.broadcast %165 : vector<5x1x16xf32> to vector<5x17x16xf32>
    %168 = vector.broadcast %159 : vector<1x17x16xf32> to vector<5x17x16xf32>
    %169 = arith.mulf %167, %168 : vector<5x17x16xf32>
    %170 = arith.subf %166, %169 : vector<5x17x16xf32>
    %171 = vector.extract_strided_slice %170 {offsets = [0, 0, 0], sizes = [1, 17, 16], strides = [1, 1, 1]} : vector<5x17x16xf32> to vector<1x17x16xf32>
    %172 = vector.extract_strided_slice %171 {offsets = [0, 11, 0], sizes = [1, 1, 16], strides = [1, 1, 1]} : vector<1x17x16xf32> to vector<1x1x16xf32>
    %cst_31 = arith.constant 1.000000e+00 : f32
    %173 = vector.broadcast %cst_31 : f32 to vector<1x1x16xf32>
    %174 = arith.divf %173, %172 : vector<1x1x16xf32>
    %175 = vector.extract_strided_slice %170 {offsets = [1, 11, 0], sizes = [4, 1, 16], strides = [1, 1, 1]} : vector<5x17x16xf32> to vector<4x1x16xf32>
    %176 = vector.broadcast %174 : vector<1x1x16xf32> to vector<4x1x16xf32>
    %177 = arith.mulf %175, %176 : vector<4x1x16xf32>
    %178 = vector.extract_strided_slice %170 {offsets = [1, 0, 0], sizes = [4, 17, 16], strides = [1, 1, 1]} : vector<5x17x16xf32> to vector<4x17x16xf32>
    %179 = vector.broadcast %177 : vector<4x1x16xf32> to vector<4x17x16xf32>
    %180 = vector.broadcast %171 : vector<1x17x16xf32> to vector<4x17x16xf32>
    %181 = arith.mulf %179, %180 : vector<4x17x16xf32>
    %182 = arith.subf %178, %181 : vector<4x17x16xf32>
    %183 = vector.extract_strided_slice %182 {offsets = [0, 0, 0], sizes = [1, 17, 16], strides = [1, 1, 1]} : vector<4x17x16xf32> to vector<1x17x16xf32>
    %184 = vector.extract_strided_slice %183 {offsets = [0, 12, 0], sizes = [1, 1, 16], strides = [1, 1, 1]} : vector<1x17x16xf32> to vector<1x1x16xf32>
    %cst_32 = arith.constant 1.000000e+00 : f32
    %185 = vector.broadcast %cst_32 : f32 to vector<1x1x16xf32>
    %186 = arith.divf %185, %184 : vector<1x1x16xf32>
    %187 = vector.extract_strided_slice %182 {offsets = [1, 12, 0], sizes = [3, 1, 16], strides = [1, 1, 1]} : vector<4x17x16xf32> to vector<3x1x16xf32>
    %188 = vector.broadcast %186 : vector<1x1x16xf32> to vector<3x1x16xf32>
    %189 = arith.mulf %187, %188 : vector<3x1x16xf32>
    %190 = vector.extract_strided_slice %182 {offsets = [1, 0, 0], sizes = [3, 17, 16], strides = [1, 1, 1]} : vector<4x17x16xf32> to vector<3x17x16xf32>
    %191 = vector.broadcast %189 : vector<3x1x16xf32> to vector<3x17x16xf32>
    %192 = vector.broadcast %183 : vector<1x17x16xf32> to vector<3x17x16xf32>
    %193 = arith.mulf %191, %192 : vector<3x17x16xf32>
    %194 = arith.subf %190, %193 : vector<3x17x16xf32>
    %195 = vector.extract_strided_slice %194 {offsets = [0, 0, 0], sizes = [1, 17, 16], strides = [1, 1, 1]} : vector<3x17x16xf32> to vector<1x17x16xf32>
    %196 = vector.extract_strided_slice %195 {offsets = [0, 13, 0], sizes = [1, 1, 16], strides = [1, 1, 1]} : vector<1x17x16xf32> to vector<1x1x16xf32>
    %cst_33 = arith.constant 1.000000e+00 : f32
    %197 = vector.broadcast %cst_33 : f32 to vector<1x1x16xf32>
    %198 = arith.divf %197, %196 : vector<1x1x16xf32>
    %199 = vector.extract_strided_slice %194 {offsets = [1, 13, 0], sizes = [2, 1, 16], strides = [1, 1, 1]} : vector<3x17x16xf32> to vector<2x1x16xf32>
    %200 = vector.broadcast %198 : vector<1x1x16xf32> to vector<2x1x16xf32>
    %201 = arith.mulf %199, %200 : vector<2x1x16xf32>
    %202 = vector.extract_strided_slice %194 {offsets = [1, 0, 0], sizes = [2, 17, 16], strides = [1, 1, 1]} : vector<3x17x16xf32> to vector<2x17x16xf32>
    %203 = vector.broadcast %201 : vector<2x1x16xf32> to vector<2x17x16xf32>
    %204 = vector.broadcast %195 : vector<1x17x16xf32> to vector<2x17x16xf32>
    %205 = arith.mulf %203, %204 : vector<2x17x16xf32>
    %206 = arith.subf %202, %205 : vector<2x17x16xf32>
    %207 = vector.extract_strided_slice %206 {offsets = [0, 0, 0], sizes = [1, 17, 16], strides = [1, 1, 1]} : vector<2x17x16xf32> to vector<1x17x16xf32>
    %208 = vector.extract_strided_slice %207 {offsets = [0, 14, 0], sizes = [1, 1, 16], strides = [1, 1, 1]} : vector<1x17x16xf32> to vector<1x1x16xf32>
    %cst_34 = arith.constant 1.000000e+00 : f32
    %209 = vector.broadcast %cst_34 : f32 to vector<1x1x16xf32>
    %210 = arith.divf %209, %208 : vector<1x1x16xf32>
    %211 = vector.extract_strided_slice %206 {offsets = [1, 14, 0], sizes = [1, 1, 16], strides = [1, 1, 1]} : vector<2x17x16xf32> to vector<1x1x16xf32>
    %212 = arith.mulf %211, %210 : vector<1x1x16xf32>
    %213 = vector.extract_strided_slice %206 {offsets = [1, 0, 0], sizes = [1, 17, 16], strides = [1, 1, 1]} : vector<2x17x16xf32> to vector<1x17x16xf32>
    %214 = vector.broadcast %212 : vector<1x1x16xf32> to vector<1x17x16xf32>
    %215 = arith.mulf %214, %207 : vector<1x17x16xf32>
    %216 = arith.subf %213, %215 : vector<1x17x16xf32>
    %217 = vector.extract_strided_slice %216 {offsets = [0, 15, 0], sizes = [1, 1, 16], strides = [1, 1, 1]} : vector<1x17x16xf32> to vector<1x1x16xf32>
    %cst_35 = arith.constant 1.000000e+00 : f32
    %218 = vector.broadcast %cst_35 : f32 to vector<1x1x16xf32>
    %219 = arith.divf %218, %217 : vector<1x1x16xf32>
    %220 = vector.extract_strided_slice %216 {offsets = [0, 16, 0], sizes = [1, 1, 16], strides = [1, 1, 1]} : vector<1x17x16xf32> to vector<1x1x16xf32>
    %221 = arith.mulf %220, %219 : vector<1x1x16xf32>
    %222 = vector.extract_strided_slice %207 {offsets = [0, 16, 0], sizes = [1, 1, 16], strides = [1, 1, 1]} : vector<1x17x16xf32> to vector<1x1x16xf32>
    %223 = vector.extract_strided_slice %207 {offsets = [0, 15, 0], sizes = [1, 1, 16], strides = [1, 1, 1]} : vector<1x17x16xf32> to vector<1x1x16xf32>
    %224 = arith.mulf %223, %221 : vector<1x1x16xf32>
    %225 = arith.subf %222, %224 : vector<1x1x16xf32>
    %226 = arith.mulf %225, %210 : vector<1x1x16xf32>
    %227 = vector.extract_strided_slice %195 {offsets = [0, 16, 0], sizes = [1, 1, 16], strides = [1, 1, 1]} : vector<1x17x16xf32> to vector<1x1x16xf32>
    %228 = vector.extract_strided_slice %195 {offsets = [0, 14, 0], sizes = [1, 1, 16], strides = [1, 1, 1]} : vector<1x17x16xf32> to vector<1x1x16xf32>
    %229 = arith.mulf %228, %226 : vector<1x1x16xf32>
    %230 = arith.subf %227, %229 : vector<1x1x16xf32>
    %231 = vector.extract_strided_slice %195 {offsets = [0, 15, 0], sizes = [1, 1, 16], strides = [1, 1, 1]} : vector<1x17x16xf32> to vector<1x1x16xf32>
    %232 = arith.mulf %231, %221 : vector<1x1x16xf32>
    %233 = arith.subf %230, %232 : vector<1x1x16xf32>
    %234 = arith.mulf %233, %198 : vector<1x1x16xf32>
    %235 = vector.extract_strided_slice %183 {offsets = [0, 16, 0], sizes = [1, 1, 16], strides = [1, 1, 1]} : vector<1x17x16xf32> to vector<1x1x16xf32>
    %236 = vector.extract_strided_slice %183 {offsets = [0, 13, 0], sizes = [1, 1, 16], strides = [1, 1, 1]} : vector<1x17x16xf32> to vector<1x1x16xf32>
    %237 = arith.mulf %236, %234 : vector<1x1x16xf32>
    %238 = arith.subf %235, %237 : vector<1x1x16xf32>
    %239 = vector.extract_strided_slice %183 {offsets = [0, 14, 0], sizes = [1, 1, 16], strides = [1, 1, 1]} : vector<1x17x16xf32> to vector<1x1x16xf32>
    %240 = arith.mulf %239, %226 : vector<1x1x16xf32>
    %241 = arith.subf %238, %240 : vector<1x1x16xf32>
    %242 = vector.extract_strided_slice %183 {offsets = [0, 15, 0], sizes = [1, 1, 16], strides = [1, 1, 1]} : vector<1x17x16xf32> to vector<1x1x16xf32>
    %243 = arith.mulf %242, %221 : vector<1x1x16xf32>
    %244 = arith.subf %241, %243 : vector<1x1x16xf32>
    %245 = arith.mulf %244, %186 : vector<1x1x16xf32>
    %246 = vector.extract_strided_slice %171 {offsets = [0, 16, 0], sizes = [1, 1, 16], strides = [1, 1, 1]} : vector<1x17x16xf32> to vector<1x1x16xf32>
    %247 = vector.extract_strided_slice %171 {offsets = [0, 12, 0], sizes = [1, 1, 16], strides = [1, 1, 1]} : vector<1x17x16xf32> to vector<1x1x16xf32>
    %248 = arith.mulf %247, %245 : vector<1x1x16xf32>
    %249 = arith.subf %246, %248 : vector<1x1x16xf32>
    %250 = vector.extract_strided_slice %171 {offsets = [0, 13, 0], sizes = [1, 1, 16], strides = [1, 1, 1]} : vector<1x17x16xf32> to vector<1x1x16xf32>
    %251 = arith.mulf %250, %234 : vector<1x1x16xf32>
    %252 = arith.subf %249, %251 : vector<1x1x16xf32>
    %253 = vector.extract_strided_slice %171 {offsets = [0, 14, 0], sizes = [1, 1, 16], strides = [1, 1, 1]} : vector<1x17x16xf32> to vector<1x1x16xf32>
    %254 = arith.mulf %253, %226 : vector<1x1x16xf32>
    %255 = arith.subf %252, %254 : vector<1x1x16xf32>
    %256 = vector.extract_strided_slice %171 {offsets = [0, 15, 0], sizes = [1, 1, 16], strides = [1, 1, 1]} : vector<1x17x16xf32> to vector<1x1x16xf32>
    %257 = arith.mulf %256, %221 : vector<1x1x16xf32>
    %258 = arith.subf %255, %257 : vector<1x1x16xf32>
    %259 = arith.mulf %258, %174 : vector<1x1x16xf32>
    %260 = vector.extract_strided_slice %159 {offsets = [0, 16, 0], sizes = [1, 1, 16], strides = [1, 1, 1]} : vector<1x17x16xf32> to vector<1x1x16xf32>
    %261 = vector.extract_strided_slice %159 {offsets = [0, 11, 0], sizes = [1, 1, 16], strides = [1, 1, 1]} : vector<1x17x16xf32> to vector<1x1x16xf32>
    %262 = arith.mulf %261, %259 : vector<1x1x16xf32>
    %263 = arith.subf %260, %262 : vector<1x1x16xf32>
    %264 = vector.extract_strided_slice %159 {offsets = [0, 12, 0], sizes = [1, 1, 16], strides = [1, 1, 1]} : vector<1x17x16xf32> to vector<1x1x16xf32>
    %265 = arith.mulf %264, %245 : vector<1x1x16xf32>
    %266 = arith.subf %263, %265 : vector<1x1x16xf32>
    %267 = vector.extract_strided_slice %159 {offsets = [0, 13, 0], sizes = [1, 1, 16], strides = [1, 1, 1]} : vector<1x17x16xf32> to vector<1x1x16xf32>
    %268 = arith.mulf %267, %234 : vector<1x1x16xf32>
    %269 = arith.subf %266, %268 : vector<1x1x16xf32>
    %270 = vector.extract_strided_slice %159 {offsets = [0, 14, 0], sizes = [1, 1, 16], strides = [1, 1, 1]} : vector<1x17x16xf32> to vector<1x1x16xf32>
    %271 = arith.mulf %270, %226 : vector<1x1x16xf32>
    %272 = arith.subf %269, %271 : vector<1x1x16xf32>
    %273 = vector.extract_strided_slice %159 {offsets = [0, 15, 0], sizes = [1, 1, 16], strides = [1, 1, 1]} : vector<1x17x16xf32> to vector<1x1x16xf32>
    %274 = arith.mulf %273, %221 : vector<1x1x16xf32>
    %275 = arith.subf %272, %274 : vector<1x1x16xf32>
    %276 = arith.mulf %275, %162 : vector<1x1x16xf32>
    %277 = vector.extract_strided_slice %147 {offsets = [0, 16, 0], sizes = [1, 1, 16], strides = [1, 1, 1]} : vector<1x17x16xf32> to vector<1x1x16xf32>
    %278 = vector.extract_strided_slice %147 {offsets = [0, 10, 0], sizes = [1, 1, 16], strides = [1, 1, 1]} : vector<1x17x16xf32> to vector<1x1x16xf32>
    %279 = arith.mulf %278, %276 : vector<1x1x16xf32>
    %280 = arith.subf %277, %279 : vector<1x1x16xf32>
    %281 = vector.extract_strided_slice %147 {offsets = [0, 11, 0], sizes = [1, 1, 16], strides = [1, 1, 1]} : vector<1x17x16xf32> to vector<1x1x16xf32>
    %282 = arith.mulf %281, %259 : vector<1x1x16xf32>
    %283 = arith.subf %280, %282 : vector<1x1x16xf32>
    %284 = vector.extract_strided_slice %147 {offsets = [0, 12, 0], sizes = [1, 1, 16], strides = [1, 1, 1]} : vector<1x17x16xf32> to vector<1x1x16xf32>
    %285 = arith.mulf %284, %245 : vector<1x1x16xf32>
    %286 = arith.subf %283, %285 : vector<1x1x16xf32>
    %287 = vector.extract_strided_slice %147 {offsets = [0, 13, 0], sizes = [1, 1, 16], strides = [1, 1, 1]} : vector<1x17x16xf32> to vector<1x1x16xf32>
    %288 = arith.mulf %287, %234 : vector<1x1x16xf32>
    %289 = arith.subf %286, %288 : vector<1x1x16xf32>
    %290 = vector.extract_strided_slice %147 {offsets = [0, 14, 0], sizes = [1, 1, 16], strides = [1, 1, 1]} : vector<1x17x16xf32> to vector<1x1x16xf32>
    %291 = arith.mulf %290, %226 : vector<1x1x16xf32>
    %292 = arith.subf %289, %291 : vector<1x1x16xf32>
    %293 = vector.extract_strided_slice %147 {offsets = [0, 15, 0], sizes = [1, 1, 16], strides = [1, 1, 1]} : vector<1x17x16xf32> to vector<1x1x16xf32>
    %294 = arith.mulf %293, %221 : vector<1x1x16xf32>
    %295 = arith.subf %292, %294 : vector<1x1x16xf32>
    %296 = arith.mulf %295, %150 : vector<1x1x16xf32>
    %297 = vector.extract_strided_slice %135 {offsets = [0, 16, 0], sizes = [1, 1, 16], strides = [1, 1, 1]} : vector<1x17x16xf32> to vector<1x1x16xf32>
    %298 = vector.extract_strided_slice %135 {offsets = [0, 9, 0], sizes = [1, 1, 16], strides = [1, 1, 1]} : vector<1x17x16xf32> to vector<1x1x16xf32>
    %299 = arith.mulf %298, %296 : vector<1x1x16xf32>
    %300 = arith.subf %297, %299 : vector<1x1x16xf32>
    %301 = vector.extract_strided_slice %135 {offsets = [0, 10, 0], sizes = [1, 1, 16], strides = [1, 1, 1]} : vector<1x17x16xf32> to vector<1x1x16xf32>
    %302 = arith.mulf %301, %276 : vector<1x1x16xf32>
    %303 = arith.subf %300, %302 : vector<1x1x16xf32>
    %304 = vector.extract_strided_slice %135 {offsets = [0, 11, 0], sizes = [1, 1, 16], strides = [1, 1, 1]} : vector<1x17x16xf32> to vector<1x1x16xf32>
    %305 = arith.mulf %304, %259 : vector<1x1x16xf32>
    %306 = arith.subf %303, %305 : vector<1x1x16xf32>
    %307 = vector.extract_strided_slice %135 {offsets = [0, 12, 0], sizes = [1, 1, 16], strides = [1, 1, 1]} : vector<1x17x16xf32> to vector<1x1x16xf32>
    %308 = arith.mulf %307, %245 : vector<1x1x16xf32>
    %309 = arith.subf %306, %308 : vector<1x1x16xf32>
    %310 = vector.extract_strided_slice %135 {offsets = [0, 13, 0], sizes = [1, 1, 16], strides = [1, 1, 1]} : vector<1x17x16xf32> to vector<1x1x16xf32>
    %311 = arith.mulf %310, %234 : vector<1x1x16xf32>
    %312 = arith.subf %309, %311 : vector<1x1x16xf32>
    %313 = vector.extract_strided_slice %135 {offsets = [0, 14, 0], sizes = [1, 1, 16], strides = [1, 1, 1]} : vector<1x17x16xf32> to vector<1x1x16xf32>
    %314 = arith.mulf %313, %226 : vector<1x1x16xf32>
    %315 = arith.subf %312, %314 : vector<1x1x16xf32>
    %316 = vector.extract_strided_slice %135 {offsets = [0, 15, 0], sizes = [1, 1, 16], strides = [1, 1, 1]} : vector<1x17x16xf32> to vector<1x1x16xf32>
    %317 = arith.mulf %316, %221 : vector<1x1x16xf32>
    %318 = arith.subf %315, %317 : vector<1x1x16xf32>
    %319 = arith.mulf %318, %138 : vector<1x1x16xf32>
    %320 = vector.extract_strided_slice %123 {offsets = [0, 16, 0], sizes = [1, 1, 16], strides = [1, 1, 1]} : vector<1x17x16xf32> to vector<1x1x16xf32>
    %321 = vector.extract_strided_slice %123 {offsets = [0, 8, 0], sizes = [1, 1, 16], strides = [1, 1, 1]} : vector<1x17x16xf32> to vector<1x1x16xf32>
    %322 = arith.mulf %321, %319 : vector<1x1x16xf32>
    %323 = arith.subf %320, %322 : vector<1x1x16xf32>
    %324 = vector.extract_strided_slice %123 {offsets = [0, 9, 0], sizes = [1, 1, 16], strides = [1, 1, 1]} : vector<1x17x16xf32> to vector<1x1x16xf32>
    %325 = arith.mulf %324, %296 : vector<1x1x16xf32>
    %326 = arith.subf %323, %325 : vector<1x1x16xf32>
    %327 = vector.extract_strided_slice %123 {offsets = [0, 10, 0], sizes = [1, 1, 16], strides = [1, 1, 1]} : vector<1x17x16xf32> to vector<1x1x16xf32>
    %328 = arith.mulf %327, %276 : vector<1x1x16xf32>
    %329 = arith.subf %326, %328 : vector<1x1x16xf32>
    %330 = vector.extract_strided_slice %123 {offsets = [0, 11, 0], sizes = [1, 1, 16], strides = [1, 1, 1]} : vector<1x17x16xf32> to vector<1x1x16xf32>
    %331 = arith.mulf %330, %259 : vector<1x1x16xf32>
    %332 = arith.subf %329, %331 : vector<1x1x16xf32>
    %333 = vector.extract_strided_slice %123 {offsets = [0, 12, 0], sizes = [1, 1, 16], strides = [1, 1, 1]} : vector<1x17x16xf32> to vector<1x1x16xf32>
    %334 = arith.mulf %333, %245 : vector<1x1x16xf32>
    %335 = arith.subf %332, %334 : vector<1x1x16xf32>
    %336 = vector.extract_strided_slice %123 {offsets = [0, 13, 0], sizes = [1, 1, 16], strides = [1, 1, 1]} : vector<1x17x16xf32> to vector<1x1x16xf32>
    %337 = arith.mulf %336, %234 : vector<1x1x16xf32>
    %338 = arith.subf %335, %337 : vector<1x1x16xf32>
    %339 = vector.extract_strided_slice %123 {offsets = [0, 14, 0], sizes = [1, 1, 16], strides = [1, 1, 1]} : vector<1x17x16xf32> to vector<1x1x16xf32>
    %340 = arith.mulf %339, %226 : vector<1x1x16xf32>
    %341 = arith.subf %338, %340 : vector<1x1x16xf32>
    %342 = vector.extract_strided_slice %123 {offsets = [0, 15, 0], sizes = [1, 1, 16], strides = [1, 1, 1]} : vector<1x17x16xf32> to vector<1x1x16xf32>
    %343 = arith.mulf %342, %221 : vector<1x1x16xf32>
    %344 = arith.subf %341, %343 : vector<1x1x16xf32>
    %345 = arith.mulf %344, %126 : vector<1x1x16xf32>
    %346 = vector.extract_strided_slice %111 {offsets = [0, 16, 0], sizes = [1, 1, 16], strides = [1, 1, 1]} : vector<1x17x16xf32> to vector<1x1x16xf32>
    %347 = vector.extract_strided_slice %111 {offsets = [0, 7, 0], sizes = [1, 1, 16], strides = [1, 1, 1]} : vector<1x17x16xf32> to vector<1x1x16xf32>
    %348 = arith.mulf %347, %345 : vector<1x1x16xf32>
    %349 = arith.subf %346, %348 : vector<1x1x16xf32>
    %350 = vector.extract_strided_slice %111 {offsets = [0, 8, 0], sizes = [1, 1, 16], strides = [1, 1, 1]} : vector<1x17x16xf32> to vector<1x1x16xf32>
    %351 = arith.mulf %350, %319 : vector<1x1x16xf32>
    %352 = arith.subf %349, %351 : vector<1x1x16xf32>
    %353 = vector.extract_strided_slice %111 {offsets = [0, 9, 0], sizes = [1, 1, 16], strides = [1, 1, 1]} : vector<1x17x16xf32> to vector<1x1x16xf32>
    %354 = arith.mulf %353, %296 : vector<1x1x16xf32>
    %355 = arith.subf %352, %354 : vector<1x1x16xf32>
    %356 = vector.extract_strided_slice %111 {offsets = [0, 10, 0], sizes = [1, 1, 16], strides = [1, 1, 1]} : vector<1x17x16xf32> to vector<1x1x16xf32>
    %357 = arith.mulf %356, %276 : vector<1x1x16xf32>
    %358 = arith.subf %355, %357 : vector<1x1x16xf32>
    %359 = vector.extract_strided_slice %111 {offsets = [0, 11, 0], sizes = [1, 1, 16], strides = [1, 1, 1]} : vector<1x17x16xf32> to vector<1x1x16xf32>
    %360 = arith.mulf %359, %259 : vector<1x1x16xf32>
    %361 = arith.subf %358, %360 : vector<1x1x16xf32>
    %362 = vector.extract_strided_slice %111 {offsets = [0, 12, 0], sizes = [1, 1, 16], strides = [1, 1, 1]} : vector<1x17x16xf32> to vector<1x1x16xf32>
    %363 = arith.mulf %362, %245 : vector<1x1x16xf32>
    %364 = arith.subf %361, %363 : vector<1x1x16xf32>
    %365 = vector.extract_strided_slice %111 {offsets = [0, 13, 0], sizes = [1, 1, 16], strides = [1, 1, 1]} : vector<1x17x16xf32> to vector<1x1x16xf32>
    %366 = arith.mulf %365, %234 : vector<1x1x16xf32>
    %367 = arith.subf %364, %366 : vector<1x1x16xf32>
    %368 = vector.extract_strided_slice %111 {offsets = [0, 14, 0], sizes = [1, 1, 16], strides = [1, 1, 1]} : vector<1x17x16xf32> to vector<1x1x16xf32>
    %369 = arith.mulf %368, %226 : vector<1x1x16xf32>
    %370 = arith.subf %367, %369 : vector<1x1x16xf32>
    %371 = vector.extract_strided_slice %111 {offsets = [0, 15, 0], sizes = [1, 1, 16], strides = [1, 1, 1]} : vector<1x17x16xf32> to vector<1x1x16xf32>
    %372 = arith.mulf %371, %221 : vector<1x1x16xf32>
    %373 = arith.subf %370, %372 : vector<1x1x16xf32>
    %374 = arith.mulf %373, %114 : vector<1x1x16xf32>
    %375 = vector.extract_strided_slice %99 {offsets = [0, 16, 0], sizes = [1, 1, 16], strides = [1, 1, 1]} : vector<1x17x16xf32> to vector<1x1x16xf32>
    %376 = vector.extract_strided_slice %99 {offsets = [0, 6, 0], sizes = [1, 1, 16], strides = [1, 1, 1]} : vector<1x17x16xf32> to vector<1x1x16xf32>
    %377 = arith.mulf %376, %374 : vector<1x1x16xf32>
    %378 = arith.subf %375, %377 : vector<1x1x16xf32>
    %379 = vector.extract_strided_slice %99 {offsets = [0, 7, 0], sizes = [1, 1, 16], strides = [1, 1, 1]} : vector<1x17x16xf32> to vector<1x1x16xf32>
    %380 = arith.mulf %379, %345 : vector<1x1x16xf32>
    %381 = arith.subf %378, %380 : vector<1x1x16xf32>
    %382 = vector.extract_strided_slice %99 {offsets = [0, 8, 0], sizes = [1, 1, 16], strides = [1, 1, 1]} : vector<1x17x16xf32> to vector<1x1x16xf32>
    %383 = arith.mulf %382, %319 : vector<1x1x16xf32>
    %384 = arith.subf %381, %383 : vector<1x1x16xf32>
    %385 = vector.extract_strided_slice %99 {offsets = [0, 9, 0], sizes = [1, 1, 16], strides = [1, 1, 1]} : vector<1x17x16xf32> to vector<1x1x16xf32>
    %386 = arith.mulf %385, %296 : vector<1x1x16xf32>
    %387 = arith.subf %384, %386 : vector<1x1x16xf32>
    %388 = vector.extract_strided_slice %99 {offsets = [0, 10, 0], sizes = [1, 1, 16], strides = [1, 1, 1]} : vector<1x17x16xf32> to vector<1x1x16xf32>
    %389 = arith.mulf %388, %276 : vector<1x1x16xf32>
    %390 = arith.subf %387, %389 : vector<1x1x16xf32>
    %391 = vector.extract_strided_slice %99 {offsets = [0, 11, 0], sizes = [1, 1, 16], strides = [1, 1, 1]} : vector<1x17x16xf32> to vector<1x1x16xf32>
    %392 = arith.mulf %391, %259 : vector<1x1x16xf32>
    %393 = arith.subf %390, %392 : vector<1x1x16xf32>
    %394 = vector.extract_strided_slice %99 {offsets = [0, 12, 0], sizes = [1, 1, 16], strides = [1, 1, 1]} : vector<1x17x16xf32> to vector<1x1x16xf32>
    %395 = arith.mulf %394, %245 : vector<1x1x16xf32>
    %396 = arith.subf %393, %395 : vector<1x1x16xf32>
    %397 = vector.extract_strided_slice %99 {offsets = [0, 13, 0], sizes = [1, 1, 16], strides = [1, 1, 1]} : vector<1x17x16xf32> to vector<1x1x16xf32>
    %398 = arith.mulf %397, %234 : vector<1x1x16xf32>
    %399 = arith.subf %396, %398 : vector<1x1x16xf32>
    %400 = vector.extract_strided_slice %99 {offsets = [0, 14, 0], sizes = [1, 1, 16], strides = [1, 1, 1]} : vector<1x17x16xf32> to vector<1x1x16xf32>
    %401 = arith.mulf %400, %226 : vector<1x1x16xf32>
    %402 = arith.subf %399, %401 : vector<1x1x16xf32>
    %403 = vector.extract_strided_slice %99 {offsets = [0, 15, 0], sizes = [1, 1, 16], strides = [1, 1, 1]} : vector<1x17x16xf32> to vector<1x1x16xf32>
    %404 = arith.mulf %403, %221 : vector<1x1x16xf32>
    %405 = arith.subf %402, %404 : vector<1x1x16xf32>
    %406 = arith.mulf %405, %102 : vector<1x1x16xf32>
    %407 = vector.extract_strided_slice %87 {offsets = [0, 16, 0], sizes = [1, 1, 16], strides = [1, 1, 1]} : vector<1x17x16xf32> to vector<1x1x16xf32>
    %408 = vector.extract_strided_slice %87 {offsets = [0, 5, 0], sizes = [1, 1, 16], strides = [1, 1, 1]} : vector<1x17x16xf32> to vector<1x1x16xf32>
    %409 = arith.mulf %408, %406 : vector<1x1x16xf32>
    %410 = arith.subf %407, %409 : vector<1x1x16xf32>
    %411 = vector.extract_strided_slice %87 {offsets = [0, 6, 0], sizes = [1, 1, 16], strides = [1, 1, 1]} : vector<1x17x16xf32> to vector<1x1x16xf32>
    %412 = arith.mulf %411, %374 : vector<1x1x16xf32>
    %413 = arith.subf %410, %412 : vector<1x1x16xf32>
    %414 = vector.extract_strided_slice %87 {offsets = [0, 7, 0], sizes = [1, 1, 16], strides = [1, 1, 1]} : vector<1x17x16xf32> to vector<1x1x16xf32>
    %415 = arith.mulf %414, %345 : vector<1x1x16xf32>
    %416 = arith.subf %413, %415 : vector<1x1x16xf32>
    %417 = vector.extract_strided_slice %87 {offsets = [0, 8, 0], sizes = [1, 1, 16], strides = [1, 1, 1]} : vector<1x17x16xf32> to vector<1x1x16xf32>
    %418 = arith.mulf %417, %319 : vector<1x1x16xf32>
    %419 = arith.subf %416, %418 : vector<1x1x16xf32>
    %420 = vector.extract_strided_slice %87 {offsets = [0, 9, 0], sizes = [1, 1, 16], strides = [1, 1, 1]} : vector<1x17x16xf32> to vector<1x1x16xf32>
    %421 = arith.mulf %420, %296 : vector<1x1x16xf32>
    %422 = arith.subf %419, %421 : vector<1x1x16xf32>
    %423 = vector.extract_strided_slice %87 {offsets = [0, 10, 0], sizes = [1, 1, 16], strides = [1, 1, 1]} : vector<1x17x16xf32> to vector<1x1x16xf32>
    %424 = arith.mulf %423, %276 : vector<1x1x16xf32>
    %425 = arith.subf %422, %424 : vector<1x1x16xf32>
    %426 = vector.extract_strided_slice %87 {offsets = [0, 11, 0], sizes = [1, 1, 16], strides = [1, 1, 1]} : vector<1x17x16xf32> to vector<1x1x16xf32>
    %427 = arith.mulf %426, %259 : vector<1x1x16xf32>
    %428 = arith.subf %425, %427 : vector<1x1x16xf32>
    %429 = vector.extract_strided_slice %87 {offsets = [0, 12, 0], sizes = [1, 1, 16], strides = [1, 1, 1]} : vector<1x17x16xf32> to vector<1x1x16xf32>
    %430 = arith.mulf %429, %245 : vector<1x1x16xf32>
    %431 = arith.subf %428, %430 : vector<1x1x16xf32>
    %432 = vector.extract_strided_slice %87 {offsets = [0, 13, 0], sizes = [1, 1, 16], strides = [1, 1, 1]} : vector<1x17x16xf32> to vector<1x1x16xf32>
    %433 = arith.mulf %432, %234 : vector<1x1x16xf32>
    %434 = arith.subf %431, %433 : vector<1x1x16xf32>
    %435 = vector.extract_strided_slice %87 {offsets = [0, 14, 0], sizes = [1, 1, 16], strides = [1, 1, 1]} : vector<1x17x16xf32> to vector<1x1x16xf32>
    %436 = arith.mulf %435, %226 : vector<1x1x16xf32>
    %437 = arith.subf %434, %436 : vector<1x1x16xf32>
    %438 = vector.extract_strided_slice %87 {offsets = [0, 15, 0], sizes = [1, 1, 16], strides = [1, 1, 1]} : vector<1x17x16xf32> to vector<1x1x16xf32>
    %439 = arith.mulf %438, %221 : vector<1x1x16xf32>
    %440 = arith.subf %437, %439 : vector<1x1x16xf32>
    %441 = arith.mulf %440, %90 : vector<1x1x16xf32>
    %442 = vector.extract_strided_slice %75 {offsets = [0, 16, 0], sizes = [1, 1, 16], strides = [1, 1, 1]} : vector<1x17x16xf32> to vector<1x1x16xf32>
    %443 = vector.extract_strided_slice %75 {offsets = [0, 4, 0], sizes = [1, 1, 16], strides = [1, 1, 1]} : vector<1x17x16xf32> to vector<1x1x16xf32>
    %444 = arith.mulf %443, %441 : vector<1x1x16xf32>
    %445 = arith.subf %442, %444 : vector<1x1x16xf32>
    %446 = vector.extract_strided_slice %75 {offsets = [0, 5, 0], sizes = [1, 1, 16], strides = [1, 1, 1]} : vector<1x17x16xf32> to vector<1x1x16xf32>
    %447 = arith.mulf %446, %406 : vector<1x1x16xf32>
    %448 = arith.subf %445, %447 : vector<1x1x16xf32>
    %449 = vector.extract_strided_slice %75 {offsets = [0, 6, 0], sizes = [1, 1, 16], strides = [1, 1, 1]} : vector<1x17x16xf32> to vector<1x1x16xf32>
    %450 = arith.mulf %449, %374 : vector<1x1x16xf32>
    %451 = arith.subf %448, %450 : vector<1x1x16xf32>
    %452 = vector.extract_strided_slice %75 {offsets = [0, 7, 0], sizes = [1, 1, 16], strides = [1, 1, 1]} : vector<1x17x16xf32> to vector<1x1x16xf32>
    %453 = arith.mulf %452, %345 : vector<1x1x16xf32>
    %454 = arith.subf %451, %453 : vector<1x1x16xf32>
    %455 = vector.extract_strided_slice %75 {offsets = [0, 8, 0], sizes = [1, 1, 16], strides = [1, 1, 1]} : vector<1x17x16xf32> to vector<1x1x16xf32>
    %456 = arith.mulf %455, %319 : vector<1x1x16xf32>
    %457 = arith.subf %454, %456 : vector<1x1x16xf32>
    %458 = vector.extract_strided_slice %75 {offsets = [0, 9, 0], sizes = [1, 1, 16], strides = [1, 1, 1]} : vector<1x17x16xf32> to vector<1x1x16xf32>
    %459 = arith.mulf %458, %296 : vector<1x1x16xf32>
    %460 = arith.subf %457, %459 : vector<1x1x16xf32>
    %461 = vector.extract_strided_slice %75 {offsets = [0, 10, 0], sizes = [1, 1, 16], strides = [1, 1, 1]} : vector<1x17x16xf32> to vector<1x1x16xf32>
    %462 = arith.mulf %461, %276 : vector<1x1x16xf32>
    %463 = arith.subf %460, %462 : vector<1x1x16xf32>
    %464 = vector.extract_strided_slice %75 {offsets = [0, 11, 0], sizes = [1, 1, 16], strides = [1, 1, 1]} : vector<1x17x16xf32> to vector<1x1x16xf32>
    %465 = arith.mulf %464, %259 : vector<1x1x16xf32>
    %466 = arith.subf %463, %465 : vector<1x1x16xf32>
    %467 = vector.extract_strided_slice %75 {offsets = [0, 12, 0], sizes = [1, 1, 16], strides = [1, 1, 1]} : vector<1x17x16xf32> to vector<1x1x16xf32>
    %468 = arith.mulf %467, %245 : vector<1x1x16xf32>
    %469 = arith.subf %466, %468 : vector<1x1x16xf32>
    %470 = vector.extract_strided_slice %75 {offsets = [0, 13, 0], sizes = [1, 1, 16], strides = [1, 1, 1]} : vector<1x17x16xf32> to vector<1x1x16xf32>
    %471 = arith.mulf %470, %234 : vector<1x1x16xf32>
    %472 = arith.subf %469, %471 : vector<1x1x16xf32>
    %473 = vector.extract_strided_slice %75 {offsets = [0, 14, 0], sizes = [1, 1, 16], strides = [1, 1, 1]} : vector<1x17x16xf32> to vector<1x1x16xf32>
    %474 = arith.mulf %473, %226 : vector<1x1x16xf32>
    %475 = arith.subf %472, %474 : vector<1x1x16xf32>
    %476 = vector.extract_strided_slice %75 {offsets = [0, 15, 0], sizes = [1, 1, 16], strides = [1, 1, 1]} : vector<1x17x16xf32> to vector<1x1x16xf32>
    %477 = arith.mulf %476, %221 : vector<1x1x16xf32>
    %478 = arith.subf %475, %477 : vector<1x1x16xf32>
    %479 = arith.mulf %478, %78 : vector<1x1x16xf32>
    %480 = vector.extract_strided_slice %63 {offsets = [0, 16, 0], sizes = [1, 1, 16], strides = [1, 1, 1]} : vector<1x17x16xf32> to vector<1x1x16xf32>
    %481 = vector.extract_strided_slice %63 {offsets = [0, 3, 0], sizes = [1, 1, 16], strides = [1, 1, 1]} : vector<1x17x16xf32> to vector<1x1x16xf32>
    %482 = arith.mulf %481, %479 : vector<1x1x16xf32>
    %483 = arith.subf %480, %482 : vector<1x1x16xf32>
    %484 = vector.extract_strided_slice %63 {offsets = [0, 4, 0], sizes = [1, 1, 16], strides = [1, 1, 1]} : vector<1x17x16xf32> to vector<1x1x16xf32>
    %485 = arith.mulf %484, %441 : vector<1x1x16xf32>
    %486 = arith.subf %483, %485 : vector<1x1x16xf32>
    %487 = vector.extract_strided_slice %63 {offsets = [0, 5, 0], sizes = [1, 1, 16], strides = [1, 1, 1]} : vector<1x17x16xf32> to vector<1x1x16xf32>
    %488 = arith.mulf %487, %406 : vector<1x1x16xf32>
    %489 = arith.subf %486, %488 : vector<1x1x16xf32>
    %490 = vector.extract_strided_slice %63 {offsets = [0, 6, 0], sizes = [1, 1, 16], strides = [1, 1, 1]} : vector<1x17x16xf32> to vector<1x1x16xf32>
    %491 = arith.mulf %490, %374 : vector<1x1x16xf32>
    %492 = arith.subf %489, %491 : vector<1x1x16xf32>
    %493 = vector.extract_strided_slice %63 {offsets = [0, 7, 0], sizes = [1, 1, 16], strides = [1, 1, 1]} : vector<1x17x16xf32> to vector<1x1x16xf32>
    %494 = arith.mulf %493, %345 : vector<1x1x16xf32>
    %495 = arith.subf %492, %494 : vector<1x1x16xf32>
    %496 = vector.extract_strided_slice %63 {offsets = [0, 8, 0], sizes = [1, 1, 16], strides = [1, 1, 1]} : vector<1x17x16xf32> to vector<1x1x16xf32>
    %497 = arith.mulf %496, %319 : vector<1x1x16xf32>
    %498 = arith.subf %495, %497 : vector<1x1x16xf32>
    %499 = vector.extract_strided_slice %63 {offsets = [0, 9, 0], sizes = [1, 1, 16], strides = [1, 1, 1]} : vector<1x17x16xf32> to vector<1x1x16xf32>
    %500 = arith.mulf %499, %296 : vector<1x1x16xf32>
    %501 = arith.subf %498, %500 : vector<1x1x16xf32>
    %502 = vector.extract_strided_slice %63 {offsets = [0, 10, 0], sizes = [1, 1, 16], strides = [1, 1, 1]} : vector<1x17x16xf32> to vector<1x1x16xf32>
    %503 = arith.mulf %502, %276 : vector<1x1x16xf32>
    %504 = arith.subf %501, %503 : vector<1x1x16xf32>
    %505 = vector.extract_strided_slice %63 {offsets = [0, 11, 0], sizes = [1, 1, 16], strides = [1, 1, 1]} : vector<1x17x16xf32> to vector<1x1x16xf32>
    %506 = arith.mulf %505, %259 : vector<1x1x16xf32>
    %507 = arith.subf %504, %506 : vector<1x1x16xf32>
    %508 = vector.extract_strided_slice %63 {offsets = [0, 12, 0], sizes = [1, 1, 16], strides = [1, 1, 1]} : vector<1x17x16xf32> to vector<1x1x16xf32>
    %509 = arith.mulf %508, %245 : vector<1x1x16xf32>
    %510 = arith.subf %507, %509 : vector<1x1x16xf32>
    %511 = vector.extract_strided_slice %63 {offsets = [0, 13, 0], sizes = [1, 1, 16], strides = [1, 1, 1]} : vector<1x17x16xf32> to vector<1x1x16xf32>
    %512 = arith.mulf %511, %234 : vector<1x1x16xf32>
    %513 = arith.subf %510, %512 : vector<1x1x16xf32>
    %514 = vector.extract_strided_slice %63 {offsets = [0, 14, 0], sizes = [1, 1, 16], strides = [1, 1, 1]} : vector<1x17x16xf32> to vector<1x1x16xf32>
    %515 = arith.mulf %514, %226 : vector<1x1x16xf32>
    %516 = arith.subf %513, %515 : vector<1x1x16xf32>
    %517 = vector.extract_strided_slice %63 {offsets = [0, 15, 0], sizes = [1, 1, 16], strides = [1, 1, 1]} : vector<1x17x16xf32> to vector<1x1x16xf32>
    %518 = arith.mulf %517, %221 : vector<1x1x16xf32>
    %519 = arith.subf %516, %518 : vector<1x1x16xf32>
    %520 = arith.mulf %519, %66 : vector<1x1x16xf32>
    %521 = vector.extract_strided_slice %51 {offsets = [0, 16, 0], sizes = [1, 1, 16], strides = [1, 1, 1]} : vector<1x17x16xf32> to vector<1x1x16xf32>
    %522 = vector.extract_strided_slice %51 {offsets = [0, 2, 0], sizes = [1, 1, 16], strides = [1, 1, 1]} : vector<1x17x16xf32> to vector<1x1x16xf32>
    %523 = arith.mulf %522, %520 : vector<1x1x16xf32>
    %524 = arith.subf %521, %523 : vector<1x1x16xf32>
    %525 = vector.extract_strided_slice %51 {offsets = [0, 3, 0], sizes = [1, 1, 16], strides = [1, 1, 1]} : vector<1x17x16xf32> to vector<1x1x16xf32>
    %526 = arith.mulf %525, %479 : vector<1x1x16xf32>
    %527 = arith.subf %524, %526 : vector<1x1x16xf32>
    %528 = vector.extract_strided_slice %51 {offsets = [0, 4, 0], sizes = [1, 1, 16], strides = [1, 1, 1]} : vector<1x17x16xf32> to vector<1x1x16xf32>
    %529 = arith.mulf %528, %441 : vector<1x1x16xf32>
    %530 = arith.subf %527, %529 : vector<1x1x16xf32>
    %531 = vector.extract_strided_slice %51 {offsets = [0, 5, 0], sizes = [1, 1, 16], strides = [1, 1, 1]} : vector<1x17x16xf32> to vector<1x1x16xf32>
    %532 = arith.mulf %531, %406 : vector<1x1x16xf32>
    %533 = arith.subf %530, %532 : vector<1x1x16xf32>
    %534 = vector.extract_strided_slice %51 {offsets = [0, 6, 0], sizes = [1, 1, 16], strides = [1, 1, 1]} : vector<1x17x16xf32> to vector<1x1x16xf32>
    %535 = arith.mulf %534, %374 : vector<1x1x16xf32>
    %536 = arith.subf %533, %535 : vector<1x1x16xf32>
    %537 = vector.extract_strided_slice %51 {offsets = [0, 7, 0], sizes = [1, 1, 16], strides = [1, 1, 1]} : vector<1x17x16xf32> to vector<1x1x16xf32>
    %538 = arith.mulf %537, %345 : vector<1x1x16xf32>
    %539 = arith.subf %536, %538 : vector<1x1x16xf32>
    %540 = vector.extract_strided_slice %51 {offsets = [0, 8, 0], sizes = [1, 1, 16], strides = [1, 1, 1]} : vector<1x17x16xf32> to vector<1x1x16xf32>
    %541 = arith.mulf %540, %319 : vector<1x1x16xf32>
    %542 = arith.subf %539, %541 : vector<1x1x16xf32>
    %543 = vector.extract_strided_slice %51 {offsets = [0, 9, 0], sizes = [1, 1, 16], strides = [1, 1, 1]} : vector<1x17x16xf32> to vector<1x1x16xf32>
    %544 = arith.mulf %543, %296 : vector<1x1x16xf32>
    %545 = arith.subf %542, %544 : vector<1x1x16xf32>
    %546 = vector.extract_strided_slice %51 {offsets = [0, 10, 0], sizes = [1, 1, 16], strides = [1, 1, 1]} : vector<1x17x16xf32> to vector<1x1x16xf32>
    %547 = arith.mulf %546, %276 : vector<1x1x16xf32>
    %548 = arith.subf %545, %547 : vector<1x1x16xf32>
    %549 = vector.extract_strided_slice %51 {offsets = [0, 11, 0], sizes = [1, 1, 16], strides = [1, 1, 1]} : vector<1x17x16xf32> to vector<1x1x16xf32>
    %550 = arith.mulf %549, %259 : vector<1x1x16xf32>
    %551 = arith.subf %548, %550 : vector<1x1x16xf32>
    %552 = vector.extract_strided_slice %51 {offsets = [0, 12, 0], sizes = [1, 1, 16], strides = [1, 1, 1]} : vector<1x17x16xf32> to vector<1x1x16xf32>
    %553 = arith.mulf %552, %245 : vector<1x1x16xf32>
    %554 = arith.subf %551, %553 : vector<1x1x16xf32>
    %555 = vector.extract_strided_slice %51 {offsets = [0, 13, 0], sizes = [1, 1, 16], strides = [1, 1, 1]} : vector<1x17x16xf32> to vector<1x1x16xf32>
    %556 = arith.mulf %555, %234 : vector<1x1x16xf32>
    %557 = arith.subf %554, %556 : vector<1x1x16xf32>
    %558 = vector.extract_strided_slice %51 {offsets = [0, 14, 0], sizes = [1, 1, 16], strides = [1, 1, 1]} : vector<1x17x16xf32> to vector<1x1x16xf32>
    %559 = arith.mulf %558, %226 : vector<1x1x16xf32>
    %560 = arith.subf %557, %559 : vector<1x1x16xf32>
    %561 = vector.extract_strided_slice %51 {offsets = [0, 15, 0], sizes = [1, 1, 16], strides = [1, 1, 1]} : vector<1x17x16xf32> to vector<1x1x16xf32>
    %562 = arith.mulf %561, %221 : vector<1x1x16xf32>
    %563 = arith.subf %560, %562 : vector<1x1x16xf32>
    %564 = arith.mulf %563, %54 : vector<1x1x16xf32>
    %565 = vector.extract_strided_slice %39 {offsets = [0, 16, 0], sizes = [1, 1, 16], strides = [1, 1, 1]} : vector<1x17x16xf32> to vector<1x1x16xf32>
    %566 = vector.extract_strided_slice %39 {offsets = [0, 1, 0], sizes = [1, 1, 16], strides = [1, 1, 1]} : vector<1x17x16xf32> to vector<1x1x16xf32>
    %567 = arith.mulf %566, %564 : vector<1x1x16xf32>
    %568 = arith.subf %565, %567 : vector<1x1x16xf32>
    %569 = vector.extract_strided_slice %39 {offsets = [0, 2, 0], sizes = [1, 1, 16], strides = [1, 1, 1]} : vector<1x17x16xf32> to vector<1x1x16xf32>
    %570 = arith.mulf %569, %520 : vector<1x1x16xf32>
    %571 = arith.subf %568, %570 : vector<1x1x16xf32>
    %572 = vector.extract_strided_slice %39 {offsets = [0, 3, 0], sizes = [1, 1, 16], strides = [1, 1, 1]} : vector<1x17x16xf32> to vector<1x1x16xf32>
    %573 = arith.mulf %572, %479 : vector<1x1x16xf32>
    %574 = arith.subf %571, %573 : vector<1x1x16xf32>
    %575 = vector.extract_strided_slice %39 {offsets = [0, 4, 0], sizes = [1, 1, 16], strides = [1, 1, 1]} : vector<1x17x16xf32> to vector<1x1x16xf32>
    %576 = arith.mulf %575, %441 : vector<1x1x16xf32>
    %577 = arith.subf %574, %576 : vector<1x1x16xf32>
    %578 = vector.extract_strided_slice %39 {offsets = [0, 5, 0], sizes = [1, 1, 16], strides = [1, 1, 1]} : vector<1x17x16xf32> to vector<1x1x16xf32>
    %579 = arith.mulf %578, %406 : vector<1x1x16xf32>
    %580 = arith.subf %577, %579 : vector<1x1x16xf32>
    %581 = vector.extract_strided_slice %39 {offsets = [0, 6, 0], sizes = [1, 1, 16], strides = [1, 1, 1]} : vector<1x17x16xf32> to vector<1x1x16xf32>
    %582 = arith.mulf %581, %374 : vector<1x1x16xf32>
    %583 = arith.subf %580, %582 : vector<1x1x16xf32>
    %584 = vector.extract_strided_slice %39 {offsets = [0, 7, 0], sizes = [1, 1, 16], strides = [1, 1, 1]} : vector<1x17x16xf32> to vector<1x1x16xf32>
    %585 = arith.mulf %584, %345 : vector<1x1x16xf32>
    %586 = arith.subf %583, %585 : vector<1x1x16xf32>
    %587 = vector.extract_strided_slice %39 {offsets = [0, 8, 0], sizes = [1, 1, 16], strides = [1, 1, 1]} : vector<1x17x16xf32> to vector<1x1x16xf32>
    %588 = arith.mulf %587, %319 : vector<1x1x16xf32>
    %589 = arith.subf %586, %588 : vector<1x1x16xf32>
    %590 = vector.extract_strided_slice %39 {offsets = [0, 9, 0], sizes = [1, 1, 16], strides = [1, 1, 1]} : vector<1x17x16xf32> to vector<1x1x16xf32>
    %591 = arith.mulf %590, %296 : vector<1x1x16xf32>
    %592 = arith.subf %589, %591 : vector<1x1x16xf32>
    %593 = vector.extract_strided_slice %39 {offsets = [0, 10, 0], sizes = [1, 1, 16], strides = [1, 1, 1]} : vector<1x17x16xf32> to vector<1x1x16xf32>
    %594 = arith.mulf %593, %276 : vector<1x1x16xf32>
    %595 = arith.subf %592, %594 : vector<1x1x16xf32>
    %596 = vector.extract_strided_slice %39 {offsets = [0, 11, 0], sizes = [1, 1, 16], strides = [1, 1, 1]} : vector<1x17x16xf32> to vector<1x1x16xf32>
    %597 = arith.mulf %596, %259 : vector<1x1x16xf32>
    %598 = arith.subf %595, %597 : vector<1x1x16xf32>
    %599 = vector.extract_strided_slice %39 {offsets = [0, 12, 0], sizes = [1, 1, 16], strides = [1, 1, 1]} : vector<1x17x16xf32> to vector<1x1x16xf32>
    %600 = arith.mulf %599, %245 : vector<1x1x16xf32>
    %601 = arith.subf %598, %600 : vector<1x1x16xf32>
    %602 = vector.extract_strided_slice %39 {offsets = [0, 13, 0], sizes = [1, 1, 16], strides = [1, 1, 1]} : vector<1x17x16xf32> to vector<1x1x16xf32>
    %603 = arith.mulf %602, %234 : vector<1x1x16xf32>
    %604 = arith.subf %601, %603 : vector<1x1x16xf32>
    %605 = vector.extract_strided_slice %39 {offsets = [0, 14, 0], sizes = [1, 1, 16], strides = [1, 1, 1]} : vector<1x17x16xf32> to vector<1x1x16xf32>
    %606 = arith.mulf %605, %226 : vector<1x1x16xf32>
    %607 = arith.subf %604, %606 : vector<1x1x16xf32>
    %608 = vector.extract_strided_slice %39 {offsets = [0, 15, 0], sizes = [1, 1, 16], strides = [1, 1, 1]} : vector<1x17x16xf32> to vector<1x1x16xf32>
    %609 = arith.mulf %608, %221 : vector<1x1x16xf32>
    %610 = arith.subf %607, %609 : vector<1x1x16xf32>
    %611 = arith.mulf %610, %42 : vector<1x1x16xf32>
    %612 = tpu.concatenate %611, %564, %520, %479, %441, %406, %374, %345, %319, %296, %276, %259, %245, %234, %226, %221 in 1 : vector<1x1x16xf32>, vector<1x1x16xf32>, vector<1x1x16xf32>, vector<1x1x16xf32>, vector<1x1x16xf32>, vector<1x1x16xf32>, vector<1x1x16xf32>, vector<1x1x16xf32>, vector<1x1x16xf32>, vector<1x1x16xf32>, vector<1x1x16xf32>, vector<1x1x16xf32>, vector<1x1x16xf32>, vector<1x1x16xf32>, vector<1x1x16xf32>, vector<1x1x16xf32> -> vector<1x16x16xf32>
    %c0_36 = arith.constant 0 : index
    %c0_37 = arith.constant 0 : index
    %c0_38 = arith.constant 0 : index
    %613 = vector.load %arg7[%c0_36, %c0_37, %c0_38] : memref<1x16x16xf32, #tpu.memory_space<vmem>>, vector<1x16x16xf32>
    tpu.vector_store %arg7[%c0_36, %c0_37, %c0_38], %612 {strides = array<i32>} : memref<1x16x16xf32, #tpu.memory_space<vmem>>, vector<1x16x16xf32>,
    return
  }
  func.func @transform_0(%arg0: i32) -> (i32, i32, i32) {
    %c0_i32 = arith.constant 0 : i32
    %c0_i32_0 = arith.constant 0 : i32
    %c0_i32_1 = arith.constant 0 : i32
    return %arg0, %c0_i32, %c0_i32_0 : i32, i32, i32
  }
  func.func @transform_1(%arg0: i32) -> (i32, i32, i32) {
    %c0_i32 = arith.constant 0 : i32
    %c0_i32_0 = arith.constant 0 : i32
    %c0_i32_1 = arith.constant 0 : i32
    return %arg0, %c0_i32, %c0_i32_0 : i32, i32, i32
  }
  func.func @transform_2(%arg0: i32) -> (i32, i32, i32) {
    %c0_i32 = arith.constant 0 : i32
    %c0_i32_0 = arith.constant 0 : i32
    %c0_i32_1 = arith.constant 0 : i32
    return %arg0, %c0_i32, %c0_i32_0 : i32, i32, i32
  }
  func.func @transform_3(%arg0: i32) -> (i32, i32, i32) {
    %c0_i32 = arith.constant 0 : i32
    %c0_i32_0 = arith.constant 0 : i32
    %c0_i32_1 = arith.constant 0 : i32
    return %arg0, %c0_i32, %c0_i32_0 : i32, i32, i32
  }
  func.func @transform_4(%arg0: i32) -> (i32, i32, i32) {
    %c0_i32 = arith.constant 0 : i32
    %c0_i32_0 = arith.constant 0 : i32
    %c0_i32_1 = arith.constant 0 : i32
    return %arg0, %c0_i32, %c0_i32_0 : i32, i32, i32
  }
  func.func @transform_5(%arg0: i32) -> (i32, i32, i32) {
    %c0_i32 = arith.constant 0 : i32
    %c0_i32_0 = arith.constant 0 : i32
    %c0_i32_1 = arith.constant 0 : i32
    return %arg0, %c0_i32, %c0_i32_0 : i32, i32, i32
  }
  func.func @transform_6(%arg0: i32) -> (i32, i32, i32) {
    %c0_i32 = arith.constant 0 : i32
    %c0_i32_0 = arith.constant 0 : i32
    %c0_i32_1 = arith.constant 0 : i32
    return %arg0, %c0_i32, %c0_i32_0 : i32, i32, i32
  }
}

</mosaic_0001>

<bundles_post_ra>
// kernel: tpu_custom_call.1
= control target key start
LH: loop header
LB: loop body
LE: loop exit
PB: predicated region body
PF: predicated region fallthrough
CT: control target
= control target key end

     0   :  { %11 = vsyncpa [#allocation3], 0  ;;  %s6231_s0 = inlined_call_operand.vmem [shape: f32[2,128,32], index: 0, kind: input, shape index: {}]   ;;  %s6232_s1 = inlined_call_operand.vmem [shape: f32[2,128,32], index: 1, kind: input, shape index: {}]   ;;  %s6233_s2 = inlined_call_operand.vmem [shape: f32[2,16,1], index: 2, kind: input, shape index: {}]   ;;  %s6234_s3 = inlined_call_operand.vmem [shape: f32[2,1,16], index: 3, kind: input, shape index: {}]   ;;  %s6235_s4 = inlined_call_operand.vmem [shape: f32[2,16,128], index: 4, kind: input, shape index: {}]   ;;  %s6236_s5 = inlined_call_operand.vmem [shape: f32[2,16,128], index: 5, kind: input, shape index: {}]   ;;  %s6237_s6 = inlined_call_operand.hbm [shape: f32[2,16,16], index: 6, kind: output, shape index: {}]  }
   0x1   :  { %13 = vsyncpa [#allocation3 + $0x1], 0  ;;  %s3994_s21 = smov 0   ;;  %s3996_s22 = smov 0  }
   0x2   :  { %s3998_s23 = smov 0   ;;  %s4000_s24 = smov 0  }
   0x3 LB: > { %s4015_s25 = sadd.s32 4294967295, %s3950_s24   ;;  %s3575_s26 = sadd.s32 4294967294, %s3950_s24   ;;  %s3950_s24 = sphi %s4000_s24, %s6827_s24   ;;  %s3946_s23 = sphi %s3998_s23, %s6826_s23   ;;  %s3942_s22 = sphi %s3996_s22, %s6825_s22   ;;  %s3938_s21 = sphi %s3994_s21, %s6824_s21  }
   0x4   : > { %s4019_s27 = sadd.s32 1, %s3950_s24   ;;  %s182_s28 = sadd.s32 1, %s3946_s23 }
   0x5   : > { %s179_s29 = ssub.s32 %s3950_s24, %s4019_s27  ;;  %p192_p0 = scmp.ne.s32.totalorder %s3946_s23, %s3942_s22 }
   0x6   : > { %p180_p1 = scmp.eq.s32.totalorder %s179_s29, 0  ;;  %p193_p2 = scmp.eq.s32.totalorder %s4015_s25, 1 }
   0x7   : > { %p198_p3 = scmp.ne.s32.totalorder %s3942_s22, %s3938_s21  ;;  %p199_p4 = scmp.eq.s32.totalorder %s3575_s26, 1 }
   0x8   : > { %s4030_s30 = scalar_select %p180_p1, %s3946_s23, %s182_s28  }
   0x9   : > { %p4032_p5 = por %p193_p2, %p192_p0  ;;  %p4036_p6 = por %p199_p4, %p198_p3 }
   0xa   : > { %p3578_p7 = scmp.ge.s32.totalorder %s3950_s24, 1  ;;  %p263_p8 = scmp.lt.s32.totalorder %s3950_s24, 3 }
   0xc   : > { %p264_p9 = pnand %p3578_p7, %p263_p8 }
   0xe   : > { %267 = sbr.rel (%p264_p9) target bundleno = 1306 (0x51a), region = 44 }
  0x15   : > { %p316_p10 = scmp.lt.s32.totalorder %s4015_s25, 1  ;;  %v344_v52 = vlaneseq  ;;  %v3952_v53 = vmov 0   ;;  %v3953_v58 = vmov 0.0   ;;  %vm543_vm1 = vcmask 261120   ;;  %s3609_s19 = sshll.u32 %s4015_s25, 8 }
  0x16   : > { %3854 = vset.pattern.permute.xlu0 %v3952_v53  ;;  %3855 = vset.pattern.permute.xlu1 %v3952_v53  ;;  %vm3798_vm2 = vmpackc.low %vm543_vm1, %vm543_vm1  ;;  %vm3418_vm4 = vcmask 1040384   ;;  %vm3420_vm5 = vcmask 1041408   ;;  %vm3422_vm6 = vcmask 1042432   ;;  %vm3424_vm7 = vcmask 1043456   ;;  %s3956_s11 = smov [#allocation2]  }
  0x17   : > { %s4044_s9 = scalar_select %p316_p10, %s4015_s25, 1  ;;  %v4115_v55 = vshrl.u32 %v344_v52, 7  ;;  %v348_v56 = vand.u32 127, %v344_v52  ;;  %vm3426_vm8 = vcmask 1044480   ;;  %vm3428_vm9 = vcmask 1045504  }
  0x18   : > { %vm3430_vm10 = vcmask 1046528   ;;  %vm3439_vm11 = vcmask 130048  }
  0x19   : > { %s3604_s10 = sshll.u32 %s4044_s9, 7  ;;  %s4068_s17 = sshll.u32 %s4044_s9, 4  ;;  %vm349_vm0 = vcmp.eq.s32.totalorder %v4115_v55, %v348_v56  ;;  %v4119_v57 = vsub.s32 0, %v4115_v55 }
  0x1a   : > { %s4050_s13 = scalar_lea.vmem %s6231_s0, %s3604_s10  ;;  %s4055_s16 = scalar_lea.vmem %s6232_s1, %s3604_s10  ;;  %v3590_v59 = vsel %vm349_vm0, 1.0, %v3953_v58 }
  0x1b   : > { %v357_v0 = vld [vmem:[%s4050_s13] sm:$0xff]  ;;  %v358_v1 = vld [vmem:[%s4050_s13 + $0x8] sm:$0xff]  ;;  %v359_v2 = vld [vmem:[%s4050_s13 + $0x10] sm:$0xff]  ;;  %s4078_s20 = scalar_lea.vmem %s6235_s4, %s4068_s17  ;;  %s4086_s29 = scalar_lea.vmem %s6236_s5, %s4068_s17  ;;  %6471 = vst [vmem:[#allocation5_spill] sm:$0xff] %v4119_v57  ;;  %v355_v60 = vmul.f32 0.001, %v3590_v59 }
  0x1c   : > { %v3733_v3 = vpack.c.bf16 %v358_v1, %v357_v0  ;;  %v360_v4 = vld [vmem:[%s4050_s13 + $0x18] sm:$0xff]  ;;  %v373_v5 = vld [vmem:[%s4055_s16] sm:$0xff]  ;;  %v374_v6 = vld [vmem:[%s4055_s16 + $0x8] sm:$0xff]  ;;  %s4112_s12 = scalar_lea.vmem %s6233_s2, %s4068_s17  ;;  %s333_s15 = scalar_lea.vmem %s6234_s3, %s4044_s9 }
  0x1d   : > { %v3737_v7 = vpack.c.bf16 %v360_v4, %v359_v2  ;;  %v3765_v8 = vpack.c.bf16 %v374_v6, %v373_v5  ;;  %v361_v9 = vld [vmem:[%s4050_s13 + $0x20] sm:$0xff]  ;;  %v362_v10 = vld [vmem:[%s4050_s13 + $0x28] sm:$0xff]  ;;  %v375_v11 = vld [vmem:[%s4055_s16 + $0x10] sm:$0xff]  ;;  %v4122_v61 = vrot.slane %v355_v60, %v4119_v57  ;;  %v4126_v4 = vsub.s32 1, %v4115_v55  ;;  %s3955_s9 = smov 112  }
  0x1e   : > { %3734 = vmatprep.subr.bf16.mxu0 %v3733_v3  ;;  %v376_v12 = vld [vmem:[%s4055_s16 + $0x18] sm:$0xff]  ;;  %v377_v14 = vld [vmem:[%s4055_s16 + $0x20] sm:$0xff]  ;;  %v378_v15 = vld [vmem:[%s4055_s16 + $0x28] sm:$0xff]  ;;  %v3741_v16 = vpack.c.bf16 %v362_v10, %v361_v9 }
  0x1f   : > { %3736 = vmatpush3.bf16.msra.mxu0 %v3733_v3  ;;  %3766 = vmatprep.subr.bf16.mxu1 %v3765_v8  ;;  %v3769_v13 = vpack.c.bf16 %v376_v12, %v375_v11  ;;  %v363_v17 = vld [vmem:[%s4050_s13 + $0x30] sm:$0xff]  ;;  %v364_v18 = vld [vmem:[%s4050_s13 + $0x38] sm:$0xff]  ;;  %v3773_v19 = vpack.c.bf16 %v378_v15, %v377_v14  ;;  %v389_v23 = vld [vmem:[%s4078_s20] sm:$0xff]  ;;  %v844_v10 = vrot.slane %v355_v60, %v4126_v4  ;;  %v4147_v11 = vsub.s32 3, %v4115_v55 }
  0x20   : > { %3738 = vmatprep.subr.bf16.mxu0 %v3737_v7  ;;  %3768 = vmatpush3.bf16.msra.mxu1 %v3765_v8  ;;  %v379_v20 = vld [vmem:[%s4055_s16 + $0x30] sm:$0xff]  ;;  %v380_v21 = vld [vmem:[%s4055_s16 + $0x38] sm:$0xff]  ;;  %v3745_v22 = vpack.c.bf16 %v364_v18, %v363_v17  ;;  %v365_v24 = vld [vmem:[%s4050_s13 + $0x40] sm:$0xff]  ;;  %v4156_v14 = vsub.s32 4, %v4115_v55  ;;  %v4162_v17 = vsub.s32 5, %v4115_v55 }
  0x21   : > { %3770 = vmatprep.subr.bf16.mxu1 %v3769_v13  ;;  %v366_v25 = vld [vmem:[%s4050_s13 + $0x48] sm:$0xff]  ;;  %v3777_v26 = vpack.c.bf16 %v380_v21, %v379_v20  ;;  %3684 = vmatprep.mubr.f32.mxu0 %v389_v23  ;;  %v381_v27 = vld [vmem:[%s4055_s16 + $0x40] sm:$0xff]  ;;  %v367_v31 = vld [vmem:[%s4050_s13 + $0x50] sm:$0xff]  ;;  %6473 = vst [vmem:[#allocation7_spill] sm:$0xff] %v4147_v11 }
  0x22   : > { %v382_v28 = vld [vmem:[%s4055_s16 + $0x48] sm:$0xff]  ;;  %v391_v29 = vld [vmem:[%s4086_s29] sm:$0xff]  ;;  %v3749_v30 = vpack.c.bf16 %v366_v25, %v365_v24  ;;  %v368_v32 = vld [vmem:[%s4050_s13 + $0x58] sm:$0xff]  ;;  %6474 = vst [vmem:[#allocation8_spill] sm:$0xff] %v4156_v14  ;;  %v877_v20 = vrot.slane %v355_v60, %v4156_v14  ;;  %v888_v23 = vrot.slane %v355_v60, %v4162_v17 }
  0x23   : > { %3740 = vmatpush3.bf16.msra.mxu0 %v3737_v7  ;;  %3719 = vmatprep.mubr.f32.mxu1 %v391_v29  ;;  %v3781_v33 = vpack.c.bf16 %v382_v28, %v381_v27  ;;  %v383_v34 = vld [vmem:[%s4055_s16 + $0x50] sm:$0xff]  ;;  %v384_v35 = vld [vmem:[%s4055_s16 + $0x58] sm:$0xff]  ;;  %v3753_v36 = vpack.c.bf16 %v368_v32, %v367_v31  ;;  %v369_v37 = vld [vmem:[%s4050_s13 + $0x60] sm:$0xff]  ;;  %v4133_v7 = vsub.s32 2, %v4115_v55  ;;  %6475 = vst [vmem:[#allocation9_spill] sm:$0xff] %v4162_v17 }
  0x24   : > { %3742 = vmatprep.subr.bf16.mxu0 %v3741_v16  ;;  %3772 = vmatpush3.bf16.msra.mxu1 %v3769_v13  ;;  %v370_v38 = vld [vmem:[%s4050_s13 + $0x68] sm:$0xff]  ;;  %v3785_v39 = vpack.c.bf16 %v384_v35, %v383_v34  ;;  %v385_v40 = vld [vmem:[%s4055_s16 + $0x60] sm:$0xff]  ;;  %v371_v43 = vld [vmem:[%s4050_s13 + $0x70] sm:$0xff] }
  0x25   : > { %3774 = vmatprep.subr.bf16.mxu1 %v3773_v19  ;;  %v386_v41 = vld [vmem:[%s4055_s16 + $0x68] sm:$0xff]  ;;  %v3757_v42 = vpack.c.bf16 %v370_v38, %v369_v37  ;;  %v372_v44 = vld [vmem:[%s4050_s13 + $0x78] sm:$0xff]  ;;  %v387_v46 = vld [vmem:[%s4055_s16 + $0x70] sm:$0xff]  ;;  %6472 = vst [vmem:[#allocation6_spill] sm:$0xff] %v4133_v7  ;;  %v855_v13 = vrot.slane %v355_v60, %v4133_v7 }
  0x26   : > { %v3789_v45 = vpack.c.bf16 %v386_v41, %v385_v40  ;;  %v388_v47 = vld [vmem:[%s4055_s16 + $0x78] sm:$0xff]  ;;  %v3761_v48 = vpack.c.bf16 %v372_v44, %v371_v43  ;;  %v390_v50 = vld [vmem:[%s4078_s20 + $0x8] sm:$0xff]  ;;  %v631_v54 = vld [vmem:[%s4112_s12] sm:$0xff]  ;;  %s313_s16 = sand.u32 1, %s3942_s22  }
  0x27   : > { %3744 = vmatpush3.bf16.msra.mxu0 %v3741_v16  ;;  %v3793_v49 = vpack.c.bf16 %v388_v47, %v387_v46  ;;  %v392_v51 = vld [vmem:[%s4086_s29 + $0x8] sm:$0xff]  ;;  %636 = vperm.xlu0 %3854, %v631_v54   ;;  %v866_v16 = vrot.slane %v355_v60, %v4147_v11  ;;  %v4209_v44 = vld [vmem:[%s333_s15] ss:$0 sm:$0xff]  ;;  %v3954_v46 = vmov 1966171168   ;;  %s3579_s17 = sshll.u32 %s313_s16, 4  ;;  %s6178_s29 = scalar_lea.hbm %s6237_s6, %s3609_s19 }
  0x28   : > { %3746 = vmatprep.subr.bf16.mxu0 %v3745_v22  ;;  %3776 = vmatpush3.bf16.msra.mxu1 %v3773_v19  ;;  %v346_v19 = vadd.s32 8, %v4115_v55  ;;  %v632_v31 = vld [vmem:[%s4112_s12 + $0x8] sm:$0xff]  ;;  %v1010_v47 = vunpack.c.l.s4 %v3954_v46  ;;  %s6062_s18 = scalar_lea.vmem [#allocation2], %s3579_s17  ;;  %s6190_s25 = scalar_lea.sflag [#allocation3], %s313_s16 }
  0x29   : > { %3778 = vmatprep.subr.bf16.mxu1 %v3777_v26  ;;  %s3456_s20 = sshll.u32 %s6062_s18, 4  ;;  %s3892_s12 = sshll.u32 %s3956_s11, 4  ;;  %s6180_s20 = int_to_ptr.vmem [resolvable:$true] %s3456_s20  ;;  %s3893_s12 = int_to_ptr.vmem [resolvable:$false] %s3892_s12 }
  0x2a   : > { %vm350_vm3 = vcmp.eq.s32.totalorder %v346_v19, %v348_v56  ;;  %s3888_s10 = scalar_lea.vmem %s6180_s20, 256  ;;  %s3894_s13 = scalar_lea.vmem %s3893_s12, 512 }
  0x2b   : > { %3748 = vmatpush3.bf16.msra.mxu0 %v3745_v22  ;;  %835 = vbcast.lane.b32.xlu0 %v4122_v61, 256  ;;  %v4171_v22 = vsub.s32 6, %v4115_v55  ;;  %v3591_v24 = vsel %vm350_vm3, 1.0, %v3953_v58  ;;  %p3889_p11 = scmp.ne.s32.totalorder %s6180_s20, %s3888_s10  ;;  %p3895_p0 = scmp.lt.s32.totalorder %s6180_s20, %s3893_s12 }
  0x2c   : > { %3750 = vmatprep.subr.bf16.mxu0 %v3749_v30  ;;  %3780 = vmatpush3.bf16.msra.mxu1 %v3777_v26  ;;  %v4177_v26 = vsub.s32 7, %v4115_v55  ;;  %v356_v29 = vmul.f32 0.001, %v3591_v24  ;;  %p3896_p1 = scmp.lt.s32.totalorder %s3894_s13, %s3888_s10 }
  0x2d   : > { %3782 = vmatprep.subr.bf16.mxu1 %v3781_v33  ;;  %6476 = vst [vmem:[#allocation10_spill] sm:$0xff] %v4171_v22  ;;  %v899_v28 = vrot.slane %v355_v60, %v4171_v22  ;;  %p3890_p12 = pnand %p3889_p11, %p4032_p5 }
  0x2e   : > { %6477 = vst [vmem:[#allocation11_spill] sm:$0xff] %v4177_v26  ;;  %v910_v27 = vrot.slane %v355_v60, %v4177_v26  ;;  %v932_v32 = vrot.slane %v356_v29, %v4126_v4  ;;  %v943_v34 = vrot.slane %v356_v29, %v4133_v7  ;;  %v965_v40 = vrot.slane %v356_v29, %v4156_v14  ;;  %p3897_p2 = por %p3896_p1, %p3895_p0 }
  0x2f   : > { %3752 = vmatpush3.bf16.msra.mxu0 %v3749_v30  ;;  %v921_v30 = vrot.slane %v356_v29, %v4119_v57  ;;  %v987_v43 = vrot.slane %v356_v29, %v4171_v22  ;;  %v998_v52 = vrot.slane %v356_v29, %v4177_v26  ;;  %p3891_p13 = pneg %p3890_p12 }
  0x30   : > { %3754 = vmatprep.subr.bf16.mxu0 %v3753_v36  ;;  %3784 = vmatpush3.bf16.msra.mxu1 %v3781_v33 }
  0x31   : > { %3786 = vmatprep.subr.bf16.mxu1 %v3785_v39  ;;  %p3898_p3 = pnand %p3897_p2, %p3891_p13 }
  0x33   : > { %3756 = vmatpush3.bf16.msra.mxu0 %v3753_v36 }
  0x34   : > { %3758 = vmatprep.subr.bf16.mxu0 %v3757_v42  ;;  %3788 = vmatpush3.bf16.msra.mxu1 %v3785_v39  ;;  %v954_v39 = vrot.slane %v356_v29, %v4147_v11 }
  0x35   : > { %3790 = vmatprep.subr.bf16.mxu1 %v3789_v45 }
  0x37   : > { %3760 = vmatpush3.bf16.msra.mxu0 %v3757_v42  ;;  %v976_v42 = vrot.slane %v356_v29, %v4162_v17 }
  0x38   : > { %3762 = vmatprep.subr.bf16.mxu0 %v3761_v48  ;;  %3792 = vmatpush3.bf16.msra.mxu1 %v3789_v45 }
  0x39   : > { %3794 = vmatprep.subr.bf16.mxu1 %v3793_v49 }
  0x3b   : > { %3764 = vmatpush3.bf16.msra.mxu0 %v3761_v48 }
  0x3c   : > { %3796 = vmatpush3.bf16.msra.mxu1 %v3793_v49 }
  0x3e   : > { %3685 = vmatmul.mubr.f32.vlgmr.msra.gmra.mrb[0].mxu0 %v390_v50  ;;  %v1011_v50 = vunpack.c.0.s8 %v1010_v47 }
  0x3f   : > { %3720 = vmatmul.mubr.f32.vlgmr.msra.gmra.mrb[0].mxu1 %v392_v51 }
  0x40   : > { %v4216_v53 = vsub.s32 %v1011_v50, %v4115_v55 }
  0xa6   : > { %v637_v45 = vpop.permute.xlu0 %636 }
  0xa7   : > { %v650_v49 = vsub.f32 %v637_v45, %v4209_v44 }
  0xa9   : > { %v652_v51 = vmul.f32 %v650_v49, %v650_v49 }
  0xaa   : > { %v836_v55 = vpop.permute.xlu0 %835 }
  0xab   : > { %v1015_v56 = vrot.slane %v652_v51, %v4216_v53 }
  0xad   : > { %v1031_v58 = vrot.slane %v1015_v56, %v4216_v53 }
  0xaf   : > { %v4225_v60 = vrot.slane %v1031_v58, %v4119_v57 }
 0x111   : > { %v3686_v62 = vpop.f32.mrb[0].mxu0 }
 0x112   : > { %v459_v63 = vpop.f32.mrb[1].mxu0  ;;  %v3721_v0 = vpop.f32.mrb[0].mxu1 }
 0x113   : > { %v3797_v1 = vpack.c.bf16 %v3686_v62, %v459_v63  ;;  %3730 = vmatprep.mubr.msk.f32.mxu0 %vm543_vm1, %v459_v63  ;;  %v534_v2 = vpop.f32.mrb[1].mxu1 }
 0x114   : > { %v3803_v3 = vpack.c.bf16 %v3721_v0, %v534_v2  ;;  %v1008_v2 = vcombine.high %v652_v51, %v652_v51 }
 0x115   : > { %3799 = vmatprep.subr.msk.bf16.mxu0 %vm3798_vm2, %v3797_v1 }
 0x116   : > { %3802 = vmatpush3.bf16.xpose.msk.msra.mxu0 %vm3798_vm2, %v3797_v1 }
 0x117   : > { %3805 = vmatprep.subr.msk.bf16.mxu0 %vm3798_vm2, %v3803_v3 }
 0x11e   : > { %3808 = vmatpush3.bf16.xpose.msk.msra.mxu0 %vm3798_vm2, %v3803_v3 }
 0x125   : > { %3731 = vmatmul.mubr.msk.f32.vlgmr.msra.gmra.mrb[2].mxu0 %vm543_vm1, %v3686_v62  ;;  %v1023_v62 = vcombine.high %v1015_v56, %v1015_v56 }
 0x1f8   : > { %v4128_v5 = vpop.f32.mrb[2].mxu0 }
 0x1f9   : > { %v4130_v6 = vpop.f32.mrb[3].mxu0  ;;  %v745_v35 = vrot.slane %v4128_v5, %v4119_v57  ;;  %v756_v36 = vrot.slane %v4128_v5, %v4126_v4  ;;  %v778_v37 = vrot.slane %v4128_v5, %v4147_v11  ;;  %v767_v38 = vrot.slane %v4128_v5, %v4133_v7 }
 0x1fa   : > { %v4137_v8 = vrot.slane %v4130_v6, %v4126_v4  ;;  %v4141_v9 = vrot.slane %v4130_v6, %v4119_v57  ;;  %v4151_v12 = vrot.slane %v4130_v6, %v4133_v7  ;;  %v690_v15 = vrot.slane %v4130_v6, %v4147_v11 }
 0x1fb   : > { %v701_v18 = vrot.slane %v4130_v6, %v4156_v14  ;;  %v712_v21 = vrot.slane %v4130_v6, %v4162_v17  ;;  %v723_v25 = vrot.slane %v4130_v6, %v4171_v22  ;;  %v734_v33 = vrot.slane %v4130_v6, %v4177_v26 }
 0x1fc   : > { %670 = vbcast.lane.b32.xlu0 %v4137_v8, 256  ;;  %659 = vbcast.lane.b32.xlu1 %v4141_v9, 256  ;;  %v789_v41 = vrot.slane %v4128_v5, %v4156_v14  ;;  %v800_v48 = vrot.slane %v4128_v5, %v4162_v17  ;;  %v811_v54 = vrot.slane %v4128_v5, %v4171_v22 }
 0x1fd   : > { %v822_v59 = vrot.slane %v4128_v5, %v4177_v26  ;;  %v1259_v1 = vrot.slane %v4130_v6, %v4216_v53 }
 0x200   : > { %681 = vbcast.lane.b32.xlu0 %v4151_v12, 256  ;;  %846 = vbcast.lane.b32.xlu1 %v844_v10, 256 }
 0x204   : > { %692 = vbcast.lane.b32.xlu0 %v690_v15, 256  ;;  %857 = vbcast.lane.b32.xlu1 %v855_v13, 256 }
 0x208   : > { %703 = vbcast.lane.b32.xlu0 %v701_v18, 256  ;;  %868 = vbcast.lane.b32.xlu1 %v866_v16, 256 }
 0x20c   : > { %714 = vbcast.lane.b32.xlu0 %v712_v21, 256  ;;  %879 = vbcast.lane.b32.xlu1 %v877_v20, 256 }
 0x210   : > { %725 = vbcast.lane.b32.xlu0 %v723_v25, 256  ;;  %890 = vbcast.lane.b32.xlu1 %v888_v23, 256 }
 0x214   : > { %912 = vbcast.lane.b32.xlu0 %v910_v27, 256  ;;  %901 = vbcast.lane.b32.xlu1 %v899_v28, 256 }
 0x218   : > { %923 = vbcast.lane.b32.xlu0 %v921_v30, 256  ;;  %641 = vperm.xlu1 %3855, %v632_v31  }
 0x21c   : > { %934 = vbcast.lane.b32.xlu0 %v932_v32, 256  ;;  %736 = vbcast.lane.b32.xlu1 %v734_v33, 256 }
 0x220   : > { %945 = vbcast.lane.b32.xlu0 %v943_v34, 256  ;;  %747 = vbcast.lane.b32.xlu1 %v745_v35, 256 }
 0x224   : > { %839 = vbcast.lane.b32.xlu0 %v4122_v61, 264  ;;  %758 = vbcast.lane.b32.xlu1 %v756_v36, 256  ;;  %v1186_v61 = vmul.f32 %v4225_v60, %v836_v55 }
 0x228   : > { %780 = vbcast.lane.b32.xlu0 %v778_v37, 256  ;;  %769 = vbcast.lane.b32.xlu1 %v767_v38, 256 }
 0x22c   : > { %861 = vbcast.lane.b32.xlu0 %v855_v13, 264  ;;  %956 = vbcast.lane.b32.xlu1 %v954_v39, 256  ;;  %v1275_v13 = vrot.slane %v1259_v1, %v4216_v53 }
 0x230   : > { %872 = vbcast.lane.b32.xlu0 %v866_v16, 264  ;;  %850 = vbcast.lane.b32.xlu1 %v844_v10, 264  ;;  %v1053_v16 = vcombine.high %v1031_v58, %v1031_v58 }
 0x234   : > { %883 = vbcast.lane.b32.xlu0 %v877_v20, 264  ;;  %967 = vbcast.lane.b32.xlu1 %v965_v40, 256  ;;  %v1267_v20 = vcombine.high %v1259_v1, %v1259_v1 }
 0x238   : > { %894 = vbcast.lane.b32.xlu0 %v888_v23, 264  ;;  %791 = vbcast.lane.b32.xlu1 %v789_v41, 256 }
 0x23c   : > { %663 = vbcast.lane.b32.xlu0 %v4141_v9, 264  ;;  %674 = vbcast.lane.b32.xlu1 %v4137_v8, 264  ;;  %v1045_v8 = vrot.slane %v1023_v62, %v4216_v53  ;;  %v1252_v9 = vcombine.high %v4130_v6, %v4130_v6  ;;  %v1353_v6 = vrot.slane %v1275_v13, %v4119_v57 }
 0x23e   : > { %v1266_v19 = vrot.slane %v1252_v9, %v4216_v53  ;;  %v1055_v29 = vcombine.high %v1045_v8, %v1045_v8 }
 0x240   : > { %905 = vbcast.lane.b32.xlu0 %v899_v28, 264  ;;  %685 = vbcast.lane.b32.xlu1 %v4151_v12, 264  ;;  %v1282_v31 = vrot.slane %v1266_v19, %v4216_v53  ;;  %v1268_v47 = vcombine.high %v1266_v19, %v1266_v19 }
 0x242   : > { %v1369_v45 = vrot.slane %v1282_v31, %v4119_v57  ;;  %v1296_v1 = vrot.slane %v1268_v47, %v4216_v53 }
 0x244   : > { %916 = vbcast.lane.b32.xlu0 %v910_v27, 264  ;;  %696 = vbcast.lane.b32.xlu1 %v690_v15, 264  ;;  %v1022_v15 = vrot.slane %v1008_v2, %v4216_v53  ;;  %v4245_v27 = vrot.slane %v1053_v16, %v4119_v57 }
 0x246   : > { %v1024_v28 = vcombine.high %v1022_v15, %v1022_v15 }
 0x248   : > { %729 = vbcast.lane.b32.xlu0 %v723_v25, 264  ;;  %707 = vbcast.lane.b32.xlu1 %v701_v18, 264  ;;  %v4239_v18 = vrot.slane %v1045_v8, %v4119_v57  ;;  %v1297_v25 = vcombine.high %v1275_v13, %v1275_v13 }
 0x24c   : > { %927 = vbcast.lane.b32.xlu0 %v921_v30, 264  ;;  %718 = vbcast.lane.b32.xlu1 %v712_v21, 264 }
 0x250   : > { %978 = vbcast.lane.b32.xlu0 %v976_v42, 256  ;;  %740 = vbcast.lane.b32.xlu1 %v734_v33, 264 }
 0x254   : > { %938 = vbcast.lane.b32.xlu0 %v932_v32, 264  ;;  %751 = vbcast.lane.b32.xlu1 %v745_v35, 264  ;;  %v1289_v32 = vrot.slane %v1267_v20, %v4216_v53 }
 0x256   : > { %v1357_v46 = vrot.slane %v1289_v32, %v4119_v57 }
 0x258   : > { %989 = vbcast.lane.b32.xlu0 %v987_v43, 256  ;;  %802 = vbcast.lane.b32.xlu1 %v800_v48, 256 }
 0x25c   : > { %949 = vbcast.lane.b32.xlu0 %v943_v34, 264  ;;  %762 = vbcast.lane.b32.xlu1 %v756_v36, 264  ;;  %v1361_v36 = vrot.slane %v1297_v25, %v4119_v57 }
 0x260   : > { %1000 = vbcast.lane.b32.xlu0 %v998_v52, 256  ;;  %813 = vbcast.lane.b32.xlu1 %v811_v54, 256 }
 0x264   : > { %960 = vbcast.lane.b32.xlu0 %v954_v39, 264  ;;  %773 = vbcast.lane.b32.xlu1 %v767_v38, 264  ;;  %v1038_v38 = vrot.slane %v1022_v15, %v4216_v53  ;;  %v4256_v39 = vrot.slane %v1024_v28, %v4216_v53 }
 0x266   : > { %v4272_v56 = vrot.slane %v1038_v38, %v4119_v57  ;;  %v1054_v58 = vcombine.high %v1038_v38, %v1038_v38  ;;  %v4280_v55 = vrot.slane %v4256_v39, %v4119_v57 }
 0x268   : > { %971 = vbcast.lane.b32.xlu0 %v965_v40, 264  ;;  %824 = vbcast.lane.b32.xlu1 %v822_v59, 256 }
 0x26c   : > { %982 = vbcast.lane.b32.xlu0 %v976_v42, 264  ;;  %784 = vbcast.lane.b32.xlu1 %v778_v37, 264  ;;  %v1308_v42 = vrot.slane %v4128_v5, %v4216_v53 }
 0x26e   : > { %v671_v63 = vpop.permute.xlu0 %670  ;;  %v660_v0 = vpop.permute.xlu1 %659  ;;  %v1316_v19 = vcombine.high %v1308_v42, %v1308_v42 }
 0x26f   : > { %v4230_v3 = vadd.f32 %v1186_v61, %v660_v0  ;;  %v1301_v61 = vcombine.high %v4128_v5, %v4128_v5  ;;  %v1324_v0 = vrot.slane %v1308_v42, %v4216_v53  ;;  %v4297_v5 = vrot.slane %v1054_v58, %v4119_v57 }
 0x270   : > { %993 = vbcast.lane.b32.xlu0 %v987_v43, 264  ;;  %795 = vbcast.lane.b32.xlu1 %v789_v41, 264  ;;  %v4260_v41 = vrot.slane %v1055_v29, %v4119_v57  ;;  %v1373_v29 = vrot.slane %v1296_v1, %v4119_v57  ;;  %v1338_v47 = vrot.slane %v1316_v19, %v4216_v53 }
 0x271   : > { %6478 = vst [vmem:[#allocation12_spill] sm:$0xff] %v4230_v3  ;;  %3856 = vrcp.f32 %v4230_v3  ;;  %v1315_v16 = vrot.slane %v1301_v61, %v4216_v53 }
 0x272   : > { %v682_v10 = vpop.permute.xlu0 %681  ;;  %v847_v12 = vpop.permute.xlu1 %846 }
 0x273   : > { %v1188_v21 = vmul.f32 %v4239_v18, %v847_v12 }
 0x274   : > { %1004 = vbcast.lane.b32.xlu0 %v998_v52, 264  ;;  %806 = vbcast.lane.b32.xlu1 %v800_v48, 264  ;;  %v1298_v52 = vcombine.high %v1282_v31, %v1282_v31  ;;  %v1300_v31 = vcombine.high %v1296_v1, %v1296_v1  ;;  %v1389_v1 = vrot.slane %v1338_v47, %v4119_v57 }
 0x275   : > { %v1220_v33 = vadd.f32 %v1188_v21, %v671_v63 }
 0x276   : > { %v693_v23 = vpop.permute.xlu0 %692  ;;  %v858_v24 = vpop.permute.xlu1 %857  ;;  %v1377_v12 = vrot.slane %v1298_v52, %v4119_v57 }
 0x277   : > { %v1190_v30 = vmul.f32 %v4245_v27, %v858_v24  ;;  %v1385_v24 = vrot.slane %v1324_v0, %v4119_v57 }
 0x278   : > { %1414 = vrot.lane.b32.xlu0 %v1353_v6, %s3955_s9  ;;  %817 = vbcast.lane.b32.xlu1 %v811_v54, 264  ;;  %v1299_v54 = vcombine.high %v1289_v32, %v1289_v32 }
 0x279   : > { %v1222_v43 = vadd.f32 %v1190_v30, %v682_v10  ;;  %v1346_v30 = vcombine.high %v1324_v0, %v1324_v0 }
 0x27a   : > { %v704_v34 = vpop.permute.xlu0 %703  ;;  %v869_v35 = vpop.permute.xlu1 %868  ;;  %v1365_v13 = vrot.slane %v1299_v54, %v4119_v57 }
 0x27b   : > { %v4252_v37 = vpop.eup %3856  ;;  %v1192_v49 = vmul.f32 %v4260_v41, %v869_v35 }
 0x27c   : > { %6479 = vst [vmem:[#allocation13_spill] sm:$0xff] %v4252_v37  ;;  %v1464_v40 = vmul.f32 %v4252_v37, %v1220_v33  ;;  %1418 = vrot.lane.b32.xlu0 %v1361_v36, %s3955_s9  ;;  %828 = vbcast.lane.b32.xlu1 %v822_v59, 264  ;;  %v1465_v62 = vmul.f32 %v4252_v37, %v1222_v43 }
 0x27d   : > { %v1224_v8 = vadd.f32 %v1192_v49, %v693_v23 }
 0x27e   : > { %v4268_v48 = vrot.slane %v1464_v40, %v4119_v57  ;;  %v715_v50 = vpop.permute.xlu0 %714  ;;  %v880_v51 = vpop.permute.xlu1 %879  ;;  %v4301_v20 = vrot.slane %v1465_v62, %v4119_v57 }
 0x27f   : > { %v1194_v63 = vmul.f32 %v4272_v56, %v880_v51  ;;  %v1466_v6 = vmul.f32 %v4252_v37, %v1224_v8 }
 0x280   : > { %6480 = vst [vmem:[#allocation14_spill] sm:$0xff] %v4268_v48  ;;  %v1539_v59 = vmul.f32 %v4268_v48, %v4230_v3  ;;  %1422 = vrot.lane.b32.xlu0 %v1369_v45, %s3955_s9  ;;  %1416 = vrot.lane.b32.xlu1 %v1357_v46, %s3955_s9  ;;  %6482 = vst [vmem:[#allocation16_spill] sm:$0xff] %v4301_v20  ;;  %v1542_v35 = vmul.f32 %v4301_v20, %v4230_v3 }
 0x281   : > { %v1226_v21 = vadd.f32 %v1194_v63, %v704_v34  ;;  %v1331_v34 = vrot.slane %v1315_v16, %v4216_v53  ;;  %v4317_v40 = vrot.slane %v1466_v6, %v4119_v57  ;;  %v1393_v45 = vrot.slane %v1346_v30, %v4119_v57 }
 0x282   : > { %v4288_v2 = vsub.f32 %v1220_v33, %v1539_v59  ;;  %v726_v9 = vpop.permute.xlu0 %725  ;;  %v891_v10 = vpop.permute.xlu1 %890  ;;  %v1381_v46 = vrot.slane %v1300_v31, %v4119_v57  ;;  %v1587_v52 = vsub.f32 %v1222_v43, %v1542_v35  ;;  %v1317_v59 = vcombine.high %v1315_v16, %v1315_v16 }
 0x283   : > { %v1196_v15 = vmul.f32 %v4280_v55, %v891_v10  ;;  %v1467_v36 = vmul.f32 %v4252_v37, %v1226_v21  ;;  %6483 = vst [vmem:[#allocation17_spill] sm:$0xff] %v4317_v40  ;;  %v1401_v51 = vrot.slane %v1331_v34, %v4119_v57  ;;  %v1347_v58 = vcombine.high %v1331_v34, %v1331_v34 }
 0x284   : > { %6481 = vst [vmem:[#allocation15_spill] sm:$0xff] %v4288_v2  ;;  %3858 = vrcp.f32 %v4288_v2  ;;  %1426 = vrot.lane.b32.xlu0 %v1377_v12, %s3955_s9  ;;  %1420 = vrot.lane.b32.xlu1 %v1365_v13, %s3955_s9  ;;  %v1545_v62 = vmul.f32 %v4317_v40, %v4230_v3 }
 0x285   : > { %v1228_v23 = vadd.f32 %v1196_v15, %v715_v50  ;;  %v4332_v54 = vrot.slane %v1467_v36, %v4119_v57  ;;  %v1409_v15 = vrot.slane %v1347_v58, %v4119_v57 }
 0x286   : > { %v4305_v25 = vpop.permute.xlu0 %912  ;;  %v902_v28 = vpop.permute.xlu1 %901  ;;  %v1590_v16 = vsub.f32 %v1224_v8, %v1545_v62 }
 0x287   : > { %v1468_v32 = vmul.f32 %v4252_v37, %v1228_v23  ;;  %v1198_v33 = vmul.f32 %v4297_v5, %v902_v28  ;;  %6485 = vst [vmem:[#allocation19_spill] sm:$0xff] %v4332_v54  ;;  %v1548_v13 = vmul.f32 %v4332_v54, %v4230_v3  ;;  %v1345_v28 = vrot.slane %v1317_v59, %v4216_v53 }
 0x288   : > { %1430 = vrot.lane.b32.xlu0 %v1385_v24, %s3955_s9  ;;  %1424 = vrot.lane.b32.xlu1 %v1373_v29, %s3955_s9 }
 0x289   : > { %v1230_v38 = vadd.f32 %v1198_v33, %v726_v9  ;;  %v4325_v49 = vrot.slane %v1468_v32, %v4119_v57  ;;  %v1348_v9 = vcombine.high %v1338_v47, %v1338_v47  ;;  %v1056_v32 = vcombine.high %v4256_v39, %v4256_v39 }
 0x28a   : > { %v4319_v42 = vpop.permute.xlu0 %923  ;;  %v1593_v33 = vsub.f32 %v1226_v21, %v1548_v13  ;;  %v1405_v36 = vrot.slane %v1345_v28, %v4119_v57 }
 0x28b   : > { %6484 = vst [vmem:[#allocation18_spill] sm:$0xff] %v4325_v49  ;;  %v1469_v50 = vmul.f32 %v4252_v37, %v1230_v38  ;;  %v1551_v10 = vmul.f32 %v4325_v49, %v4230_v3  ;;  %v1397_v6 = vrot.slane %v1348_v9, %v4119_v57 }
 0x28c   : > { %1434 = vrot.lane.b32.xlu0 %v1393_v45, %s3955_s9  ;;  %1428 = vrot.lane.b32.xlu1 %v1381_v46, %s3955_s9  ;;  %v1349_v45 = vcombine.high %v1345_v28, %v1345_v28 }
 0x28d   : > { %v4339_v63 = vrot.slane %v1469_v50, %v4119_v57  ;;  %v1596_v30 = vsub.f32 %v1228_v23, %v1551_v10  ;;  %v4380_v50 = vrot.slane %v1056_v32, %v4119_v57 }
 0x28e   : > { %v4334_v61 = vpop.eup %3858  ;;  %v4341_v0 = vpop.permute.xlu0 %934  ;;  %v1413_v59 = vrot.slane %v1349_v45, %v4119_v57 }
 0x28f   : > { %6486 = vst [vmem:[#allocation20_spill] sm:$0xff] %v4334_v61  ;;  %6487 = vst [vmem:[#allocation21_spill] sm:$0xff] %v4339_v63  ;;  %v1631_v43 = vmul.f32 %v4334_v61, %v1587_v52  ;;  %v1554_v19 = vmul.f32 %v4339_v63, %v4230_v3  ;;  %v1632_v31 = vmul.f32 %v4334_v61, %v1590_v16 }
 0x290   : > { %1438 = vrot.lane.b32.xlu0 %v1401_v51, %s3955_s9  ;;  %1432 = vrot.lane.b32.xlu1 %v1389_v1, %s3955_s9  ;;  %v1633_v23 = vmul.f32 %v4334_v61, %v1593_v33  ;;  %v1634_v46 = vmul.f32 %v4334_v61, %v1596_v30 }
 0x291   : > { %v4350_v12 = vrot.slane %v1631_v43, %v4126_v4  ;;  %v1599_v34 = vsub.f32 %v1230_v38, %v1554_v19  ;;  %v4377_v47 = vrot.slane %v1632_v31, %v4126_v4  ;;  %v1200_v38 = vmul.f32 %v4380_v50, %v4305_v25 }
 0x292   : > { %v4357_v24 = vpop.permute.xlu0 %945  ;;  %v4391_v62 = vrot.slane %v1633_v23, %v4126_v4  ;;  %v4394_v1 = vrot.slane %v1634_v46, %v4126_v4 }
 0x293   : > { %6488 = vst [vmem:[#allocation22_spill] sm:$0xff] %v4350_v12  ;;  %v1701_v29 = vmul.f32 %v4350_v12, %v4288_v2  ;;  %6490 = vst [vmem:[#allocation24_spill] sm:$0xff] %v4377_v47  ;;  %v1635_v51 = vmul.f32 %v4334_v61, %v1599_v34 }
 0x294   : > { %1442 = vrot.lane.b32.xlu0 %v1409_v15, %s3955_s9  ;;  %1436 = vrot.lane.b32.xlu1 %v1397_v6, %s3955_s9  ;;  %6491 = vst [vmem:[#allocation25_spill] sm:$0xff] %v4391_v62  ;;  %6492 = vst [vmem:[#allocation26_spill] sm:$0xff] %v4394_v1  ;;  %v1707_v28 = vmul.f32 %v4391_v62, %v4288_v2 }
 0x295   : > { %v4368_v8 = vsub.f32 %v1587_v52, %v1701_v29  ;;  %v4401_v10 = vrot.slane %v1635_v51, %v4126_v4  ;;  %v1710_v29 = vmul.f32 %v4394_v1, %v4288_v2 }
 0x296   : > { %v4370_v35 = vpop.permute.xlu0 %839 }
 0x297   : > { %6489 = vst [vmem:[#allocation23_spill] sm:$0xff] %v4368_v8  ;;  %3860 = vrcp.f32 %v4368_v8  ;;  %v642_v39 = vpop.permute.xlu1 %641  ;;  %6493 = vst [vmem:[#allocation27_spill] sm:$0xff] %v4401_v10 }
 0x298   : > { %v651_v21 = vsub.f32 %v642_v39, %v4209_v44  ;;  %1440 = vrot.lane.b32.xlu1 %v1405_v36, %s3955_s9  ;;  %v1704_v44 = vmul.f32 %v4377_v47, %v4288_v2 }
 0x29a   : > { %v653_v52 = vmul.f32 %v651_v21, %v651_v21  ;;  %v4387_v58 = vpop.permute.xlu0 %780  ;;  %v1746_v32 = vsub.f32 %v1590_v16, %v1704_v44 }
 0x29b   : > { %v737_v9 = vpop.permute.xlu1 %736 }
 0x29c   : > { %v1064_v43 = vrot.slane %v653_v52, %v4216_v53  ;;  %v1232_v25 = vadd.f32 %v1200_v38, %v737_v9  ;;  %1444 = vrot.lane.b32.xlu1 %v1413_v59, %s3955_s9  ;;  %v1713_v38 = vmul.f32 %v4401_v10, %v4288_v2 }
 0x29e   : > { %v1072_v13 = vcombine.high %v1064_v43, %v1064_v43  ;;  %v1080_v15 = vrot.slane %v1064_v43, %v4216_v53  ;;  %v1470_v19 = vmul.f32 %v4252_v37, %v1232_v25  ;;  %v862_v6 = vpop.permute.xlu0 %861 }
 0x29f   : > { %v748_v31 = vpop.permute.xlu1 %747 }
 0x2a0   : > { %v4410_v36 = vrot.slane %v1470_v19, %v4119_v57  ;;  %v4413_v45 = vrot.slane %v1080_v15, %v4119_v57  ;;  %v1094_v23 = vrot.slane %v1072_v13, %v4216_v53  ;;  %v1102_v39 = vcombine.high %v1080_v15, %v1080_v15 }
 0x2a1   : > { %v4416_v46 = vpop.eup %3860  ;;  %v1749_v13 = vsub.f32 %v1593_v33, %v1707_v28  ;;  %v4433_v15 = vsub.f32 %v1596_v30, %v1710_v29  ;;  %v1057_v19 = vcombine.high %v653_v52, %v653_v52  ;;  %v1755_v33 = vsub.f32 %v1599_v34, %v1713_v38 }
 0x2a2   : > { %6494 = vst [vmem:[#allocation28_spill] sm:$0xff] %v4410_v36  ;;  %6495 = vst [vmem:[#allocation29_spill] sm:$0xff] %v4416_v46  ;;  %v1787_v21 = vmul.f32 %v4416_v46, %v1746_v32  ;;  %v4421_v51 = vpop.permute.xlu0 %872  ;;  %v1557_v16 = vmul.f32 %v4410_v36, %v4230_v3  ;;  %v1202_v59 = vmul.f32 %v4413_v45, %v4319_v42 }
 0x2a3   : > { %v4428_v9 = vrot.slane %v1094_v23, %v4119_v57  ;;  %v759_v44 = vpop.permute.xlu1 %758  ;;  %v4438_v36 = vrot.slane %v1102_v39, %v4119_v57  ;;  %v1788_v17 = vmul.f32 %v4416_v46, %v1749_v13  ;;  %v4452_v39 = vmul.f32 %v4225_v60, %v4370_v35 }
 0x2a4   : > { %v4431_v43 = vrot.slane %v1787_v21, %v4133_v7  ;;  %v1602_v26 = vsub.f32 %v1232_v25, %v1557_v16  ;;  %v1234_v22 = vadd.f32 %v1202_v59, %v748_v31  ;;  %v1789_v21 = vmul.f32 %v4416_v46, %v4433_v15 }
 0x2a5   : > { %v1204_v10 = vmul.f32 %v4428_v9, %v4341_v0  ;;  %6497 = vst [vmem:[#allocation31_spill] sm:$0xff] %v4438_v36  ;;  %v1790_v31 = vmul.f32 %v4416_v46, %v1755_v33  ;;  %v1071_v16 = vrot.slane %v1057_v19, %v4216_v53 }
 0x2a6   : > { %6496 = vst [vmem:[#allocation30_spill] sm:$0xff] %v4431_v43  ;;  %v1852_v42 = vmul.f32 %v4431_v43, %v4368_v8  ;;  %v884_v30 = vpop.permute.xlu0 %883  ;;  %v1636_v52 = vmul.f32 %v4334_v61, %v1602_v26  ;;  %v1471_v25 = vmul.f32 %v4252_v37, %v1234_v22  ;;  %v4469_v60 = vrot.slane %v1789_v21, %v4133_v7 }
 0x2a7   : > { %v1236_v28 = vadd.f32 %v1204_v10, %v759_v44  ;;  %v770_v29 = vpop.permute.xlu1 %769  ;;  %v1206_v10 = vmul.f32 %v4438_v36, %v4357_v24  ;;  %v1104_v44 = vcombine.high %v1094_v23, %v1094_v23  ;;  %v4479_v36 = vrot.slane %v1790_v31, %v4133_v7 }
 0x2a8   : > { %v4447_v0 = vsub.f32 %v1746_v32, %v1852_v42  ;;  %v4456_v59 = vrot.slane %v1636_v52, %v4126_v4  ;;  %v4459_v34 = vrot.slane %v1471_v25, %v4119_v57  ;;  %v4466_v32 = vrot.slane %v1788_v17, %v4133_v7  ;;  %6502 = vst [vmem:[#allocation36_spill] sm:$0xff] %v4469_v60 }
 0x2a9   : > { %v1472_v38 = vmul.f32 %v4252_v37, %v1236_v28  ;;  %v1238_v24 = vadd.f32 %v1206_v10, %v770_v29  ;;  %6504 = vst [vmem:[#allocation38_spill] sm:$0xff] %v4479_v36  ;;  %v4482_v17 = vmul.f32 %v4245_v27, %v862_v6  ;;  %v4485_v21 = vrot.slane %v1104_v44, %v4119_v57 }
 0x2aa   : > { %6498 = vst [vmem:[#allocation32_spill] sm:$0xff] %v4447_v0  ;;  %6499 = vst [vmem:[#allocation33_spill] sm:$0xff] %v4456_v59  ;;  %3862 = vrcp.f32 %v4447_v0  ;;  %v895_v35 = vpop.permute.xlu0 %894  ;;  %v1716_v19 = vmul.f32 %v4456_v59, %v4288_v2  ;;  %v1560_v42 = vmul.f32 %v4459_v34, %v4230_v3  ;;  %v1073_v23 = vcombine.high %v1071_v16, %v1071_v16 }
 0x2ab   : > { %6500 = vst [vmem:[#allocation34_spill] sm:$0xff] %v4459_v34  ;;  %6501 = vst [vmem:[#allocation35_spill] sm:$0xff] %v4466_v32  ;;  %v4476_v52 = vrot.slane %v1472_v38, %v4119_v57  ;;  %v957_v25 = vpop.permute.xlu1 %956  ;;  %v1473_v38 = vmul.f32 %v4252_v37, %v1238_v24  ;;  %v1855_v29 = vmul.f32 %v4466_v32, %v4368_v8 }
 0x2ac   : > { %6505 = vst [vmem:[#allocation39_spill] sm:$0xff] %v4485_v21  ;;  %v1758_v1 = vsub.f32 %v1602_v26, %v1716_v19  ;;  %v1605_v59 = vsub.f32 %v1234_v22, %v1560_v42  ;;  %v1858_v31 = vmul.f32 %v4469_v60, %v4368_v8  ;;  %v1208_v27 = vmul.f32 %v4485_v21, %v957_v25 }
 0x2ad   : > { %6503 = vst [vmem:[#allocation37_spill] sm:$0xff] %v4476_v52  ;;  %v1563_v34 = vmul.f32 %v4476_v52, %v4230_v3  ;;  %v1087_v10 = vrot.slane %v1071_v16, %v4216_v53  ;;  %v4499_v19 = vrot.slane %v1473_v38, %v4119_v57  ;;  %v1861_v52 = vmul.f32 %v4479_v36, %v4368_v8 }
 0x2ae   : > { %v664_v6 = vpop.permute.xlu0 %663  ;;  %v1791_v44 = vmul.f32 %v4416_v46, %v1758_v1  ;;  %v1637_v22 = vmul.f32 %v4334_v61, %v1605_v59  ;;  %v1240_v32 = vadd.f32 %v1208_v27, %v4387_v58  ;;  %v1101_v60 = vrot.slane %v1073_v23, %v4216_v53 }
 0x2af   : > { %v1608_v26 = vsub.f32 %v1236_v28, %v1563_v34  ;;  %6506 = vst [vmem:[#allocation40_spill] sm:$0xff] %v4499_v19  ;;  %v851_v42 = vpop.permute.xlu1 %850  ;;  %v1103_v25 = vcombine.high %v1087_v10, %v1087_v10  ;;  %v1566_v34 = vmul.f32 %v4499_v19, %v4230_v3  ;;  %v1894_v38 = vsub.f32 %v1749_v13, %v1855_v29 }
 0x2b0   : > { %v4506_v21 = vrot.slane %v1791_v44, %v4133_v7  ;;  %v4509_v16 = vrot.slane %v1637_v22, %v4126_v4  ;;  %v4516_v36 = vmul.f32 %v4260_v41, %v4421_v51  ;;  %v4519_v58 = vmul.f32 %v4272_v56, %v884_v30 }
 0x2b1   : > { %v1638_v28 = vmul.f32 %v4334_v61, %v1608_v26  ;;  %v1474_v53 = vmul.f32 %v4252_v37, %v1240_v32  ;;  %v1611_v13 = vsub.f32 %v1238_v24, %v1566_v34  ;;  %v4534_v56 = vsub.f32 %v4433_v15, %v1858_v31 }
 0x2b2   : > { %6507 = vst [vmem:[#allocation41_spill] sm:$0xff] %v4506_v21  ;;  %6508 = vst [vmem:[#allocation42_spill] sm:$0xff] %v4509_v16  ;;  %v4522_v23 = vpop.permute.xlu0 %905  ;;  %v1864_v27 = vmul.f32 %v4506_v21, %v4368_v8  ;;  %v1719_v44 = vmul.f32 %v4509_v16, %v4288_v2  ;;  %v4536_v51 = vsub.f32 %v1755_v33, %v1861_v52 }
 0x2b3   : > { %v4529_v22 = vrot.slane %v1638_v28, %v4126_v4  ;;  %v968_v29 = vpop.permute.xlu1 %967  ;;  %v4539_v30 = vrot.slane %v1474_v53, %v4119_v57  ;;  %v4542_v19 = vrot.slane %v1087_v10, %v4119_v57  ;;  %v4546_v28 = vmul.f32 %v4280_v55, %v895_v35 }
 0x2b4   : > { %v4531_v41 = vpop.eup %3862  ;;  %v4549_v24 = vrot.slane %v1101_v60, %v4119_v57  ;;  %v4552_v34 = vrot.slane %v1103_v25, %v4119_v57  ;;  %v1761_v15 = vsub.f32 %v1605_v59, %v1719_v44  ;;  %v1639_v52 = vmul.f32 %v4334_v61, %v1611_v13 }
 0x2b5   : > { %6509 = vst [vmem:[#allocation43_spill] sm:$0xff] %v4529_v22  ;;  %6510 = vst [vmem:[#allocation44_spill] sm:$0xff] %v4531_v41  ;;  %v1932_v16 = vmul.f32 %v4531_v41, %v1894_v38  ;;  %v1722_v33 = vmul.f32 %v4529_v22, %v4288_v2  ;;  %v1569_v31 = vmul.f32 %v4539_v30, %v4230_v3 }
 0x2b6   : > { %6511 = vst [vmem:[#allocation45_spill] sm:$0xff] %v4539_v30  ;;  %6512 = vst [vmem:[#allocation46_spill] sm:$0xff] %v4542_v19  ;;  %v4559_v10 = vpop.permute.xlu0 %916  ;;  %v4564_v35 = vsub.f32 %v1758_v1, %v1864_v27  ;;  %v4567_v53 = vadd.f32 %v4452_v39, %v664_v6  ;;  %v1105_v59 = vcombine.high %v1101_v60, %v1101_v60 }
 0x2b7   : > { %6513 = vst [vmem:[#allocation47_spill] sm:$0xff] %v4546_v28  ;;  %6514 = vst [vmem:[#allocation48_spill] sm:$0xff] %v4552_v34  ;;  %v4562_v55 = vrot.slane %v1932_v16, %v4147_v11  ;;  %v792_v25 = vpop.permute.xlu1 %791  ;;  %v1792_v44 = vmul.f32 %v4416_v46, %v1761_v15  ;;  %v1764_v22 = vsub.f32 %v1608_v26, %v1722_v33 }
 0x2b8   : > { %6516 = vst [vmem:[#allocation50_spill] sm:$0xff] %v4567_v53  ;;  %v4571_v21 = vrot.slane %v1639_v52, %v4126_v4  ;;  %v1614_v34 = vsub.f32 %v1240_v32, %v1569_v31  ;;  %v1933_v16 = vmul.f32 %v4531_v41, %v4534_v56  ;;  %v1934_v1 = vmul.f32 %v4531_v41, %v4536_v51 }
 0x2b9   : > { %6515 = vst [vmem:[#allocation49_spill] sm:$0xff] %v4562_v55  ;;  %v1992_v30 = vmul.f32 %v4562_v55, %v4447_v0  ;;  %v1210_v39 = vmul.f32 %v4542_v19, %v968_v29  ;;  %v4581_v60 = vrot.slane %v1792_v44, %v4133_v7  ;;  %v1793_v6 = vmul.f32 %v4416_v46, %v1764_v22 }
 0x2ba   : > { %6517 = vst [vmem:[#allocation51_spill] sm:$0xff] %v4571_v21  ;;  %v1725_v26 = vmul.f32 %v4571_v21, %v4288_v2  ;;  %v1640_v32 = vmul.f32 %v4334_v61, %v1614_v34  ;;  %v1935_v33 = vmul.f32 %v4531_v41, %v4564_v35  ;;  %v1189_v52 = vmul.f32 %v4239_v18, %v851_v42 }
 0x2bb   : > { %6518 = vst [vmem:[#allocation52_spill] sm:$0xff] %v4581_v60  ;;  %v4587_v27 = vsub.f32 %v1894_v38, %v1992_v30  ;;  %v675_v31 = vpop.permute.xlu1 %674  ;;  %v4593_v29 = vrot.slane %v1105_v59, %v4119_v57  ;;  %v1867_v44 = vmul.f32 %v4581_v60, %v4368_v8  ;;  %v4598_v19 = vrot.slane %v1793_v6, %v4133_v7  ;;  %v730_v38 = vpop.permute.xlu0 %729 }
 0x2bc   : > { %v1767_v21 = vsub.f32 %v1611_v13, %v1725_v26  ;;  %v4601_v55 = vrot.slane %v1640_v32, %v4126_v4  ;;  %v4605_v30 = vrot.slane %v1933_v16, %v4147_v11  ;;  %v4608_v18 = vrot.slane %v1934_v1, %v4147_v11 }
 0x2bd   : > { %6519 = vst [vmem:[#allocation53_spill] sm:$0xff] %v4587_v27  ;;  %6520 = vst [vmem:[#allocation54_spill] sm:$0xff] %v4593_v29  ;;  %3864 = vrcp.f32 %v4587_v27  ;;  %v1242_v42 = vadd.f32 %v1210_v39, %v792_v25  ;;  %v1906_v59 = vsub.f32 %v1761_v15, %v1867_v44  ;;  %v1870_v60 = vmul.f32 %v4598_v19, %v4368_v8 }
 0x2be   : > { %6521 = vst [vmem:[#allocation55_spill] sm:$0xff] %v4598_v19  ;;  %6522 = vst [vmem:[#allocation56_spill] sm:$0xff] %v4601_v55  ;;  %v1794_v6 = vmul.f32 %v4416_v46, %v1767_v21  ;;  %v1728_v13 = vmul.f32 %v4601_v55, %v4288_v2  ;;  %v4616_v26 = vrot.slane %v1935_v33, %v4147_v11 }
 0x2bf   : > { %6523 = vst [vmem:[#allocation57_spill] sm:$0xff] %v4605_v30  ;;  %6524 = vst [vmem:[#allocation58_spill] sm:$0xff] %v4608_v18  ;;  %v1475_v32 = vmul.f32 %v4252_v37, %v1242_v42  ;;  %v4621_v16 = vmul.f32 %v4339_v63, %v4567_v53  ;;  %v1540_v15 = vmul.f32 %v4268_v48, %v4567_v53  ;;  %v686_v25 = vpop.permute.xlu1 %685 }
 0x2c0   : > { %6525 = vst [vmem:[#allocation59_spill] sm:$0xff] %v4616_v26  ;;  %v1936_v1 = vmul.f32 %v4531_v41, %v1906_v59  ;;  %v1909_v39 = vsub.f32 %v1764_v22, %v1870_v60  ;;  %v4627_v44 = vrot.slane %v1794_v6, %v4133_v7  ;;  %v1770_v55 = vsub.f32 %v1614_v34, %v1728_v13  ;;  %v928_v6 = vpop.permute.xlu0 %927 }
 0x2c1   : > { %v1995_v33 = vmul.f32 %v4605_v30, %v4447_v0  ;;  %v1998_v19 = vmul.f32 %v4608_v18, %v4447_v0  ;;  %v4634_v63 = vrot.slane %v1475_v32, %v4119_v57  ;;  %v1543_v48 = vmul.f32 %v4301_v20, %v4567_v53 }
 0x2c2   : > { %6526 = vst [vmem:[#allocation60_spill] sm:$0xff] %v4627_v44  ;;  %v4639_v29 = vrot.slane %v1936_v1, %v4147_v11  ;;  %v1937_v22 = vmul.f32 %v4531_v41, %v1909_v39  ;;  %v1873_v34 = vmul.f32 %v4627_v44, %v4368_v8  ;;  %v1795_v60 = vmul.f32 %v4416_v46, %v1770_v55 }
 0x2c3   : > { %6527 = vst [vmem:[#allocation61_spill] sm:$0xff] %v4634_v63  ;;  %v2001_v13 = vmul.f32 %v4616_v26, %v4447_v0  ;;  %v1199_v32 = vmul.f32 %v4297_v5, %v4522_v23  ;;  %v1572_v20 = vmul.f32 %v4634_v63, %v4230_v3  ;;  %v1221_v57 = vadd.f32 %v1189_v52, %v675_v31  ;;  %v697_v1 = vpop.permute.xlu1 %696 }
 0x2c4   : > { %6528 = vst [vmem:[#allocation62_spill] sm:$0xff] %v4639_v29  ;;  %v2004_v37 = vmul.f32 %v4639_v29, %v4447_v0  ;;  %v4654_v18 = vrot.slane %v1937_v22, %v4147_v11  ;;  %v1912_v44 = vsub.f32 %v1767_v21, %v1873_v34  ;;  %v4657_v30 = vrot.slane %v1795_v60, %v4133_v7 }
 0x2c5   : > { %v2031_v26 = vsub.f32 %v4534_v56, %v1995_v33  ;;  %v4661_v28 = vsub.f32 %v4536_v51, %v1998_v19  ;;  %v1617_v5 = vsub.f32 %v1242_v42, %v1572_v20  ;;  %v1546_v23 = vmul.f32 %v4317_v40, %v4567_v53 }
 0x2c6   : > { %6529 = vst [vmem:[#allocation63_spill] sm:$0xff] %v4654_v18  ;;  %6530 = vst [vmem:[#allocation64_spill] sm:$0xff] %v4657_v30  ;;  %v2007_v52 = vmul.f32 %v4654_v18, %v4447_v0  ;;  %v1938_v31 = vmul.f32 %v4531_v41, %v1912_v44  ;;  %v1876_v21 = vmul.f32 %v4657_v30, %v4368_v8 }
 0x2c7   : > { %v1223_v22 = vadd.f32 %v4482_v17, %v686_v25  ;;  %v4671_v34 = vpop.eup %3864  ;;  %v4674_v56 = vsub.f32 %v4564_v35, %v2001_v13  ;;  %v4678_v20 = vmul.f32 %v4380_v50, %v4559_v10  ;;  %v1641_v19 = vmul.f32 %v4334_v61, %v1617_v5  ;;  %v979_v17 = vpop.permute.xlu0 %978 }
 0x2c8   : > { %6531 = vst [vmem:[#allocation65_spill] sm:$0xff] %v4671_v34  ;;  %v4681_v51 = vsub.f32 %v1221_v57, %v1540_v15  ;;  %v2066_v42 = vmul.f32 %v4671_v34, %v2031_v26  ;;  %v2067_v33 = vmul.f32 %v4671_v34, %v4661_v28  ;;  %v4686_v60 = vsub.f32 %v1906_v59, %v2004_v37  ;;  %v708_v35 = vpop.permute.xlu1 %707 }
 0x2c9   : > { %v1225_v25 = vadd.f32 %v4516_v36, %v697_v1  ;;  %v4689_v13 = vsub.f32 %v1909_v39, %v2007_v52  ;;  %v4692_v50 = vrot.slane %v1938_v31, %v4147_v11  ;;  %v1915_v10 = vsub.f32 %v1770_v55, %v1876_v21 }
 0x2ca   : > { %6532 = vst [vmem:[#allocation66_spill] sm:$0xff] %v4681_v51  ;;  %v4695_v57 = vrot.slane %v1641_v19, %v4126_v4  ;;  %v4698_v15 = vrot.slane %v2066_v42, %v4156_v14  ;;  %v2068_v37 = vmul.f32 %v4671_v34, %v4674_v56  ;;  %v4702_v59 = vadd.f32 %v1199_v32, %v730_v38 }
 0x2cb   : > { %6533 = vst [vmem:[#allocation67_spill] sm:$0xff] %v4692_v50  ;;  %v1588_v40 = vsub.f32 %v1223_v22, %v1543_v48  ;;  %v2069_v36 = vmul.f32 %v4671_v34, %v4686_v60  ;;  %v2010_v39 = vmul.f32 %v4692_v50, %v4447_v0  ;;  %v1939_v55 = vmul.f32 %v4531_v41, %v1915_v10 }
 0x2cc   : > { %6534 = vst [vmem:[#allocation68_spill] sm:$0xff] %v4695_v57  ;;  %6535 = vst [vmem:[#allocation69_spill] sm:$0xff] %v4698_v15  ;;  %v1731_v1 = vmul.f32 %v4695_v57, %v4288_v2  ;;  %v2121_v52 = vmul.f32 %v4698_v15, %v4587_v27  ;;  %v2070_v31 = vmul.f32 %v4671_v34, %v4689_v13 }
 0x2cd   : > { %v1702_v48 = vmul.f32 %v4350_v12, %v4681_v51  ;;  %v1591_v38 = vsub.f32 %v1225_v25, %v1546_v23  ;;  %v4718_v32 = vrot.slane %v2067_v33, %v4156_v14  ;;  %v2046_v21 = vsub.f32 %v1912_v44, %v2010_v39  ;;  %v939_v12 = vpop.permute.xlu0 %938  ;;  %v719_v23 = vpop.permute.xlu1 %718 }
 0x2ce   : > { %v4721_v22 = vrot.slane %v1939_v55, %v4147_v11  ;;  %v1773_v19 = vsub.f32 %v1617_v5, %v1731_v1  ;;  %v4723_v42 = vsub.f32 %v2031_v26, %v2121_v52  ;;  %v4726_v57 = vrot.slane %v2068_v37, %v4156_v14 }
 0x2cf   : > { %6536 = vst [vmem:[#allocation70_spill] sm:$0xff] %v4718_v32  ;;  %v4728_v63 = vsub.f32 %v1588_v40, %v1702_v48  ;;  %v1705_v30 = vmul.f32 %v4377_v47, %v4681_v51  ;;  %v4733_v33 = vrot.slane %v2069_v36, %v4156_v14  ;;  %v2071_v44 = vmul.f32 %v4671_v34, %v2046_v21 }
 0x2d0   : > { %6537 = vst [vmem:[#allocation71_spill] sm:$0xff] %v4721_v22  ;;  %6538 = vst [vmem:[#allocation72_spill] sm:$0xff] %v4723_v42  ;;  %v2013_v5 = vmul.f32 %v4721_v22, %v4447_v0  ;;  %v1796_v26 = vmul.f32 %v4416_v46, %v1773_v19  ;;  %3866 = vrcp.f32 %v4723_v42  ;;  %v4741_v40 = vrot.slane %v2070_v31, %v4156_v14 }
 0x2d1   : > { %6539 = vst [vmem:[#allocation73_spill] sm:$0xff] %v4726_v57  ;;  %6540 = vst [vmem:[#allocation74_spill] sm:$0xff] %v4728_v63  ;;  %v4746_v37 = vmul.f32 %v4413_v45, %v928_v6  ;;  %v2124_v36 = vmul.f32 %v4718_v32, %v4587_v27  ;;  %v1747_v1 = vsub.f32 %v1591_v38, %v1705_v30  ;;  %v741_v25 = vpop.permute.xlu1 %740 }
 0x2d2   : > { %6541 = vst [vmem:[#allocation75_spill] sm:$0xff] %v4733_v33  ;;  %6542 = vst [vmem:[#allocation76_spill] sm:$0xff] %v4741_v40  ;;  %v2049_v39 = vsub.f32 %v1915_v10, %v2013_v5  ;;  %v4751_v55 = vrot.slane %v1796_v26, %v4133_v7  ;;  %v4754_v52 = vrot.slane %v2071_v44, %v4156_v14 }
 0x2d3   : > { %v1853_v31 = vmul.f32 %v4431_v43, %v4728_v63  ;;  %v1549_v48 = vmul.f32 %v4332_v54, %v4567_v53  ;;  %v1227_v45 = vadd.f32 %v4519_v58, %v708_v35  ;;  %v2127_v6 = vmul.f32 %v4726_v57, %v4587_v27  ;;  %v990_v35 = vpop.permute.xlu0 %989 }
 0x2d4   : > { %6543 = vst [vmem:[#allocation77_spill] sm:$0xff] %v4751_v55  ;;  %6544 = vst [vmem:[#allocation78_spill] sm:$0xff] %v4754_v52  ;;  %v2130_v10 = vmul.f32 %v4733_v33, %v4587_v27  ;;  %v2072_v5 = vmul.f32 %v4671_v34, %v2049_v39  ;;  %v1879_v30 = vmul.f32 %v4751_v55, %v4368_v8 }
 0x2d5   : > { %v2133_v38 = vmul.f32 %v4741_v40, %v4587_v27  ;;  %v4771_v44 = vmul.f32 %v4549_v24, %v979_v17  ;;  %v4774_v26 = vmul.f32 %v4428_v9, %v939_v12  ;;  %v1594_v58 = vsub.f32 %v1227_v45, %v1549_v48  ;;  %v6547_v9 = vld [vmem:[#allocation47_spill] sm:$0xff] }
 0x2d6   : > { %v2157_v43 = vsub.f32 %v4661_v28, %v2124_v36  ;;  %v4778_v47 = vrot.slane %v2072_v5, %v4156_v14  ;;  %v1918_v54 = vsub.f32 %v1773_v19, %v1879_v30  ;;  %v4780_v22 = vsub.f32 %v1747_v1, %v1853_v31  ;;  %v6548_v5 = vld [vmem:[#allocation26_spill] sm:$0xff] }
 0x2d7   : > { %v2136_v55 = vmul.f32 %v4754_v52, %v4587_v27  ;;  %v1708_v17 = vmul.f32 %v4391_v62, %v4681_v51  ;;  %v1552_v12 = vmul.f32 %v4325_v49, %v4567_v53  ;;  %v1229_v48 = vadd.f32 %v6547_v9, %v719_v23  ;;  %v6550_v23 = vld [vmem:[#allocation35_spill] sm:$0xff] }
 0x2d8   : > { %6545 = vst [vmem:[#allocation79_spill] sm:$0xff] %v4778_v47  ;;  %6546 = vst [vmem:[#allocation80_spill] sm:$0xff] %v4780_v22  ;;  %v2160_v45 = vsub.f32 %v4674_v56, %v2127_v6  ;;  %v2163_v28 = vsub.f32 %v4686_v60, %v2130_v10  ;;  %v2139_v19 = vmul.f32 %v4778_v47, %v4587_v27  ;;  %v6551_v60 = vld [vmem:[#allocation49_spill] sm:$0xff]  ;;  %v6552_v10 = vld [vmem:[#allocation48_spill] sm:$0xff] }
 0x2d9   : > { %v1940_v36 = vmul.f32 %v4531_v41, %v1918_v54  ;;  %v2166_v1 = vsub.f32 %v4689_v13, %v2133_v38  ;;  %v1750_v31 = vsub.f32 %v1594_v58, %v1708_v17  ;;  %v1711_v30 = vmul.f32 %v6548_v5, %v4681_v51  ;;  %v6554_v58 = vld [vmem:[#allocation36_spill] sm:$0xff]  ;;  %v6564_v52 = vld [vmem:[#allocation27_spill] sm:$0xff] }
 0x2da   : > { %v1597_v62 = vsub.f32 %v1229_v48, %v1552_v12  ;;  %v1856_v56 = vmul.f32 %v6550_v23, %v4728_v63  ;;  %v1993_v6 = vmul.f32 %v6551_v60, %v4780_v22  ;;  %v4805_v9 = vmul.f32 %v6552_v10, %v990_v35  ;;  %v4807_v41 = vpop.eup %3866  ;;  %v950_v48 = vpop.permute.xlu0 %949 }
 0x2db   : > { %v4798_v49 = vrot.slane %v1940_v36, %v4147_v11  ;;  %6553 = vst [vmem:[#allocation81_spill] sm:$0xff] %v4807_v41  ;;  %v2169_v13 = vsub.f32 %v2046_v21, %v2136_v55  ;;  %v2172_v38 = vsub.f32 %v2049_v39, %v2139_v19  ;;  %v1859_v17 = vmul.f32 %v6554_v58, %v4728_v63  ;;  %v752_v36 = vpop.permute.xlu1 %751  ;;  %v6555_v55 = vld [vmem:[#allocation9_spill] sm:$0xff] }
 0x2dc   : > { %v1753_v12 = vsub.f32 %v1597_v62, %v1711_v30  ;;  %v2189_v5 = vmul.f32 %v4807_v41, %v2157_v43  ;;  %v2190_v23 = vmul.f32 %v4807_v41, %v2160_v45  ;;  %v2191_v11 = vmul.f32 %v4807_v41, %v2163_v28  ;;  %v6559_v58 = vld [vmem:[#allocation57_spill] sm:$0xff] }
 0x2dd   : > { %6549 = vst [vmem:[#allocation47_spill] sm:$0xff] %v4798_v49  ;;  %v2192_v60 = vmul.f32 %v4807_v41, %v2166_v1  ;;  %v2193_v35 = vmul.f32 %v4807_v41, %v2169_v13  ;;  %v2194_v10 = vmul.f32 %v4807_v41, %v2172_v38  ;;  %v2016_v21 = vmul.f32 %v4798_v49, %v4447_v0 }
 0x2de   : > { %v1895_v39 = vsub.f32 %v1750_v31, %v1856_v56  ;;  %v4820_v62 = vrot.slane %v2189_v5, %v6555_v55  ;;  %v4823_v19 = vrot.slane %v2190_v23, %v6555_v55  ;;  %v4826_v30 = vrot.slane %v2191_v11, %v6555_v55  ;;  %v6562_v56 = vld [vmem:[#allocation31_spill] sm:$0xff]  ;;  %v6563_v11 = vld [vmem:[#allocation28_spill] sm:$0xff] }
 0x2df   : > { %v1996_v47 = vmul.f32 %v6559_v58, %v4780_v22  ;;  %v4831_v8 = vrot.slane %v2192_v60, %v6555_v55  ;;  %v4834_v7 = vrot.slane %v2193_v35, %v6555_v55  ;;  %v2052_v49 = vsub.f32 %v1918_v54, %v2016_v21 }
 0x2e0   : > { %6556 = vst [vmem:[#allocation82_spill] sm:$0xff] %v4820_v62  ;;  %6557 = vst [vmem:[#allocation83_spill] sm:$0xff] %v4823_v19  ;;  %v1898_v31 = vsub.f32 %v1753_v12, %v1859_v17  ;;  %v2239_v5 = vmul.f32 %v4820_v62, %v4723_v42  ;;  %v4839_v23 = vmul.f32 %v6562_v56, %v950_v48  ;;  %v1001_v17 = vpop.permute.xlu0 %1000  ;;  %v803_v12 = vpop.permute.xlu1 %802 }
 0x2e1   : > { %6558 = vst [vmem:[#allocation84_spill] sm:$0xff] %v4826_v30  ;;  %6560 = vst [vmem:[#allocation85_spill] sm:$0xff] %v4831_v8  ;;  %v1558_v0 = vmul.f32 %v6563_v11, %v4567_v53  ;;  %v1714_v58 = vmul.f32 %v6564_v52, %v4681_v51  ;;  %v4846_v60 = vrot.slane %v2194_v10, %v6555_v55  ;;  %v6568_v11 = vld [vmem:[#allocation33_spill] sm:$0xff] }
 0x2e2   : > { %6561 = vst [vmem:[#allocation86_spill] sm:$0xff] %v4834_v7  ;;  %v2073_v35 = vmul.f32 %v4671_v34, %v2052_v49  ;;  %v4849_v46 = vsub.f32 %v1895_v39, %v1993_v6  ;;  %v1233_v54 = vadd.f32 %v4678_v20, %v741_v25  ;;  %v4852_v21 = vsub.f32 %v2157_v43, %v2239_v5  ;;  %v6571_v5 = vld [vmem:[#allocation38_spill] sm:$0xff] }
 0x2e3   : > { %6565 = vst [vmem:[#allocation31_spill] sm:$0xff] %v4846_v60  ;;  %v2242_v48 = vmul.f32 %v4823_v19, %v4723_v42  ;;  %v2245_v56 = vmul.f32 %v4826_v30, %v4723_v42  ;;  %v1717_v10 = vmul.f32 %v6568_v11, %v4681_v51  ;;  %v2248_v52 = vmul.f32 %v4831_v8, %v4723_v42  ;;  %v6572_v11 = vld [vmem:[#allocation41_spill] sm:$0xff] }
 0x2e4   : > { %6566 = vst [vmem:[#allocation87_spill] sm:$0xff] %v4849_v46  ;;  %6567 = vst [vmem:[#allocation88_spill] sm:$0xff] %v4852_v21  ;;  %v2251_v6 = vmul.f32 %v4834_v7, %v4723_v42  ;;  %v4865_v20 = vrot.slane %v2073_v35, %v4156_v14  ;;  %v2032_v43 = vsub.f32 %v1898_v31, %v1996_v47  ;;  %3868 = vrcp.f32 %v4852_v21 }
 0x2e5   : > { %v6570_v25 = vsub.f32 %v4702_v59, %v4621_v16  ;;  %v1862_v34 = vmul.f32 %v6571_v5, %v4728_v63  ;;  %v1865_v50 = vmul.f32 %v6572_v11, %v4728_v63  ;;  %v2254_v2 = vmul.f32 %v4846_v60, %v4723_v42  ;;  %v6573_v59 = vld [vmem:[#allocation58_spill] sm:$0xff] }
 0x2e6   : > { %6569 = vst [vmem:[#allocation89_spill] sm:$0xff] %v4865_v20  ;;  %v2142_v35 = vmul.f32 %v4865_v20, %v4587_v27  ;;  %v2122_v47 = vmul.f32 %v4698_v15, %v4849_v46  ;;  %v1603_v31 = vsub.f32 %v1233_v54, %v1558_v0  ;;  %v4881_v14 = vsub.f32 %v2160_v45, %v2242_v48  ;;  %v961_v20 = vpop.permute.xlu0 %960  ;;  %v763_v15 = vpop.permute.xlu1 %762 }
 0x2e7   : > { %v1756_v39 = vsub.f32 %v6570_v25, %v1714_v58  ;;  %v4883_v16 = vsub.f32 %v2163_v28, %v2245_v56  ;;  %v1999_v58 = vmul.f32 %v6573_v59, %v4780_v22  ;;  %v6574_v25 = vld [vmem:[#allocation59_spill] sm:$0xff]  ;;  %v4889_v5 = vsub.f32 %v2166_v1, %v2248_v52  ;;  %v6576_v28 = vld [vmem:[#allocation34_spill] sm:$0xff] }
 0x2e8   : > { %v2002_v11 = vmul.f32 %v6574_v25, %v4780_v22  ;;  %v4891_v60 = vsub.f32 %v2169_v13, %v2251_v6  ;;  %v2175_v7 = vsub.f32 %v2052_v49, %v2142_v35  ;;  %v4893_v27 = vsub.f32 %v2032_v43, %v2122_v47  ;;  %v6581_v47 = vld [vmem:[#allocation52_spill] sm:$0xff]  ;;  %v6589_v25 = vld [vmem:[#allocation10_spill] sm:$0xff] }
 0x2e9   : > { %v1901_v0 = vsub.f32 %v1756_v39, %v1862_v34  ;;  %v2125_v45 = vmul.f32 %v4718_v32, %v4849_v46  ;;  %v1561_v54 = vmul.f32 %v6576_v28, %v4567_v53  ;;  %v1235_v48 = vadd.f32 %v4746_v37, %v752_v36  ;;  %v6577_v34 = vld [vmem:[#allocation42_spill] sm:$0xff]  ;;  %v6591_v28 = vld [vmem:[#allocation43_spill] sm:$0xff] }
 0x2ea   : > { %6575 = vst [vmem:[#allocation90_spill] sm:$0xff] %v4893_v27  ;;  %v4900_v56 = vsub.f32 %v2172_v38, %v2254_v2  ;;  %v2195_v52 = vmul.f32 %v4807_v41, %v2175_v7  ;;  %v1759_v1 = vsub.f32 %v1603_v31, %v1717_v10  ;;  %v1244_v49 = vadd.f32 %v4771_v44, %v803_v12  ;;  %v6579_v38 = vld [vmem:[#allocation13_spill] sm:$0xff]  ;;  %v6580_v12 = vld [vmem:[#allocation54_spill] sm:$0xff] }
 0x2eb   : > { %v2035_v13 = vsub.f32 %v1901_v0, %v1999_v58  ;;  %v2240_v6 = vmul.f32 %v4820_v62, %v4893_v27  ;;  %v1720_v43 = vmul.f32 %v6577_v34, %v4681_v51  ;;  %v1606_v39 = vsub.f32 %v1235_v48, %v1561_v54 }
 0x2ec   : > { %v4909_v35 = vrot.slane %v2195_v52, %v6555_v55  ;;  %v2128_v2 = vmul.f32 %v4726_v57, %v4849_v46  ;;  %v2243_v37 = vmul.f32 %v4823_v19, %v4893_v27  ;;  %v1476_v36 = vmul.f32 %v6579_v38, %v1244_v49  ;;  %v972_v19 = vpop.permute.xlu0 %971 }
 0x2ed   : > { %v2158_v44 = vsub.f32 %v2035_v13, %v2125_v45  ;;  %v4917_v10 = vmul.f32 %v6580_v12, %v1001_v17  ;;  %v1868_v31 = vmul.f32 %v6581_v47, %v4728_v63  ;;  %v1762_v58 = vsub.f32 %v1606_v39, %v1720_v43  ;;  %v814_v45 = vpop.permute.xlu1 %813  ;;  %v6584_v39 = vld [vmem:[#allocation39_spill] sm:$0xff] }
 0x2ee   : > { %6578 = vst [vmem:[#allocation91_spill] sm:$0xff] %v4909_v35  ;;  %v2257_v0 = vmul.f32 %v4909_v35, %v4723_v42  ;;  %v1904_v54 = vsub.f32 %v1759_v1, %v1865_v50  ;;  %v2005_v48 = vmul.f32 %v4639_v29, %v4780_v22  ;;  %v4927_v52 = vmul.f32 %v4733_v33, %v4849_v46  ;;  %v4929_v13 = vpop.eup %3868  ;;  %v6585_v50 = vld [vmem:[#allocation5_spill] sm:$0xff] }
 0x2ef   : > { %6582 = vst [vmem:[#allocation92_spill] sm:$0xff] %v4929_v13  ;;  %v4931_v17 = vsub.f32 %v2158_v44, %v2240_v6  ;;  %v4935_v43 = vmul.f32 %v4826_v30, %v4893_v27  ;;  %v4938_v47 = vmul.f32 %v6584_v39, %v961_v20  ;;  %v4941_v1 = vrot.slane %v1476_v36, %v6585_v50  ;;  %v6587_v39 = vld [vmem:[#allocation46_spill] sm:$0xff]  ;;  %v6588_v36 = vld [vmem:[#allocation37_spill] sm:$0xff] }
 0x2f0   : > { %v2301_v33 = vmul.f32 %v4929_v13, %v4881_v14  ;;  %v2302_v29 = vmul.f32 %v4929_v13, %v4883_v16  ;;  %v2303_v6 = vmul.f32 %v4929_v13, %v4889_v5  ;;  %v2304_v44 = vmul.f32 %v4929_v13, %v4891_v60 }
 0x2f1   : > { %6583 = vst [vmem:[#allocation93_spill] sm:$0xff] %v4931_v17  ;;  %6586 = vst [vmem:[#allocation39_spill] sm:$0xff] %v4941_v1  ;;  %v2305_v30 = vmul.f32 %v4929_v13, %v4900_v56  ;;  %v1907_v20 = vsub.f32 %v1762_v58, %v1868_v31  ;;  %v4954_v34 = vmul.f32 %v6587_v39, %v972_v19 }
 0x2f2   : > { %v1564_v57 = vmul.f32 %v6588_v36, %v4567_v53  ;;  %v4959_v62 = vrot.slane %v2301_v33, %v6589_v25  ;;  %v4961_v32 = vsub.f32 %v2175_v7, %v2257_v0  ;;  %v2038_v59 = vsub.f32 %v1904_v54, %v2002_v11  ;;  %v774_v0 = vpop.permute.xlu1 %773 }
 0x2f3   : > { %v1723_v12 = vmul.f32 %v6591_v28, %v4681_v51  ;;  %v4966_v42 = vrot.slane %v2302_v29, %v6589_v25  ;;  %v4969_v31 = vrot.slane %v2303_v6, %v6589_v25  ;;  %v4972_v19 = vrot.slane %v2304_v44, %v6589_v25  ;;  %v6596_v6 = vld [vmem:[#allocation55_spill] sm:$0xff] }
 0x2f4   : > { %6590 = vst [vmem:[#allocation5_spill] sm:$0xff] %v4959_v62  ;;  %v4975_v58 = vrot.slane %v2305_v30, %v6589_v25  ;;  %v2346_v7 = vmul.f32 %v4959_v62, %v4852_v21  ;;  %v2306_v33 = vmul.f32 %v4929_v13, %v4961_v32  ;;  %v1575_v11 = vmul.f32 %v4941_v1, %v4230_v3 }
 0x2f5   : > { %6592 = vst [vmem:[#allocation46_spill] sm:$0xff] %v4966_v42  ;;  %6593 = vst [vmem:[#allocation94_spill] sm:$0xff] %v4969_v31  ;;  %v1237_v29 = vadd.f32 %v4774_v26, %v763_v15  ;;  %v2041_v54 = vsub.f32 %v1907_v20, %v2005_v48  ;;  %v1871_v44 = vmul.f32 %v6596_v6, %v4728_v63  ;;  %v983_v26 = vpop.permute.xlu0 %982 }
 0x2f6   : > { %6594 = vst [vmem:[#allocation95_spill] sm:$0xff] %v4972_v19  ;;  %6595 = vst [vmem:[#allocation96_spill] sm:$0xff] %v4975_v58  ;;  %v2008_v30 = vmul.f32 %v4654_v18, %v4780_v22  ;;  %v1246_v39 = vadd.f32 %v4805_v9, %v814_v45  ;;  %v2373_v28 = vsub.f32 %v4881_v14, %v2346_v7 }
 0x2f7   : > { %v2161_v36 = vsub.f32 %v2038_v59, %v2128_v2  ;;  %v4992_v13 = vmul.f32 %v4741_v40, %v4849_v46  ;;  %v4996_v15 = vmul.f32 %v4831_v8, %v4893_v27  ;;  %v2349_v48 = vmul.f32 %v4966_v42, %v4852_v21 }
 0x2f8   : > { %v2352_v20 = vmul.f32 %v4969_v31, %v4852_v21  ;;  %v5004_v9 = vmul.f32 %v4972_v19, %v4852_v21  ;;  %v5008_v14 = vmul.f32 %v4975_v58, %v4852_v21  ;;  %3870 = vrcp.f32 %v2373_v28 }
 0x2f9   : > { %v5011_v59 = vrot.slane %v2306_v33, %v6589_v25  ;;  %v1620_v2 = vsub.f32 %v1244_v49, %v1575_v11  ;;  %v1609_v45 = vsub.f32 %v1237_v29, %v1564_v57  ;;  %v2273_v7 = vsub.f32 %v2161_v36, %v2243_v37  ;;  %v825_v49 = vpop.permute.xlu1 %824 }
 0x2fa   : > { %v2164_v8 = vsub.f32 %v2041_v54, %v4927_v52  ;;  %v5015_v40 = vmul.f32 %v4549_v24, %v983_v26  ;;  %v1477_v18 = vmul.f32 %v6579_v38, %v1246_v39  ;;  %v2347_v6 = vmul.f32 %v4959_v62, %v4931_v17 }
 0x2fb   : > { %6597 = vst [vmem:[#allocation97_spill] sm:$0xff] %v5011_v59  ;;  %v5022_v55 = vmul.f32 %v4966_v42, %v4931_v17  ;;  %v1642_v28 = vmul.f32 %v4334_v61, %v1620_v2  ;;  %v1765_v33 = vsub.f32 %v1609_v45, %v1723_v12  ;;  %v2376_v57 = vsub.f32 %v4883_v16, %v2349_v48  ;;  %v6600_v12 = vld [vmem:[#allocation40_spill] sm:$0xff]  ;;  %v6602_v48 = vld [vmem:[#allocation15_spill] sm:$0xff] }
 0x2fc   : > { %v2379_v37 = vsub.f32 %v4889_v5, %v2352_v20  ;;  %v2382_v24 = vsub.f32 %v4891_v60, %v5004_v9  ;;  %v5030_v52 = vrot.slane %v1477_v18, %v6585_v50  ;;  %v2385_v36 = vsub.f32 %v4900_v56, %v5008_v14 }
 0x2fd   : > { %v2361_v11 = vmul.f32 %v5011_v59, %v4852_v21  ;;  %v5037_v29 = vrot.slane %v1642_v28, %v4126_v4  ;;  %v1567_v16 = vmul.f32 %v6600_v12, %v4567_v53  ;;  %v1910_v54 = vsub.f32 %v1765_v33, %v1871_v44  ;;  %v6603_v44 = vld [vmem:[#allocation51_spill] sm:$0xff] }
 0x2fe   : > { %6598 = vst [vmem:[#allocation98_spill] sm:$0xff] %v5030_v52  ;;  %v1578_v5 = vmul.f32 %v5030_v52, %v4230_v3  ;;  %v1239_v60 = vadd.f32 %v4839_v23, %v774_v0  ;;  %v1248_v18 = vadd.f32 %v4917_v10, %v825_v49  ;;  %v5045_v26 = vsub.f32 %v2273_v7, %v2347_v6  ;;  %v6605_v49 = vld [vmem:[#allocation67_spill] sm:$0xff] }
 0x2ff   : > { %6599 = vst [vmem:[#allocation99_spill] sm:$0xff] %v5037_v29  ;;  %v2276_v56 = vsub.f32 %v2164_v8, %v4935_v43  ;;  %v1734_v20 = vmul.f32 %v5037_v29, %v6602_v48  ;;  %v5052_v9 = vmul.f32 %v4969_v31, %v4931_v17  ;;  %v1726_v45 = vmul.f32 %v6603_v44, %v4681_v51  ;;  %v6604_v8 = vld [vmem:[#allocation60_spill] sm:$0xff]  ;;  %v6618_v44 = vld [vmem:[#allocation11_spill] sm:$0xff] }
 0x300   : > { %6601 = vst [vmem:[#allocation100_spill] sm:$0xff] %v5045_v26  ;;  %v1623_v14 = vsub.f32 %v1246_v39, %v1578_v5  ;;  %v1612_v28 = vsub.f32 %v1239_v60, %v1567_v16  ;;  %v1478_v23 = vmul.f32 %v6579_v38, %v1248_v18  ;;  %v2388_v10 = vsub.f32 %v4961_v32, %v2361_v11  ;;  %v6607_v16 = vld [vmem:[#allocation29_spill] sm:$0xff]  ;;  %v6608_v38 = vld [vmem:[#allocation78_spill] sm:$0xff]  ;;  %v785_v11 = vpop.permute.xlu1 %784  ;;  %v6620_v21 = vld [vmem:[#allocation23_spill] sm:$0xff] }
 0x301   : > { %v2377_v0 = vsub.f32 %v2276_v56, %v5022_v55  ;;  %v1776_v6 = vsub.f32 %v1620_v2, %v1734_v20  ;;  %v1874_v43 = vmul.f32 %v6604_v8, %v4728_v63  ;;  %v2044_v7 = vsub.f32 %v1910_v54, %v2008_v30  ;;  %v6609_v55 = vld [vmem:[#allocation86_spill] sm:$0xff]  ;;  %v5080_v20 = vpop.permute.xlu0 %993  ;;  %v6616_v8 = vld [vmem:[#allocation56_spill] sm:$0xff]  ;;  %v6621_v52 = vld [vmem:[#allocation71_spill] sm:$0xff] }
 0x302   : > { %v1643_v33 = vmul.f32 %v4334_v61, %v1623_v14  ;;  %v2011_v39 = vmul.f32 %v6605_v49, %v4780_v22  ;;  %v1768_v5 = vsub.f32 %v1612_v28, %v1726_v45  ;;  %v5064_v31 = vpop.eup %3870  ;;  %v5069_v32 = vmul.f32 %v6608_v38, %v4849_v46  ;;  %6611 = vst [vmem:[#allocation103_spill] sm:$0xff] %v5080_v20  ;;  %v6612_v28 = vld [vmem:[#allocation45_spill] sm:$0xff]  ;;  %v6613_v49 = vld [vmem:[#allocation6_spill] sm:$0xff]  ;;  %v6625_v20 = vld [vmem:[#allocation44_spill] sm:$0xff] }
 0x303   : > { %6606 = vst [vmem:[#allocation101_spill] sm:$0xff] %v5064_v31  ;;  %v1797_v60 = vmul.f32 %v6607_v16, %v1776_v6  ;;  %v5073_v2 = vmul.f32 %v6609_v55, %v4893_v27  ;;  %v5076_v30 = vrot.slane %v1478_v23, %v6585_v50  ;;  %v2402_v54 = vmul.f32 %v5064_v31, %v2376_v57 }
 0x304   : > { %v2403_v56 = vmul.f32 %v5064_v31, %v2379_v37  ;;  %v5084_v45 = vmul.f32 %v4972_v19, %v4931_v17  ;;  %v1570_v38 = vmul.f32 %v6612_v28, %v4567_v53  ;;  %v5092_v23 = vrot.slane %v1643_v33, %v4126_v4  ;;  %v6617_v37 = vld [vmem:[#allocation64_spill] sm:$0xff] }
 0x305   : > { %6610 = vst [vmem:[#allocation102_spill] sm:$0xff] %v5076_v30  ;;  %v5089_v55 = vrot.slane %v1797_v60, %v6613_v49  ;;  %v1729_v57 = vmul.f32 %v6616_v8, %v4681_v51  ;;  %v1877_v42 = vmul.f32 %v6617_v37, %v4728_v63  ;;  %v5099_v62 = vrot.slane %v2402_v54, %v6618_v44 }
 0x306   : > { %6615 = vst [vmem:[#allocation105_spill] sm:$0xff] %v5092_v23  ;;  %v2167_v19 = vsub.f32 %v2044_v7, %v4992_v13  ;;  %v1913_v12 = vsub.f32 %v1768_v5, %v1874_v43  ;;  %v1241_v28 = vadd.f32 %v4938_v47, %v785_v11  ;;  %v1737_v33 = vmul.f32 %v5092_v23, %v6602_v48  ;;  %v6623_v43 = vld [vmem:[#allocation79_spill] sm:$0xff] }
 0x307   : > { %6614 = vst [vmem:[#allocation104_spill] sm:$0xff] %v5089_v55  ;;  %6619 = vst [vmem:[#allocation11_spill] sm:$0xff] %v5099_v62  ;;  %v1882_v60 = vmul.f32 %v5089_v55, %v6620_v21  ;;  %v1581_v8 = vmul.f32 %v5076_v30, %v4230_v3  ;;  %v2014_v37 = vmul.f32 %v6621_v52, %v4780_v22 }
 0x308   : > { %v5112_v54 = vrot.slane %v2403_v56, %v6618_v44  ;;  %v2404_v13 = vmul.f32 %v5064_v31, %v2382_v24  ;;  %v2442_v47 = vmul.f32 %v5099_v62, %v5045_v26  ;;  %v2140_v7 = vmul.f32 %v6623_v43, %v4849_v46  ;;  %v5123_v56 = vpop.permute.xlu0 %1004 }
 0x309   : > { %v2405_v5 = vmul.f32 %v5064_v31, %v2385_v36  ;;  %v1921_v11 = vsub.f32 %v1776_v6, %v1882_v60  ;;  %v1779_v23 = vsub.f32 %v1623_v14, %v1737_v33  ;;  %v1626_v25 = vsub.f32 %v1248_v18, %v1581_v8  ;;  %v6631_v8 = vld [vmem:[#allocation31_spill] sm:$0xff]  ;;  %v796_v33 = vpop.permute.xlu1 %795 }
 0x30a   : > { %6622 = vst [vmem:[#allocation106_spill] sm:$0xff] %v5112_v54  ;;  %v5120_v3 = vsub.f32 %v2377_v0, %v2442_v47  ;;  %v2279_v52 = vsub.f32 %v2167_v19, %v4996_v15  ;;  %v2047_v30 = vsub.f32 %v1913_v12, %v2011_v39  ;;  %v1615_v55 = vsub.f32 %v1241_v28, %v1570_v38  ;;  %v6627_v12 = vld [vmem:[#allocation7_spill] sm:$0xff]  ;;  %v6632_v28 = vld [vmem:[#allocation32_spill] sm:$0xff] }
 0x30b   : > { %v2406_v24 = vmul.f32 %v5064_v31, %v2388_v10  ;;  %v1941_v62 = vmul.f32 %v6625_v20, %v1921_v11  ;;  %v1798_v29 = vmul.f32 %v6607_v16, %v1779_v23  ;;  %v1644_v43 = vmul.f32 %v4334_v61, %v1626_v25 }
 0x30c   : > { %6624 = vst [vmem:[#allocation107_spill] sm:$0xff] %v5120_v3  ;;  %v5130_v36 = vrot.slane %v2404_v13, %v6618_v44  ;;  %3872 = vrcp.f32 %v5120_v3  ;;  %v2444_v19 = vmul.f32 %v5112_v54, %v5045_v26  ;;  %v1771_v15 = vsub.f32 %v1615_v55, %v1729_v57 }
 0x30d   : > { %v5136_v18 = vrot.slane %v1941_v62, %v6627_v12  ;;  %v5139_v38 = vrot.slane %v1798_v29, %v6613_v49  ;;  %v5142_v14 = vrot.slane %v1644_v43, %v4126_v4  ;;  %v5145_v10 = vrot.slane %v2405_v5, %v6618_v44 }
 0x30e   : > { %6626 = vst [vmem:[#allocation108_spill] sm:$0xff] %v5130_v36  ;;  %v2380_v0 = vsub.f32 %v2279_v52, %v5052_v9  ;;  %v2170_v6 = vsub.f32 %v2047_v30, %v5069_v32  ;;  %v2255_v39 = vmul.f32 %v6631_v8, %v4893_v27  ;;  %v1916_v55 = vsub.f32 %v1771_v15, %v1877_v42  ;;  %v5164_v32 = vpop.permute.xlu0 %1414  ;;  %v807_v8 = vpop.permute.xlu1 %806 }
 0x30f   : > { %6628 = vst [vmem:[#allocation109_spill] sm:$0xff] %v5136_v18  ;;  %6629 = vst [vmem:[#allocation110_spill] sm:$0xff] %v5142_v14  ;;  %v2019_v62 = vmul.f32 %v5136_v18, %v6632_v28  ;;  %v1885_v29 = vmul.f32 %v5139_v38, %v6620_v21  ;;  %v1740_v57 = vmul.f32 %v5142_v14, %v6602_v48  ;;  %v6634_v48 = vld [vmem:[#allocation61_spill] sm:$0xff] }
 0x310   : > { %6630 = vst [vmem:[#allocation111_spill] sm:$0xff] %v5145_v10  ;;  %v2359_v60 = vmul.f32 %v4975_v58, %v4931_v17  ;;  %v5160_v52 = vrot.slane %v2406_v24, %v6618_v44  ;;  %v2460_v9 = vsub.f32 %v2380_v0, %v2444_v19  ;;  %v2446_v42 = vmul.f32 %v5130_v36, %v5045_v26  ;;  %v6635_v0 = vld [vmem:[#allocation65_spill] sm:$0xff] }
 0x311   : > { %v2050_v30 = vsub.f32 %v1916_v55, %v2014_v37  ;;  %v2055_v13 = vsub.f32 %v1921_v11, %v2019_v62  ;;  %v1924_v47 = vsub.f32 %v1779_v23, %v1885_v29  ;;  %v1782_v43 = vsub.f32 %v1626_v25, %v1740_v57  ;;  %v6636_v23 = vld [vmem:[#allocation16_spill] sm:$0xff] }
 0x312   : > { %6633 = vst [vmem:[#allocation112_spill] sm:$0xff] %v5160_v52  ;;  %v2448_v5 = vmul.f32 %v5145_v10, %v5045_v26  ;;  %v2282_v15 = vsub.f32 %v2170_v6, %v5073_v2  ;;  %v1573_v24 = vmul.f32 %v6634_v48, %v4567_v53  ;;  %v1243_v19 = vadd.f32 %v4954_v34, %v796_v33  ;;  %v6638_v2 = vld [vmem:[#allocation68_spill] sm:$0xff]  ;;  %v6642_v33 = vld [vmem:[#allocation77_spill] sm:$0xff] }
 0x313   : > { %v2173_v61 = vsub.f32 %v2050_v30, %v2140_v7  ;;  %v2074_v58 = vmul.f32 %v6635_v0, %v2055_v13  ;;  %v1942_v36 = vmul.f32 %v6625_v20, %v1924_v47  ;;  %v1799_v37 = vmul.f32 %v6607_v16, %v1782_v43  ;;  %v6639_v62 = vld [vmem:[#allocation8_spill] sm:$0xff] }
 0x314   : > { %v5177_v25 = vmul.f32 %v6636_v23, %v5164_v32  ;;  %v2383_v11 = vsub.f32 %v2282_v15, %v5084_v45  ;;  %v1732_v7 = vmul.f32 %v6638_v2, %v4681_v51  ;;  %v1618_v6 = vsub.f32 %v1243_v19, %v1573_v24  ;;  %v6645_v15 = vld [vmem:[#allocation89_spill] sm:$0xff]  ;;  %v5215_v2 = vpop.permute.xlu0 %1418 }
 0x315   : > { %v2285_v55 = vsub.f32 %v2173_v61, %v2255_v39  ;;  %v5183_v29 = vrot.slane %v2074_v58, %v6639_v62  ;;  %v5186_v34 = vrot.slane %v1942_v36, %v6627_v12  ;;  %v5189_v57 = vrot.slane %v1799_v37, %v6613_v49  ;;  %v6644_v61 = vld [vmem:[#allocation47_spill] sm:$0xff]  ;;  %v6646_v19 = vld [vmem:[#allocation53_spill] sm:$0xff] }
 0x316   : > { %6637 = vst [vmem:[#allocation16_spill] sm:$0xff] %v5177_v25  ;;  %v1880_v30 = vmul.f32 %v6642_v33, %v4728_v63  ;;  %v5193_v23 = vpop.eup %3872  ;;  %v5195_v45 = vsub.f32 %v2383_v11, %v2446_v42  ;;  %v2017_v39 = vmul.f32 %v6644_v61, %v4780_v22  ;;  %v2143_v58 = vmul.f32 %v6645_v15, %v4849_v46 }
 0x317   : > { %6640 = vst [vmem:[#allocation113_spill] sm:$0xff] %v5183_v29  ;;  %6641 = vst [vmem:[#allocation114_spill] sm:$0xff] %v5189_v57  ;;  %v1774_v24 = vsub.f32 %v1618_v6, %v1732_v7  ;;  %v2145_v36 = vmul.f32 %v5183_v29, %v6646_v19  ;;  %v2476_v37 = vmul.f32 %v5193_v23, %v2460_v9 }
 0x318   : > { %6643 = vst [vmem:[#allocation115_spill] sm:$0xff] %v5193_v23  ;;  %v2022_v16 = vmul.f32 %v5186_v34, %v6632_v28  ;;  %v2386_v10 = vsub.f32 %v2285_v55, %v2359_v60  ;;  %v1888_v42 = vmul.f32 %v5189_v57, %v6620_v21  ;;  %v2258_v11 = vmul.f32 %v4909_v35, %v4893_v27 }
 0x319   : > { %v1919_v61 = vsub.f32 %v1774_v24, %v1880_v30  ;;  %v1576_v7 = vmul.f32 %v4941_v1, %v4567_v53  ;;  %v2178_v6 = vsub.f32 %v2055_v13, %v2145_v36  ;;  %v5213_v15 = vrot.slane %v2476_v37, %v6585_v50 }
 0x31a   : > { %v2058_v54 = vsub.f32 %v1924_v47, %v2022_v16  ;;  %v2464_v33 = vsub.f32 %v2386_v10, %v2448_v5  ;;  %v2477_v60 = vmul.f32 %v5193_v23, %v5195_v45  ;;  %v1927_v55 = vsub.f32 %v1782_v43, %v1888_v42  ;;  %v6648_v43 = vld [vmem:[#allocation9_spill] sm:$0xff] }
 0x31b   : > { %6647 = vst [vmem:[#allocation116_spill] sm:$0xff] %v5213_v15  ;;  %v2053_v21 = vsub.f32 %v1919_v61, %v2017_v39  ;;  %v1245_v48 = vadd.f32 %v5015_v40, %v807_v8  ;;  %v2196_v30 = vmul.f32 %v4807_v41, %v2178_v6  ;;  %v2511_v24 = vmul.f32 %v5213_v15, %v5120_v3 }
 0x31c   : > { %v2075_v13 = vmul.f32 %v6635_v0, %v2058_v54  ;;  %v2478_v36 = vmul.f32 %v5193_v23, %v2464_v33  ;;  %v1943_v16 = vmul.f32 %v6625_v20, %v1927_v55  ;;  %v2362_v10 = vmul.f32 %v5011_v59, %v4931_v17  ;;  %v6658_v59 = vld [vmem:[#allocation54_spill] sm:$0xff] }
 0x31d   : > { %v2176_v47 = vsub.f32 %v2053_v21, %v2143_v58  ;;  %v1621_v5 = vsub.f32 %v1245_v48, %v1576_v7  ;;  %v5229_v61 = vrot.slane %v2196_v30, %v6648_v43  ;;  %v5231_v40 = vsub.f32 %v2460_v9, %v2511_v24  ;;  %v6653_v21 = vld [vmem:[#allocation99_spill] sm:$0xff]  ;;  %v6654_v58 = vld [vmem:[#allocation72_spill] sm:$0xff] }
 0x31e   : > { %v5234_v8 = vrot.slane %v2075_v13, %v6639_v62  ;;  %v2450_v39 = vmul.f32 %v5160_v52, %v5045_v26  ;;  %v5239_v37 = vrot.slane %v2477_v60, %v6585_v50  ;;  %v5242_v42 = vrot.slane %v1943_v16, %v6627_v12  ;;  %v5254_v60 = vpop.permute.xlu0 %1422  ;;  %v6656_v24 = vld [vmem:[#allocation103_spill] sm:$0xff]  ;;  %v6657_v13 = vld [vmem:[#allocation48_spill] sm:$0xff] }
 0x31f   : > { %6649 = vst [vmem:[#allocation117_spill] sm:$0xff] %v5229_v61  ;;  %6650 = vst [vmem:[#allocation118_spill] sm:$0xff] %v5231_v40  ;;  %v2288_v20 = vsub.f32 %v2176_v47, %v2258_v11  ;;  %v1735_v48 = vmul.f32 %v6653_v21, %v4681_v51  ;;  %v2260_v9 = vmul.f32 %v5229_v61, %v6654_v58  ;;  %3874 = vrcp.f32 %v5231_v40 }
 0x320   : > { %6651 = vst [vmem:[#allocation119_spill] sm:$0xff] %v5239_v37  ;;  %6652 = vst [vmem:[#allocation120_spill] sm:$0xff] %v5242_v42  ;;  %v2148_v7 = vmul.f32 %v5234_v8, %v6646_v19  ;;  %v5252_v30 = vrot.slane %v2478_v36, %v6585_v50  ;;  %v1215_v16 = vmul.f32 %v6657_v13, %v6656_v24  ;;  %v6659_v24 = vld [vmem:[#allocation104_spill] sm:$0xff] }
 0x321   : > { %v2025_v11 = vmul.f32 %v5242_v42, %v6632_v28  ;;  %v2389_v47 = vsub.f32 %v2288_v20, %v2362_v10  ;;  %v1777_v21 = vsub.f32 %v1621_v5, %v1735_v48  ;;  %v2290_v52 = vsub.f32 %v2178_v6, %v2260_v9  ;;  %v818_v28 = vpop.permute.xlu1 %817  ;;  %v6660_v20 = vld [vmem:[#allocation92_spill] sm:$0xff]  ;;  %v6662_v9 = vld [vmem:[#allocation10_spill] sm:$0xff] }
 0x322   : > { %6655 = vst [vmem:[#allocation121_spill] sm:$0xff] %v5252_v30  ;;  %v2181_v1 = vsub.f32 %v2058_v54, %v2148_v7  ;;  %v5262_v35 = vmul.f32 %v6658_v59, %v5123_v56  ;;  %v2513_v15 = vmul.f32 %v5239_v37, %v5120_v3  ;;  %v1883_v13 = vmul.f32 %v6659_v24, %v4728_v63  ;;  %v6661_v56 = vld [vmem:[#allocation19_spill] sm:$0xff]  ;;  %v5290_v36 = vpop.permute.xlu0 %1426 }
 0x323   : > { %v2061_v12 = vsub.f32 %v1927_v55, %v2025_v11  ;;  %v2466_v49 = vsub.f32 %v2389_v47, %v2450_v39  ;;  %v2307_v10 = vmul.f32 %v6660_v20, %v2290_v52  ;;  %v2515_v59 = vmul.f32 %v5252_v30, %v5120_v3  ;;  %6664 = vst [vmem:[#allocation48_spill] sm:$0xff] %v5290_v36  ;;  %v6669_v36 = vld [vmem:[#allocation105_spill] sm:$0xff] }
 0x324   : > { %v2197_v54 = vmul.f32 %v4807_v41, %v2181_v1  ;;  %v5276_v6 = vmul.f32 %v6661_v56, %v5164_v32  ;;  %v2020_v39 = vmul.f32 %v5136_v18, %v4780_v22  ;;  %v1922_v48 = vsub.f32 %v1777_v21, %v1883_v13  ;;  %v6666_v21 = vld [vmem:[#allocation98_spill] sm:$0xff] }
 0x325   : > { %v2076_v5 = vmul.f32 %v6635_v0, %v2061_v12  ;;  %v2479_v55 = vmul.f32 %v5193_v23, %v2466_v49  ;;  %v5283_v7 = vrot.slane %v2307_v10, %v6662_v9  ;;  %v2146_v47 = vmul.f32 %v5183_v29, %v4849_v46  ;;  %v6667_v10 = vld [vmem:[#allocation88_spill] sm:$0xff] }
 0x326   : > { %v5286_v11 = vrot.slane %v2197_v54, %v6648_v43  ;;  %v1247_v56 = vadd.f32 %v1215_v16, %v818_v28  ;;  %v2527_v0 = vsub.f32 %v5195_v45, %v2513_v15  ;;  %v1579_v13 = vmul.f32 %v6666_v21, %v4567_v53 }
 0x327   : > { %6663 = vst [vmem:[#allocation103_spill] sm:$0xff] %v5283_v7  ;;  %v5294_v24 = vrot.slane %v2076_v5, %v6639_v62  ;;  %v5297_v18 = vrot.slane %v2479_v55, %v6585_v50  ;;  %v2364_v54 = vmul.f32 %v5283_v7, %v6667_v10  ;;  %v5305_v30 = vsub.f32 %v2464_v33, %v2515_v59 }
 0x328   : > { %v2263_v29 = vmul.f32 %v5286_v11, %v6654_v58  ;;  %v2261_v28 = vmul.f32 %v5229_v61, %v4893_v27  ;;  %v2056_v16 = vsub.f32 %v1922_v48, %v2020_v39  ;;  %v1624_v5 = vsub.f32 %v1247_v56, %v1579_v13  ;;  %v829_v56 = vpop.permute.xlu1 %828 }
 0x329   : > { %6665 = vst [vmem:[#allocation54_spill] sm:$0xff] %v5297_v18  ;;  %v2151_v45 = vmul.f32 %v5294_v24, %v6646_v19  ;;  %v2517_v15 = vmul.f32 %v5297_v18, %v5120_v3  ;;  %v5313_v55 = vpop.eup %3874  ;;  %v2391_v37 = vsub.f32 %v2290_v52, %v2364_v54  ;;  %v1738_v21 = vmul.f32 %v6669_v36, %v4681_v51 }
 0x32a   : > { %6668 = vst [vmem:[#allocation19_spill] sm:$0xff] %v5313_v55  ;;  %v2293_v62 = vsub.f32 %v2181_v1, %v2263_v29  ;;  %v1886_v33 = vmul.f32 %v5139_v38, %v4728_v63  ;;  %v2541_v59 = vmul.f32 %v5313_v55, %v2527_v0  ;;  %v2179_v25 = vsub.f32 %v2056_v16, %v2146_v47  ;;  %v5326_v29 = vpop.permute.xlu0 %1430 }
 0x32b   : > { %v2184_v61 = vsub.f32 %v2061_v12, %v2151_v45  ;;  %v2023_v19 = vmul.f32 %v5186_v34, %v4780_v22  ;;  %v2407_v39 = vmul.f32 %v5064_v31, %v2391_v37  ;;  %v2365_v1 = vmul.f32 %v5283_v7, %v4931_v17 }
 0x32c   : > { %v2308_v48 = vmul.f32 %v6660_v20, %v2293_v62  ;;  %v1780_v52 = vsub.f32 %v1624_v5, %v1738_v21  ;;  %v5329_v13 = vrot.slane %v2541_v59, %v4126_v4  ;;  %v2531_v47 = vsub.f32 %v2466_v49, %v2517_v15  ;;  %v1417_v18 = vpop.permute.xlu1 %1416 }
 0x32d   : > { %v2198_v12 = vmul.f32 %v4807_v41, %v2184_v61  ;;  %v2291_v54 = vsub.f32 %v2179_v25, %v2261_v28  ;;  %v5333_v45 = vrot.slane %v2407_v39, %v6618_v44  ;;  %v2542_v16 = vmul.f32 %v5313_v55, %v5305_v30 }
 0x32e   : > { %v5336_v37 = vrot.slane %v2308_v48, %v6662_v9  ;;  %v1925_v21 = vsub.f32 %v1780_v52, %v1886_v33  ;;  %v2571_v5 = vmul.f32 %v5329_v13, %v5231_v40  ;;  %v2543_v41 = vmul.f32 %v5313_v55, %v2531_v47 }
 0x32f   : > { %6670 = vst [vmem:[#allocation105_spill] sm:$0xff] %v5333_v45  ;;  %v5343_v59 = vrot.slane %v2198_v12, %v6648_v43  ;;  %v2452_v28 = vmul.f32 %v5333_v45, %v5045_v26  ;;  %v2392_v15 = vsub.f32 %v2291_v54, %v2365_v1  ;;  %v2149_v33 = vmul.f32 %v5234_v8, %v4849_v46  ;;  %v6673_v12 = vld [vmem:[#allocation102_spill] sm:$0xff]  ;;  %v5365_v54 = vpop.permute.xlu0 %1434 }
 0x330   : > { %v2367_v25 = vmul.f32 %v5336_v37, %v6667_v10  ;;  %v5354_v39 = vsub.f32 %v2527_v0, %v2571_v5  ;;  %v2264_v52 = vmul.f32 %v5286_v11, %v4893_v27  ;;  %v1582_v49 = vmul.f32 %v6673_v12, %v4567_v53 }
 0x331   : > { %6671 = vst [vmem:[#allocation122_spill] sm:$0xff] %v5343_v59  ;;  %v2266_v48 = vmul.f32 %v5343_v59, %v6654_v58  ;;  %v5363_v43 = vrot.slane %v2542_v16, %v4126_v4  ;;  %v2468_v45 = vsub.f32 %v2392_v15, %v2452_v28  ;;  %v2059_v1 = vsub.f32 %v1925_v21, %v2023_v19 }
 0x332   : > { %6672 = vst [vmem:[#allocation123_spill] sm:$0xff] %v5354_v39  ;;  %v2394_v7 = vsub.f32 %v2293_v62, %v2367_v25  ;;  %3876 = vrcp.f32 %v5354_v39  ;;  %v5369_v5 = vrot.slane %v2543_v41, %v4126_v4  ;;  %v1741_v58 = vmul.f32 %v5142_v14, %v4681_v51  ;;  %v6674_v41 = vld [vmem:[#allocation14_spill] sm:$0xff] }
 0x333   : > { %v2296_v0 = vsub.f32 %v2184_v61, %v2266_v48  ;;  %v2480_v62 = vmul.f32 %v5193_v23, %v2468_v45  ;;  %v2368_v16 = vmul.f32 %v5336_v37, %v4931_v17  ;;  %v2182_v19 = vsub.f32 %v2059_v1, %v2149_v33 }
 0x334   : > { %v2408_v53 = vmul.f32 %v5064_v31, %v2394_v7  ;;  %v1889_v25 = vmul.f32 %v5189_v57, %v4728_v63  ;;  %v1249_v61 = vadd.f32 %v5262_v35, %v829_v56  ;;  %v1541_v28 = vmul.f32 %v6674_v41, %v5164_v32  ;;  %v6679_v57 = vld [vmem:[#allocation16_spill] sm:$0xff] }
 0x335   : > { %v2309_v21 = vmul.f32 %v6660_v20, %v2296_v0  ;;  %v2573_v7 = vmul.f32 %v5363_v43, %v5231_v40  ;;  %v5389_v48 = vrot.slane %v2480_v62, %v6585_v50  ;;  %v2294_v33 = vsub.f32 %v2182_v19, %v2264_v52  ;;  %v5404_v52 = vpop.permute.xlu0 %1438  ;;  %v1421_v19 = vpop.permute.xlu1 %1420 }
 0x336   : > { %v5384_v15 = vrot.slane %v2408_v53, %v6618_v44  ;;  %v2575_v51 = vmul.f32 %v5369_v5, %v5231_v40  ;;  %v1627_v35 = vsub.f32 %v1249_v61, %v1582_v49  ;;  %v5396_v56 = vsub.f32 %v1417_v18, %v1541_v28  ;;  %v6677_v18 = vld [vmem:[#allocation22_spill] sm:$0xff]  ;;  %v6678_v61 = vld [vmem:[#allocation17_spill] sm:$0xff] }
 0x337   : > { %6675 = vst [vmem:[#allocation102_spill] sm:$0xff] %v5389_v48  ;;  %v5392_v1 = vrot.slane %v2309_v21, %v6662_v9  ;;  %v2519_v53 = vmul.f32 %v5389_v48, %v5120_v3  ;;  %v2395_v63 = vsub.f32 %v2294_v33, %v2368_v16  ;;  %v2026_v62 = vmul.f32 %v5242_v42, %v4780_v22 }
 0x338   : > { %v2454_v41 = vmul.f32 %v5384_v15, %v5045_v26  ;;  %v1783_v20 = vsub.f32 %v1627_v35, %v1741_v58  ;;  %v1703_v49 = vmul.f32 %v6677_v18, %v5396_v56  ;;  %v1547_v28 = vmul.f32 %v6678_v61, %v5164_v32 }
 0x339   : > { %6676 = vst [vmem:[#allocation14_spill] sm:$0xff] %v5392_v1  ;;  %v2370_v21 = vmul.f32 %v5392_v1, %v6667_v10  ;;  %v2585_v9 = vsub.f32 %v5305_v30, %v2573_v7  ;;  %v2533_v48 = vsub.f32 %v2468_v45, %v2519_v53  ;;  %v2152_v33 = vmul.f32 %v5294_v24, %v4849_v46  ;;  %v1443_v53 = vpop.permute.xlu0 %1442  ;;  %v6688_v46 = vld [vmem:[#allocation25_spill] sm:$0xff] }
 0x33a   : > { %v2470_v16 = vsub.f32 %v2395_v63, %v2454_v41  ;;  %v1928_v42 = vsub.f32 %v1783_v20, %v1889_v25  ;;  %v6680_v14 = vsub.f32 %v5215_v2, %v6679_v57  ;;  %v1592_v58 = vsub.f32 %v1421_v19, %v1547_v28  ;;  %v6683_v25 = vld [vmem:[#allocation30_spill] sm:$0xff] }
 0x33b   : > { %v2397_v22 = vsub.f32 %v2296_v0, %v2370_v21  ;;  %v5420_v35 = vsub.f32 %v2531_v47, %v2575_v51  ;;  %v2544_v18 = vmul.f32 %v5313_v55, %v2533_v48  ;;  %v2267_v63 = vmul.f32 %v5343_v59, %v4893_v27  ;;  %v6686_v21 = vld [vmem:[#allocation6_spill] sm:$0xff] }
 0x33c   : > { %v5418_v10 = vsub.f32 %v6680_v14, %v1703_v49  ;;  %v2481_v61 = vmul.f32 %v5193_v23, %v2470_v16  ;;  %v5426_v30 = vpop.eup %3876  ;;  %v2371_v20 = vmul.f32 %v5392_v1, %v4931_v17  ;;  %v2062_v2 = vsub.f32 %v1928_v42, %v2026_v62  ;;  %v6682_v14 = vld [vmem:[#allocation24_spill] sm:$0xff]  ;;  %v6685_v62 = vld [vmem:[#allocation98_spill] sm:$0xff] }
 0x33d   : > { %6681 = vst [vmem:[#allocation22_spill] sm:$0xff] %v5426_v30  ;;  %v2409_v45 = vmul.f32 %v5064_v31, %v2397_v22  ;;  %v1706_v57 = vmul.f32 %v6682_v14, %v5396_v56  ;;  %v2597_v51 = vmul.f32 %v5426_v30, %v2585_v9  ;;  %v5435_v47 = vrot.slane %v2544_v18, %v4126_v4 }
 0x33e   : > { %v5438_v0 = vrot.slane %v2481_v61, %v6585_v50  ;;  %v1854_v7 = vmul.f32 %v6683_v25, %v5418_v10  ;;  %v2185_v41 = vsub.f32 %v2062_v2, %v2152_v33  ;;  %v1580_v19 = vmul.f32 %v6685_v62, %v5164_v32 }
 0x33f   : > { %v5443_v22 = vrot.slane %v2409_v45, %v6618_v44  ;;  %v1748_v42 = vsub.f32 %v1592_v58, %v1706_v57  ;;  %v5448_v49 = vrot.slane %v2597_v51, %v6686_v21  ;;  %v2598_v28 = vmul.f32 %v5426_v30, %v5420_v35  ;;  %v6687_v44 = vld [vmem:[#allocation21_spill] sm:$0xff] }
 0x340   : > { %v2577_v18 = vmul.f32 %v5435_v47, %v5231_v40  ;;  %v2521_v61 = vmul.f32 %v5438_v0, %v5120_v3  ;;  %v1556_v45 = vmul.f32 %v6687_v44, %v5164_v32  ;;  %v2297_v58 = vsub.f32 %v2185_v41, %v2267_v63  ;;  %v6689_v44 = vld [vmem:[#allocation35_spill] sm:$0xff] }
 0x341   : > { %6684 = vst [vmem:[#allocation17_spill] sm:$0xff] %v5443_v22  ;;  %v2456_v33 = vmul.f32 %v5443_v22, %v5045_v26  ;;  %v1625_v2 = vsub.f32 %v1443_v53, %v1580_v19  ;;  %v2622_v14 = vmul.f32 %v5448_v49, %v5354_v39  ;;  %v5462_v25 = vsub.f32 %v1748_v42, %v1854_v7  ;;  %v6693_v42 = vld [vmem:[#allocation49_spill] sm:$0xff]  ;;  %v6710_v22 = vld [vmem:[#allocation7_spill] sm:$0xff] }
 0x342   : > { %v2589_v57 = vsub.f32 %v2533_v48, %v2577_v18  ;;  %v2535_v51 = vsub.f32 %v2470_v16, %v2521_v61  ;;  %v2398_v62 = vsub.f32 %v2297_v58, %v2371_v20  ;;  %v1709_v27 = vmul.f32 %v6688_v46, %v5396_v56 }
 0x343   : > { %v1739_v17 = vmul.f32 %v6669_v36, %v5396_v56  ;;  %v1857_v31 = vmul.f32 %v6689_v44, %v5418_v10  ;;  %v5470_v26 = vsub.f32 %v2585_v9, %v2622_v14  ;;  %v5473_v63 = vrot.slane %v2598_v28, %v6686_v21  ;;  %v6697_v44 = vld [vmem:[#allocation34_spill] sm:$0xff] }
 0x344   : > { %v2599_v48 = vmul.f32 %v5426_v30, %v2589_v57  ;;  %v2545_v16 = vmul.f32 %v5313_v55, %v2535_v51  ;;  %v2472_v7 = vsub.f32 %v2398_v62, %v2456_v33  ;;  %v6691_v20 = vsub.f32 %v5254_v60, %v5276_v6  ;;  %v6694_v6 = vld [vmem:[#allocation18_spill] sm:$0xff]  ;;  %v6695_v33 = vld [vmem:[#allocation48_spill] sm:$0xff] }
 0x345   : > { %6690 = vst [vmem:[#allocation16_spill] sm:$0xff] %v5470_v26  ;;  %v1781_v53 = vsub.f32 %v1625_v2, %v1739_v17  ;;  %v1887_v36 = vmul.f32 %v5139_v38, %v5418_v10  ;;  %3878 = vrcp.f32 %v5470_v26  ;;  %v1994_v19 = vmul.f32 %v6693_v42, %v5462_v25  ;;  %v1425_v17 = vpop.permute.xlu1 %1424 }
 0x346   : > { %v1751_v46 = vsub.f32 %v6691_v20, %v1709_v27  ;;  %v5484_v9 = vrot.slane %v2599_v48, %v6686_v21  ;;  %v5487_v41 = vrot.slane %v2545_v16, %v4126_v4  ;;  %v2482_v28 = vmul.f32 %v5193_v23, %v2472_v7  ;;  %v6698_v48 = vld [vmem:[#allocation26_spill] sm:$0xff] }
 0x347   : > { %v1926_v60 = vsub.f32 %v1781_v53, %v1887_v36  ;;  %v2024_v27 = vmul.f32 %v5186_v34, %v5462_v25  ;;  %v1553_v61 = vmul.f32 %v6694_v6, %v5164_v32  ;;  %v1601_v58 = vsub.f32 %v6695_v33, %v1556_v45  ;;  %v6699_v36 = vld [vmem:[#allocation36_spill] sm:$0xff]  ;;  %v6702_v6 = vld [vmem:[#allocation69_spill] sm:$0xff] }
 0x348   : > { %6692 = vst [vmem:[#allocation24_spill] sm:$0xff] %v5484_v9  ;;  %v1896_v18 = vsub.f32 %v1751_v46, %v1857_v31  ;;  %v2579_v38 = vmul.f32 %v5487_v41, %v5231_v40  ;;  %v5500_v2 = vrot.slane %v2482_v28, %v6585_v50  ;;  %v5508_v34 = vmul.f32 %v6697_v44, %v5164_v32  ;;  %v6700_v28 = vld [vmem:[#allocation27_spill] sm:$0xff] }
 0x349   : > { %v5504_v62 = vsub.f32 %v1926_v60, %v2024_v27  ;;  %v1712_v16 = vmul.f32 %v6698_v48, %v5396_v56  ;;  %v1598_v20 = vsub.f32 %v1425_v17, %v1553_v61  ;;  %v2624_v46 = vmul.f32 %v5473_v63, %v5354_v39  ;;  %v6701_v17 = vld [vmem:[#allocation57_spill] sm:$0xff]  ;;  %v1429_v61 = vpop.permute.xlu1 %1428  ;;  %v6703_v48 = vld [vmem:[#allocation28_spill] sm:$0xff] }
 0x34a   : > { %6696 = vst [vmem:[#allocation30_spill] sm:$0xff] %v5500_v2  ;;  %v5502_v14 = vsub.f32 %v1896_v18, %v1994_v19  ;;  %v2591_v31 = vsub.f32 %v2535_v51, %v2579_v38  ;;  %v2626_v50 = vmul.f32 %v5484_v9, %v5354_v39  ;;  %v2523_v45 = vmul.f32 %v5500_v2, %v5120_v3  ;;  %v6749_v9 = vld [vmem:[#allocation78_spill] sm:$0xff] }
 0x34b   : > { %v1860_v42 = vmul.f32 %v6699_v36, %v5418_v10  ;;  %v1754_v19 = vsub.f32 %v1598_v20, %v1712_v16  ;;  %v1715_v18 = vmul.f32 %v6700_v28, %v5396_v56  ;;  %v1997_v38 = vmul.f32 %v6701_v17, %v5462_v25  ;;  %v6704_v20 = vld [vmem:[#allocation38_spill] sm:$0xff]  ;;  %v6705_v28 = vld [vmem:[#allocation33_spill] sm:$0xff] }
 0x34c   : > { %v5520_v51 = vmul.f32 %v5234_v8, %v5502_v14  ;;  %v2600_v53 = vmul.f32 %v5426_v30, %v2591_v31  ;;  %v2537_v60 = vsub.f32 %v2472_v7, %v2523_v45  ;;  %v2123_v8 = vmul.f32 %v6702_v6, %v5502_v14 }
 0x34d   : > { %v1899_v44 = vsub.f32 %v1754_v19, %v1860_v42  ;;  %v1559_v16 = vmul.f32 %v6703_v48, %v5164_v32  ;;  %v1863_v7 = vmul.f32 %v6704_v20, %v5418_v10  ;;  %v2634_v45 = vsub.f32 %v5420_v35, %v2624_v46  ;;  %v6707_v19 = vld [vmem:[#allocation58_spill] sm:$0xff] }
 0x34e   : > { %v5534_v33 = vrot.slane %v2600_v53, %v6686_v21  ;;  %v2546_v36 = vmul.f32 %v5313_v55, %v2537_v60  ;;  %v1718_v17 = vmul.f32 %v6705_v28, %v5396_v56  ;;  %v1757_v27 = vsub.f32 %v1601_v58, %v1715_v18  ;;  %v6709_v46 = vld [vmem:[#allocation70_spill] sm:$0xff] }
 0x34f   : > { %v5544_v6 = vpop.eup %3878  ;;  %v2033_v42 = vsub.f32 %v1899_v44, %v1997_v38  ;;  %v2000_v48 = vmul.f32 %v6707_v19, %v5462_v25  ;;  %v1604_v23 = vsub.f32 %v1429_v61, %v1559_v16  ;;  %v2636_v3 = vsub.f32 %v2589_v57, %v2626_v50  ;;  %v6711_v57 = vld [vmem:[#allocation41_spill] sm:$0xff] }
 0x350   : > { %6706 = vst [vmem:[#allocation98_spill] sm:$0xff] %v5544_v6  ;;  %v2628_v53 = vmul.f32 %v5534_v33, %v5354_v39  ;;  %v2644_v20 = vmul.f32 %v5544_v6, %v2634_v45  ;;  %v5552_v35 = vrot.slane %v2546_v36, %v4126_v4  ;;  %v2126_v28 = vmul.f32 %v6709_v46, %v5502_v14  ;;  %v6712_v16 = vld [vmem:[#allocation61_spill] sm:$0xff] }
 0x351   : > { %v5556_v18 = vsub.f32 %v2033_v42, %v2123_v8  ;;  %v1902_v55 = vsub.f32 %v1757_v27, %v1863_v7  ;;  %v1760_v2 = vsub.f32 %v1604_v23, %v1718_v17  ;;  %v2645_v44 = vmul.f32 %v5544_v6, %v2636_v3  ;;  %v6713_v27 = vld [vmem:[#allocation82_spill] sm:$0xff]  ;;  %v6714_v17 = vld [vmem:[#allocation59_spill] sm:$0xff] }
 0x352   : > { %6708 = vst [vmem:[#allocation6_spill] sm:$0xff] %v5552_v35  ;;  %v2638_v58 = vsub.f32 %v2591_v31, %v2628_v53  ;;  %v5559_v38 = vrot.slane %v2644_v20, %v6710_v22  ;;  %v2581_v61 = vmul.f32 %v5552_v35, %v5231_v40  ;;  %v1866_v4 = vmul.f32 %v6711_v57, %v5418_v10  ;;  %v6715_v20 = vld [vmem:[#allocation68_spill] sm:$0xff]  ;;  %v6716_v57 = vld [vmem:[#allocation73_spill] sm:$0xff]  ;;  %v6727_v40 = vld [vmem:[#allocation62_spill] sm:$0xff] }
 0x353   : > { %v1574_v31 = vmul.f32 %v6712_v16, %v5164_v32  ;;  %v2036_v8 = vsub.f32 %v1902_v55, %v2000_v48  ;;  %v2241_v23 = vmul.f32 %v6713_v27, %v5556_v18  ;;  %v2003_v53 = vmul.f32 %v6714_v17, %v5462_v25 }
 0x354   : > { %v2646_v50 = vmul.f32 %v5544_v6, %v2638_v58  ;;  %v2664_v7 = vmul.f32 %v5559_v38, %v5470_v26  ;;  %v2593_v36 = vsub.f32 %v2537_v60, %v2581_v61  ;;  %v1905_v42 = vsub.f32 %v1760_v2, %v1866_v4 }
 0x355   : > { %v1619_v19 = vsub.f32 %v5404_v52, %v1574_v31  ;;  %v1733_v46 = vmul.f32 %v6715_v20, %v5396_v56  ;;  %v2129_v16 = vmul.f32 %v6716_v57, %v5502_v14  ;;  %v2159_v55 = vsub.f32 %v2036_v8, %v2126_v28  ;;  %v6718_v52 = vld [vmem:[#allocation42_spill] sm:$0xff]  ;;  %v6720_v31 = vld [vmem:[#allocation40_spill] sm:$0xff]  ;;  %v1433_v20 = vpop.permute.xlu1 %1432 }
 0x356   : > { %v5580_v48 = vsub.f32 %v2634_v45, %v2664_v7  ;;  %v5583_v27 = vrot.slane %v2645_v44, %v6710_v22  ;;  %v2601_v60 = vmul.f32 %v5426_v30, %v2593_v36  ;;  %v2039_v61 = vsub.f32 %v1905_v42, %v2003_v53  ;;  %v6722_v53 = vld [vmem:[#allocation37_spill] sm:$0xff] }
 0x357   : > { %v5587_v17 = vrot.slane %v2646_v50, %v6710_v22  ;;  %v5589_v2 = vsub.f32 %v2159_v55, %v2241_v23  ;;  %v1721_v4 = vmul.f32 %v6718_v52, %v5396_v56  ;;  %v1607_v45 = vsub.f32 %v5326_v29, %v5508_v34  ;;  %v6721_v50 = vld [vmem:[#allocation77_spill] sm:$0xff]  ;;  %v6723_v34 = vld [vmem:[#allocation83_spill] sm:$0xff] }
 0x358   : > { %6717 = vst [vmem:[#allocation21_spill] sm:$0xff] %v5583_v27  ;;  %3880 = vrcp.f32 %v5580_v48  ;;  %v5597_v28 = vrot.slane %v2601_v60, %v6686_v21  ;;  %v2162_v44 = vsub.f32 %v2039_v61, %v2129_v16  ;;  %v1568_v8 = vmul.f32 %v6720_v31, %v5164_v32  ;;  %v6725_v55 = vld [vmem:[#allocation5_spill] sm:$0xff]  ;;  %v6726_v61 = vld [vmem:[#allocation43_spill] sm:$0xff] }
 0x359   : > { %v5601_v7 = vsub.f32 %v1619_v19, %v1733_v46  ;;  %v5605_v23 = vmul.f32 %v6721_v50, %v5418_v10  ;;  %v1565_v42 = vmul.f32 %v6722_v53, %v5164_v32  ;;  %v2666_v29 = vmul.f32 %v5583_v27, %v5470_v26  ;;  %v6724_v19 = vld [vmem:[#allocation52_spill] sm:$0xff] }
 0x35a   : > { %6719 = vst [vmem:[#allocation25_spill] sm:$0xff] %v5597_v28  ;;  %v2630_v21 = vmul.f32 %v5597_v28, %v5354_v39  ;;  %v2244_v57 = vmul.f32 %v6723_v34, %v5556_v18  ;;  %v1869_v46 = vmul.f32 %v6724_v19, %v5418_v10  ;;  %v2668_v16 = vmul.f32 %v5587_v17, %v5470_v26  ;;  %v6728_v19 = vld [vmem:[#allocation55_spill] sm:$0xff] }
 0x35b   : > { %v2348_v60 = vmul.f32 %v6725_v55, %v5589_v2  ;;  %v1724_v52 = vmul.f32 %v6726_v61, %v5396_v56  ;;  %v1763_v31 = vsub.f32 %v1607_v45, %v1721_v4  ;;  %v2006_v30 = vmul.f32 %v6727_v40, %v5462_v25  ;;  %v6729_v55 = vld [vmem:[#allocation75_spill] sm:$0xff] }
 0x35c   : > { %v2640_v50 = vsub.f32 %v2593_v36, %v2630_v21  ;;  %v2274_v53 = vsub.f32 %v2162_v44, %v2244_v57  ;;  %v1610_v39 = vsub.f32 %v1433_v20, %v1565_v42  ;;  %v1613_v34 = vsub.f32 %v5365_v54, %v1568_v8  ;;  %v6730_v40 = vld [vmem:[#allocation63_spill] sm:$0xff]  ;;  %v6731_v8 = vld [vmem:[#allocation84_spill] sm:$0xff] }
 0x35d   : > { %v1872_v28 = vmul.f32 %v6728_v19, %v5418_v10  ;;  %v1908_v1 = vsub.f32 %v1763_v31, %v1869_v46  ;;  %v2132_v27 = vmul.f32 %v6729_v55, %v5502_v14  ;;  %v2674_v61 = vsub.f32 %v2636_v3, %v2666_v29  ;;  %v6733_v3 = vld [vmem:[#allocation76_spill] sm:$0xff]  ;;  %v6735_v57 = vld [vmem:[#allocation51_spill] sm:$0xff] }
 0x35e   : > { %v2647_v35 = vmul.f32 %v5544_v6, %v2640_v50  ;;  %v1766_v59 = vsub.f32 %v1610_v39, %v1724_v52  ;;  %v5631_v4 = vsub.f32 %v2638_v58, %v2668_v16  ;;  %v2009_v45 = vmul.f32 %v6730_v40, %v5462_v25  ;;  %v6734_v58 = vld [vmem:[#allocation85_spill] sm:$0xff]  ;;  %v6741_v55 = vld [vmem:[#allocation60_spill] sm:$0xff]  ;;  %v6747_v36 = vld [vmem:[#allocation67_spill] sm:$0xff] }
 0x35f   : > { %v5637_v54 = vsub.f32 %v2274_v53, %v2348_v60  ;;  %v2042_v44 = vsub.f32 %v1908_v1, %v2006_v30  ;;  %v2247_v42 = vmul.f32 %v6731_v8, %v5556_v18  ;;  %v2135_v39 = vmul.f32 %v6733_v3, %v5502_v14  ;;  %v6737_v1 = vld [vmem:[#allocation46_spill] sm:$0xff]  ;;  %v6739_v52 = vld [vmem:[#allocation45_spill] sm:$0xff]  ;;  %v6740_v53 = vld [vmem:[#allocation56_spill] sm:$0xff] }
 0x360   : > { %v1911_v20 = vsub.f32 %v1766_v59, %v1872_v28  ;;  %v5642_v21 = vrot.slane %v2647_v35, %v6710_v22  ;;  %v2250_v29 = vmul.f32 %v6734_v58, %v5556_v18  ;;  %v1727_v46 = vmul.f32 %v6735_v57, %v5396_v56  ;;  %v6738_v59 = vld [vmem:[#allocation94_spill] sm:$0xff] }
 0x361   : > { %v2165_v60 = vsub.f32 %v2042_v44, %v2132_v27  ;;  %v2351_v30 = vmul.f32 %v6737_v1, %v5589_v2  ;;  %v2354_v28 = vmul.f32 %v6738_v59, %v5589_v2  ;;  %v1571_v31 = vmul.f32 %v6739_v52, %v5164_v32  ;;  %v6742_v27 = vld [vmem:[#allocation11_spill] sm:$0xff]  ;;  %v6743_v3 = vld [vmem:[#allocation106_spill] sm:$0xff] }
 0x362   : > { %6732 = vst [vmem:[#allocation35_spill] sm:$0xff] %v5642_v21  ;;  %v5650_v16 = vpop.eup %3880  ;;  %v2045_v22 = vsub.f32 %v1911_v20, %v2009_v45  ;;  %v1730_v19 = vmul.f32 %v6740_v53, %v5396_v56  ;;  %v1875_v40 = vmul.f32 %v6741_v55, %v5418_v10  ;;  %v2443_v44 = vmul.f32 %v6742_v27, %v5637_v54  ;;  %v6744_v45 = vld [vmem:[#allocation8_spill] sm:$0xff]  ;;  %v1437_v53 = vpop.permute.xlu1 %1436 }
 0x363   : > { %6736 = vst [vmem:[#allocation49_spill] sm:$0xff] %v5650_v16  ;;  %v2682_v35 = vmul.f32 %v5650_v16, %v2674_v61  ;;  %v2277_v8 = vsub.f32 %v2165_v60, %v2247_v42  ;;  %v2445_v58 = vmul.f32 %v6743_v3, %v5637_v54  ;;  %v2683_v1 = vmul.f32 %v5650_v16, %v5631_v4  ;;  %v6746_v60 = vld [vmem:[#allocation64_spill] sm:$0xff] }
 0x364   : > { %v2168_v57 = vsub.f32 %v2045_v22, %v2135_v39  ;;  %v2670_v59 = vmul.f32 %v5642_v21, %v5470_v26  ;;  %v1769_v52 = vsub.f32 %v1613_v34, %v1727_v46  ;;  %v1878_v27 = vmul.f32 %v6746_v60, %v5418_v10 }
 0x365   : > { %v5668_v20 = vrot.slane %v2682_v35, %v6744_v45  ;;  %v2378_v55 = vsub.f32 %v2277_v8, %v2351_v30  ;;  %v2012_v3 = vmul.f32 %v6747_v36, %v5462_v25  ;;  %v6748_v35 = vld [vmem:[#allocation71_spill] sm:$0xff]  ;;  %v2138_v26 = vmul.f32 %v6749_v9, %v5502_v14 }
 0x366   : > { %v2280_v42 = vsub.f32 %v2168_v57, %v2250_v29  ;;  %v1914_v22 = vsub.f32 %v1769_v52, %v1875_v40  ;;  %v2015_v6 = vmul.f32 %v6748_v35, %v5462_v25  ;;  %v6750_v29 = vld [vmem:[#allocation79_spill] sm:$0xff]  ;;  %v1616_v8 = vsub.f32 %v1437_v53, %v1571_v31  ;;  %v6751_v40 = vld [vmem:[#allocation86_spill] sm:$0xff]  ;;  %v6754_v31 = vld [vmem:[#allocation96_spill] sm:$0xff] }
 0x367   : > { %6745 = vst [vmem:[#allocation18_spill] sm:$0xff] %v5668_v20  ;;  %v2697_v39 = vmul.f32 %v5668_v20, %v5580_v48  ;;  %v5684_v34 = vsub.f32 %v2378_v55, %v2443_v44  ;;  %v2141_v30 = vmul.f32 %v6750_v29, %v5502_v14  ;;  %v5691_v36 = vrot.slane %v2683_v1, %v6744_v45  ;;  %v6752_v9 = vld [vmem:[#allocation31_spill] sm:$0xff]  ;;  %v6756_v53 = vld [vmem:[#allocation116_spill] sm:$0xff] }
 0x368   : > { %v2381_v46 = vsub.f32 %v2280_v42, %v2354_v28  ;;  %v5693_v60 = vsub.f32 %v2640_v50, %v2670_v59  ;;  %v2253_v52 = vmul.f32 %v6751_v40, %v5556_v18  ;;  %v2048_v35 = vsub.f32 %v1914_v22, %v2012_v3  ;;  %v6753_v28 = vld [vmem:[#allocation95_spill] sm:$0xff] }
 0x369   : > { %v5688_v57 = vsub.f32 %v2674_v61, %v2697_v39  ;;  %v2256_v44 = vmul.f32 %v6752_v9, %v5556_v18  ;;  %v2357_v55 = vmul.f32 %v6753_v28, %v5589_v2  ;;  %v1772_v42 = vsub.f32 %v1616_v8, %v1730_v19  ;;  %v6755_v1 = vld [vmem:[#allocation47_spill] sm:$0xff]  ;;  %v6757_v8 = vld [vmem:[#allocation108_spill] sm:$0xff] }
 0x36a   : > { %v2684_v61 = vmul.f32 %v5650_v16, %v5693_v60  ;;  %v2360_v50 = vmul.f32 %v6754_v31, %v5589_v2  ;;  %v2018_v59 = vmul.f32 %v6755_v1, %v5462_v25  ;;  %v2512_v3 = vmul.f32 %v6756_v53, %v5684_v34  ;;  %v6758_v9 = vld [vmem:[#allocation111_spill] sm:$0xff]  ;;  %v6759_v31 = vld [vmem:[#allocation89_spill] sm:$0xff] }
 0x36b   : > { %3882 = vrcp.f32 %v5688_v57  ;;  %v2461_v39 = vsub.f32 %v2381_v46, %v2445_v58  ;;  %v2171_v22 = vsub.f32 %v2048_v35, %v2138_v26  ;;  %v1917_v29 = vsub.f32 %v1772_v42, %v1878_v27  ;;  %v6760_v1 = vld [vmem:[#allocation119_spill] sm:$0xff]  ;;  %v6761_v58 = vld [vmem:[#allocation121_spill] sm:$0xff] }
 0x36c   : > { %v2699_v19 = vmul.f32 %v5691_v36, %v5580_v48  ;;  %v2447_v40 = vmul.f32 %v6757_v8, %v5637_v54  ;;  %v2449_v28 = vmul.f32 %v6758_v9, %v5637_v54  ;;  %v2144_v16 = vmul.f32 %v6759_v31, %v5502_v14  ;;  %v6763_v53 = vld [vmem:[#allocation91_spill] sm:$0xff] }
 0x36d   : > { %v2283_v21 = vsub.f32 %v2171_v22, %v2253_v52  ;;  %v2514_v20 = vmul.f32 %v6760_v1, %v5684_v34  ;;  %v2516_v26 = vmul.f32 %v6761_v58, %v5684_v34  ;;  %v2051_v27 = vsub.f32 %v1917_v29, %v2015_v6 }
 0x36e   : > { %v5723_v46 = vrot.slane %v2684_v61, %v6744_v45  ;;  %v6762_v35 = vsub.f32 %v5601_v7, %v5605_v23  ;;  %v2259_v8 = vmul.f32 %v6763_v53, %v5556_v18  ;;  %v2265_v52 = vmul.f32 %v5286_v11, %v5556_v18 }
 0x36f   : > { %v5732_v22 = vsub.f32 %v2461_v39, %v2512_v3  ;;  %v2384_v9 = vsub.f32 %v2283_v21, %v2357_v55  ;;  %v2174_v31 = vsub.f32 %v2051_v27, %v2141_v30  ;;  %v2369_v6 = vmul.f32 %v5336_v37, %v5589_v2  ;;  %v6766_v37 = vld [vmem:[#allocation39_spill] sm:$0xff]  ;;  %v6767_v55 = vld [vmem:[#allocation112_spill] sm:$0xff] }
 0x370   : > { %v2054_v42 = vsub.f32 %v6762_v35, %v2018_v59  ;;  %v2705_v45 = vsub.f32 %v5631_v4, %v2699_v19  ;;  %v6764_v7 = vsub.f32 %v5504_v62, %v5520_v51  ;;  %v6765_v59 = vld [vmem:[#allocation97_spill] sm:$0xff]  ;;  %v2455_v21 = vmul.f32 %v5384_v15, %v5637_v54 }
 0x371   : > { %v2363_v29 = vmul.f32 %v6765_v59, %v5589_v2  ;;  %v2572_v11 = vmul.f32 %v5329_v13, %v5732_v22  ;;  %v2463_v3 = vsub.f32 %v2384_v9, %v2447_v40  ;;  %v2286_v39 = vsub.f32 %v2174_v31, %v2256_v44  ;;  %v6768_v13 = vld [vmem:[#allocation99_spill] sm:$0xff]  ;;  %v1441_v44 = vpop.permute.xlu1 %1440  ;;  %v6770_v9 = vld [vmem:[#allocation104_spill] sm:$0xff] }
 0x372   : > { %v2177_v61 = vsub.f32 %v2054_v42, %v2144_v16  ;;  %v2295_v23 = vsub.f32 %v6764_v7, %v2265_v52  ;;  %v1577_v30 = vmul.f32 %v6766_v37, %v5164_v32  ;;  %v2451_v62 = vmul.f32 %v6767_v55, %v5637_v54  ;;  %v6769_v42 = vld [vmem:[#allocation54_spill] sm:$0xff]  ;;  %v6771_v7 = vld [vmem:[#allocation9_spill] sm:$0xff] }
 0x373   : > { %v2701_v51 = vmul.f32 %v5723_v46, %v5580_v48  ;;  %v2528_v19 = vsub.f32 %v2463_v3, %v2514_v20  ;;  %v2387_v1 = vsub.f32 %v2286_v39, %v2360_v50  ;;  %v1736_v40 = vmul.f32 %v6768_v13, %v5396_v56 }
 0x374   : > { %v2289_v4 = vsub.f32 %v2177_v61, %v2259_v8  ;;  %v2396_v16 = vsub.f32 %v2295_v23, %v2369_v6  ;;  %v2574_v15 = vmul.f32 %v5363_v43, %v5732_v22  ;;  %v2518_v53 = vmul.f32 %v6769_v42, %v5684_v34 }
 0x375   : > { %v5754_v58 = vpop.eup %3882  ;;  %v5761_v52 = vsub.f32 %v2528_v19, %v2572_v11  ;;  %v2465_v20 = vsub.f32 %v2387_v1, %v2449_v28  ;;  %v2522_v50 = vmul.f32 %v5438_v0, %v5684_v34  ;;  %v1884_v31 = vmul.f32 %v6770_v9, %v5418_v10  ;;  %v1445_v13 = vpop.permute.xlu1 %1444  ;;  %v6776_v9 = vld [vmem:[#allocation103_spill] sm:$0xff] }
 0x376   : > { %v2390_v27 = vsub.f32 %v2289_v4, %v2363_v29  ;;  %v2471_v35 = vsub.f32 %v2396_v16, %v2455_v21  ;;  %v2711_v8 = vmul.f32 %v5754_v58, %v2705_v45  ;;  %v2576_v43 = vmul.f32 %v5369_v5, %v5732_v22 }
 0x377   : > { %v1622_v61 = vsub.f32 %v1441_v44, %v1577_v30  ;;  %v2623_v59 = vmul.f32 %v5448_v49, %v5761_v52  ;;  %v2530_v29 = vsub.f32 %v2465_v20, %v2516_v26  ;;  %v2580_v28 = vmul.f32 %v5487_v41, %v5732_v22  ;;  %v6772_v26 = vld [vmem:[#allocation109_spill] sm:$0xff] }
 0x378   : > { %v2467_v6 = vsub.f32 %v2390_v27, %v2451_v62  ;;  %v5770_v23 = vrot.slane %v2711_v8, %v6771_v7  ;;  %v2707_v0 = vsub.f32 %v5693_v60, %v2701_v51  ;;  %v2625_v3 = vmul.f32 %v5473_v63, %v5761_v52  ;;  %v6773_v62 = vld [vmem:[#allocation113_spill] sm:$0xff] }
 0x379   : > { %v1778_v39 = vsub.f32 %v1622_v61, %v1736_v40  ;;  %v2586_v21 = vsub.f32 %v2530_v29, %v2574_v15  ;;  %v2536_v37 = vsub.f32 %v2471_v35, %v2522_v50  ;;  %v2629_v30 = vmul.f32 %v5534_v33, %v5761_v52  ;;  %v6774_v27 = vld [vmem:[#allocation117_spill] sm:$0xff] }
 0x37a   : > { %v2532_v11 = vsub.f32 %v2467_v6, %v2518_v53  ;;  %v2721_v5 = vmul.f32 %v5770_v23, %v5688_v57  ;;  %v2712_v49 = vmul.f32 %v5754_v58, %v2707_v0  ;;  %v2021_v41 = vmul.f32 %v6772_v26, %v5462_v25  ;;  %v6777_v6 = vld [vmem:[#allocation114_spill] sm:$0xff] }
 0x37b   : > { %v1923_v60 = vsub.f32 %v1778_v39, %v1884_v31  ;;  %v5788_v55 = vsub.f32 %v2586_v21, %v2623_v59  ;;  %v2592_v63 = vsub.f32 %v2536_v37, %v2580_v28  ;;  %v2147_v51 = vmul.f32 %v6773_v62, %v5502_v14  ;;  %v6778_v59 = vld [vmem:[#allocation105_spill] sm:$0xff]  ;;  %v6780_v21 = vld [vmem:[#allocation102_spill] sm:$0xff] }
 0x37c   : > { %v2588_v4 = vsub.f32 %v2532_v11, %v2576_v43  ;;  %v5786_v16 = vsub.f32 %v2705_v45, %v2721_v5  ;;  %v1583_v33 = vmul.f32 %v6673_v12, %v5164_v32  ;;  %v2720_v15 = vrot.slane %v2712_v49, %v6771_v7  ;;  %v6775_v12 = vld [vmem:[#allocation110_spill] sm:$0xff] }
 0x37d   : > { %v2057_v1 = vsub.f32 %v1923_v60, %v2021_v41  ;;  %v2665_v40 = vmul.f32 %v5559_v38, %v5788_v55  ;;  %v2669_v45 = vmul.f32 %v5587_v17, %v5788_v55  ;;  %v2639_v44 = vsub.f32 %v2592_v63, %v2629_v30 }
 0x37e   : > { %v2635_v19 = vsub.f32 %v2588_v4, %v2625_v3  ;;  %3884 = vrcp.f32 %v5786_v16  ;;  %v2262_v35 = vmul.f32 %v6774_v27, %v5556_v18  ;;  %v1742_v20 = vmul.f32 %v6775_v12, %v5396_v56  ;;  %v6779_v3 = vld [vmem:[#allocation120_spill] sm:$0xff]  ;;  %v6785_v27 = vld [vmem:[#allocation10_spill] sm:$0xff]  ;;  %v6787_v12 = vld [vmem:[#allocation17_spill] sm:$0xff] }
 0x37f   : > { %v2180_v42 = vsub.f32 %v2057_v1, %v2147_v51  ;;  %v2677_v8 = vsub.f32 %v2639_v44, %v2669_v45  ;;  %v1628_v50 = vsub.f32 %v1445_v13, %v1583_v33  ;;  %v2366_v38 = vmul.f32 %v6776_v9, %v5589_v2  ;;  %v6781_v4 = vld [vmem:[#allocation24_spill] sm:$0xff]  ;;  %v6782_v51 = vld [vmem:[#allocation122_spill] sm:$0xff]  ;;  %v6783_v13 = vld [vmem:[#allocation21_spill] sm:$0xff] }
 0x380   : > { %v5802_v53 = vsub.f32 %v2635_v19, %v2665_v40  ;;  %v1890_v43 = vmul.f32 %v6777_v6, %v5418_v10  ;;  %v2723_v7 = vmul.f32 %v2720_v15, %v5688_v57  ;;  %v2453_v29 = vmul.f32 %v6778_v59, %v5637_v54  ;;  %v6784_v45 = vld [vmem:[#allocation14_spill] sm:$0xff] }
 0x381   : > { %v2292_v31 = vsub.f32 %v2180_v42, %v2262_v35  ;;  %v1784_v61 = vsub.f32 %v1628_v50, %v1742_v20  ;;  %v2027_v39 = vmul.f32 %v6779_v3, %v5462_v25  ;;  %v2520_v37 = vmul.f32 %v6780_v21, %v5684_v34  ;;  %v6786_v35 = vld [vmem:[#allocation18_spill] sm:$0xff] }
 0x382   : > { %v2700_v17 = vmul.f32 %v5691_v36, %v5802_v53  ;;  %v2578_v36 = vmul.f32 %v5435_v47, %v5732_v22  ;;  %v2153_v49 = vmul.f32 %v5294_v24, %v5502_v14  ;;  %v2727_v41 = vsub.f32 %v2707_v0, %v2723_v7  ;;  %v6788_v50 = vld [vmem:[#allocation30_spill] sm:$0xff] }
 0x383   : > { %v2393_v28 = vsub.f32 %v2292_v31, %v2366_v38  ;;  %v1929_v5 = vsub.f32 %v1784_v61, %v1890_v43  ;;  %v2627_v60 = vmul.f32 %v6781_v4, %v5761_v52  ;;  %v2268_v19 = vmul.f32 %v6782_v51, %v5556_v18  ;;  %v6789_v6 = vld [vmem:[#allocation6_spill] sm:$0xff] }
 0x384   : > { %v2706_v11 = vsub.f32 %v2677_v8, %v2700_v17  ;;  %v2667_v40 = vmul.f32 %v6783_v13, %v5788_v55  ;;  %v2372_v44 = vmul.f32 %v6784_v45, %v5589_v2  ;;  %v2698_v42 = vmul.f32 %v6786_v35, %v5802_v53 }
 0x385   : > { %v2469_v30 = vsub.f32 %v2393_v28, %v2453_v29  ;;  %v2063_v26 = vsub.f32 %v1929_v5, %v2027_v39  ;;  %v2457_v20 = vmul.f32 %v6787_v12, %v5637_v54  ;;  %v2524_v9 = vmul.f32 %v6788_v50, %v5684_v34  ;;  %v6790_v29 = vld [vmem:[#allocation25_spill] sm:$0xff]  ;;  %v6791_v5 = vld [vmem:[#allocation35_spill] sm:$0xff] }
 0x386   : > { %v2582_v43 = vmul.f32 %v6789_v6, %v5732_v22  ;;  %v2631_v28 = vmul.f32 %v6790_v29, %v5761_v52  ;;  %v2671_v21 = vmul.f32 %v6791_v5, %v5788_v55  ;;  %v2772_v35 = vrot.slane %v5754_v58, 5  ;;  %v6792_v58 = vld [vmem:[#allocation49_spill] sm:$0xff] }
 0x387   : > { %v2534_v63 = vsub.f32 %v2469_v30, %v2520_v37  ;;  %v2186_v1 = vsub.f32 %v2063_v26, %v2153_v49  ;;  %v2702_v30 = vmul.f32 %v5723_v46, %v5802_v53 }
 0x388   : > { %v3885_v62 = vpop.eup %3884 }
 0x389   : > { %v2731_v33 = vmul.f32 %v3885_v62, %v2727_v41  ;;  %v2590_v47 = vsub.f32 %v2534_v63, %v2578_v36  ;;  %v2298_v24 = vsub.f32 %v2186_v1, %v2268_v19 }
 0x38b   : > { %v2735_v0 = vrot.slane %v2731_v33, %v6785_v27  ;;  %v2637_v8 = vsub.f32 %v2590_v47, %v2627_v60  ;;  %v2399_v38 = vsub.f32 %v2298_v24, %v2372_v44 }
 0x38d   : > { %v2736_v31 = vmul.f32 %v2735_v0, %v5786_v16  ;;  %v2675_v17 = vsub.f32 %v2637_v8, %v2667_v40  ;;  %v2473_v61 = vsub.f32 %v2399_v38, %v2457_v20 }
 0x38f   : > { %v2738_v7 = vsub.f32 %v2727_v41, %v2736_v31  ;;  %v2704_v59 = vsub.f32 %v2675_v17, %v2698_v42  ;;  %v2538_v3 = vsub.f32 %v2473_v61, %v2524_v9  ;;  %v2794_v17 = vrot.slane %v6792_v58, 4 }
 0x391   : > { %3886 = vrcp.f32 %v2738_v7  ;;  %v2722_v39 = vmul.f32 %v5770_v23, %v2704_v59  ;;  %v2594_v37 = vsub.f32 %v2538_v3, %v2582_v43  ;;  %v2724_v26 = vmul.f32 %v2720_v15, %v2704_v59  ;;  %v6793_v7 = vld [vmem:[#allocation16_spill] sm:$0xff] }
 0x393   : > { %v2726_v36 = vsub.f32 %v2706_v11, %v2722_v39  ;;  %v2641_v49 = vsub.f32 %v2594_v37, %v2631_v28  ;;  %v2755_v11 = vrot.slane %v3885_v62, 6 }
 0x395   : > { %v2679_v4 = vsub.f32 %v2641_v49, %v2671_v21  ;;  %v2737_v41 = vmul.f32 %v2735_v0, %v2726_v36  ;;  %v6794_v49 = vld [vmem:[#allocation98_spill] sm:$0xff] }
 0x397   : > { %v2708_v60 = vsub.f32 %v2679_v4, %v2702_v30 }
 0x399   : > { %v2728_v63 = vsub.f32 %v2708_v60, %v2724_v26  ;;  %v2821_v26 = vrot.slane %v6794_v49, 3  ;;  %v6795_v60 = vld [vmem:[#allocation123_spill] sm:$0xff] }
 0x39b   : > { %v3887_v51 = vpop.eup %3886  ;;  %v2739_v1 = vsub.f32 %v2728_v63, %v2737_v41 }
 0x39c   : > { %v2743_v19 = vrot.slane %v3887_v51, 7 }
 0x39e   : > { %v2745_v33 = vmul.f32 %v2743_v19, %v2739_v1 }
 0x3a0   : > { %v5848_v13 = vrot.slane %v2745_v33, 1 }
 0x3a2   : > { %v2749_v23 = vmul.f32 %v5848_v13, %v5786_v16  ;;  %v2766_v44 = vmul.f32 %v5848_v13, %v5688_v57  ;;  %v2788_v50 = vmul.f32 %v5848_v13, %v5580_v48  ;;  %v2815_v39 = vmul.f32 %v5848_v13, %v6793_v7 }
 0x3a4   : > { %v2751_v40 = vrot.slane %v2749_v23, 7  ;;  %v2768_v0 = vrot.slane %v2766_v44, 7  ;;  %v2790_v31 = vrot.slane %v2788_v50, 7 }
 0x3a6   : > { %v2753_v47 = vsub.f32 %v2726_v36, %v2751_v40  ;;  %v2817_v36 = vrot.slane %v2815_v39, 7 }
 0x3a8   : > { %v2757_v45 = vmul.f32 %v2755_v11, %v2753_v47  ;;  %v2847_v47 = vmul.f32 %v5848_v13, %v6795_v60 }
 0x3aa   : > { %v5852_v46 = vrot.slane %v2757_v45, 2 }
 0x3ac   : > { %v2761_v15 = vmul.f32 %v5852_v46, %v5688_v57  ;;  %v2783_v12 = vmul.f32 %v5852_v46, %v5580_v48  ;;  %v2842_v23 = vmul.f32 %v5852_v46, %v6795_v60 }
 0x3ae   : > { %v2763_v24 = vrot.slane %v2761_v15, 6  ;;  %v2785_v9 = vrot.slane %v2783_v12, 6  ;;  %v2844_v15 = vrot.slane %v2842_v23, 6 }
 0x3b0   : > { %v2765_v27 = vsub.f32 %v2704_v59, %v2763_v24  ;;  %v2849_v24 = vrot.slane %v2847_v47, 7 }
 0x3b2   : > { %v2770_v42 = vsub.f32 %v2765_v27, %v2768_v0  ;;  %v6796_v0 = vld [vmem:[#allocation22_spill] sm:$0xff] }
 0x3b4   : > { %v2774_v8 = vmul.f32 %v2772_v35, %v2770_v42  ;;  %v2853_v35 = vrot.slane %v6796_v0, 2  ;;  %v6801_v0 = vld [vmem:[#allocation100_spill] sm:$0xff] }
 0x3b6   : > { %v5859_v16 = vrot.slane %v2774_v8, 3 }
 0x3b8   : > { %v2778_v62 = vmul.f32 %v5859_v16, %v5580_v48  ;;  %v2805_v29 = vmul.f32 %v5859_v16, %v6793_v7  ;;  %v2810_v48 = vmul.f32 %v5852_v46, %v6793_v7  ;;  %v2837_v19 = vmul.f32 %v5859_v16, %v6795_v60 }
 0x3ba   : > { %v2780_v20 = vrot.slane %v2778_v62, 5  ;;  %v2807_v3 = vrot.slane %v2805_v29, 5  ;;  %v2812_v21 = vrot.slane %v2810_v48, 6  ;;  %v2839_v11 = vrot.slane %v2837_v19, 5 }
 0x3bc   : > { %v2782_v57 = vsub.f32 %v5802_v53, %v2780_v20 }
 0x3be   : > { %v2787_v38 = vsub.f32 %v2782_v57, %v2785_v9 }
 0x3c0   : > { %v2792_v6 = vsub.f32 %v2787_v38, %v2790_v31 }
 0x3c2   : > { %v2796_v43 = vmul.f32 %v2794_v17, %v2792_v6 }
 0x3c4   : > { %v5869_v61 = vrot.slane %v2796_v43, 4 }
 0x3c6   : > { %v2800_v59 = vmul.f32 %v5869_v61, %v6793_v7 }
 0x3c8   : > { %v2802_v28 = vrot.slane %v2800_v59, 4 }
 0x3ca   : > { %v2804_v53 = vsub.f32 %v5788_v55, %v2802_v28  ;;  %v2832_v55 = vmul.f32 %v5869_v61, %v6795_v60 }
 0x3cc   : > { %v2809_v5 = vsub.f32 %v2804_v53, %v2807_v3  ;;  %v2834_v33 = vrot.slane %v2832_v55, 4 }
 0x3ce   : > { %v2814_v37 = vsub.f32 %v2809_v5, %v2812_v21  ;;  %v6799_v21 = vld [vmem:[#allocation107_spill] sm:$0xff] }
 0x3d0   : > { %v2819_v30 = vsub.f32 %v2814_v37, %v2817_v36 }
 0x3d2   : > { %v2823_v4 = vmul.f32 %v2821_v26, %v2819_v30 }
 0x3d4   : > { %v5881_v41 = vrot.slane %v2823_v4, 5 }
 0x3d6   : > { %v2827_v63 = vmul.f32 %v5881_v41, %v6795_v60  ;;  %v2906_v49 = vmul.f32 %v5881_v41, %v6799_v21  ;;  %v2911_v60 = vmul.f32 %v5869_v61, %v6799_v21 }
 0x3d8   : > { %v2829_v51 = vrot.slane %v2827_v63, 3  ;;  %v2908_v55 = vrot.slane %v2906_v49, 3 }
 0x3da   : > { %v2831_v1 = vsub.f32 %v5761_v52, %v2829_v51  ;;  %v6797_v52 = vld [vmem:[#allocation118_spill] sm:$0xff]  ;;  %v2916_v51 = vmul.f32 %v5859_v16, %v6799_v21 }
 0x3db   : > { %v2864_v12 = vmul.f32 %v5881_v41, %v6797_v52  ;;  %v2869_v50 = vmul.f32 %v5869_v61, %v6797_v52  ;;  %v2874_v38 = vmul.f32 %v5859_v16, %v6797_v52  ;;  %v2879_v17 = vmul.f32 %v5852_v46, %v6797_v52 }
 0x3dc   : > { %v2836_v40 = vsub.f32 %v2831_v1, %v2834_v33  ;;  %v2884_v7 = vmul.f32 %v5848_v13, %v6797_v52  ;;  %v2913_v1 = vrot.slane %v2911_v60, 4  ;;  %v2921_v33 = vmul.f32 %v5852_v46, %v6799_v21 }
 0x3dd   : > { %v2866_v9 = vrot.slane %v2864_v12, 3  ;;  %v2871_v58 = vrot.slane %v2869_v50, 4  ;;  %v2876_v43 = vrot.slane %v2874_v38, 5  ;;  %v2881_v29 = vrot.slane %v2879_v17, 6 }
 0x3de   : > { %v2841_v45 = vsub.f32 %v2836_v40, %v2839_v11  ;;  %v2886_v48 = vrot.slane %v2884_v7, 7  ;;  %v2918_v40 = vrot.slane %v2916_v51, 5  ;;  %v2926_v11 = vmul.f32 %v5848_v13, %v6799_v21 }
 0x3df   : > { %v2923_v47 = vrot.slane %v2921_v33, 6 }
 0x3e0   : > { %v2846_v44 = vsub.f32 %v2841_v45, %v2844_v15  ;;  %v2928_v15 = vrot.slane %v2926_v11, 7 }
 0x3e2   : > { %v2851_v27 = vsub.f32 %v2846_v44, %v2849_v24  ;;  %v6800_v24 = vld [vmem:[#allocation115_spill] sm:$0xff] }
 0x3e4   : > { %v2855_v42 = vmul.f32 %v2853_v35, %v2851_v27 }
 0x3e6   : > { %v5895_v8 = vrot.slane %v2855_v42, 6 }
 0x3e8   : > { %v2859_v62 = vmul.f32 %v5895_v8, %v6797_v52  ;;  %v2901_v36 = vmul.f32 %v5895_v8, %v6799_v21  ;;  %v2939_v52 = vmul.f32 %v5895_v8, %v6801_v0 }
 0x3ea   : > { %v2861_v20 = vrot.slane %v2859_v62, 2  ;;  %v2903_v4 = vrot.slane %v2901_v36, 2  ;;  %v6803_v36 = vld [vmem:[#allocation88_spill] sm:$0xff] }
 0x3ec   : > { %v2863_v57 = vsub.f32 %v5732_v22, %v2861_v20  ;;  %v6798_v22 = vld [vmem:[#allocation19_spill] sm:$0xff]  ;;  %v2944_v20 = vmul.f32 %v5881_v41, %v6801_v0 }
 0x3ed   : > { %v2890_v3 = vrot.slane %v6798_v22, 1 }
 0x3ee   : > { %v2868_v31 = vsub.f32 %v2863_v57, %v2866_v9  ;;  %v2941_v57 = vrot.slane %v2939_v52, 2  ;;  %v2949_v9 = vmul.f32 %v5869_v61, %v6801_v0 }
 0x3f0   : > { %v2873_v6 = vsub.f32 %v2868_v31, %v2871_v58  ;;  %v2946_v31 = vrot.slane %v2944_v20, 3  ;;  %v2954_v58 = vmul.f32 %v5859_v16, %v6801_v0  ;;  %v6805_v20 = vld [vmem:[#allocation92_spill] sm:$0xff] }
 0x3f2   : > { %v2878_v59 = vsub.f32 %v2873_v6, %v2876_v43  ;;  %v2951_v6 = vrot.slane %v2949_v9, 4  ;;  %v2959_v43 = vmul.f32 %v5852_v46, %v6801_v0  ;;  %v2956_v7 = vrot.slane %v2954_v58, 5 }
 0x3f4   : > { %v2883_v28 = vsub.f32 %v2878_v59, %v2881_v29  ;;  %v2964_v59 = vmul.f32 %v5848_v13, %v6801_v0 }
 0x3f6   : > { %v2888_v53 = vsub.f32 %v2883_v28, %v2886_v48  ;;  %v2961_v28 = vrot.slane %v2959_v43, 6 }
 0x3f8   : > { %v2892_v39 = vmul.f32 %v2890_v3, %v2888_v53  ;;  %v2966_v53 = vrot.slane %v2964_v59, 7  ;;  %v6802_v3 = vld [vmem:[#allocation101_spill] sm:$0xff] }
 0x3fa   : > { %v5911_v5 = vrot.slane %v2892_v39, 7  ;;  %v2970_v39 = vrot.slane %v6802_v3, 7 }
 0x3fc   : > { %v2896_v37 = vmul.f32 %v5911_v5, %v6799_v21  ;;  %v2934_v35 = vmul.f32 %v5911_v5, %v6801_v0 }
 0x3fe   : > { %v2898_v30 = vrot.slane %v2896_v37, 1  ;;  %v2936_v12 = vrot.slane %v2934_v35, 1 }
 0x400   : > { %v2900_v26 = vsub.f32 %v5684_v34, %v2898_v30 }
 0x402   : > { %v2905_v63 = vsub.f32 %v2900_v26, %v2903_v4  ;;  %v6804_v26 = vld [vmem:[#allocation93_spill] sm:$0xff] }
 0x403   : > { %v2983_v4 = vmul.f32 %v5911_v5, %v6804_v26 }
 0x404   : > { %v2910_v19 = vsub.f32 %v2905_v63, %v2908_v55  ;;  %v2988_v55 = vmul.f32 %v5895_v8, %v6804_v26 }
 0x406   : > { %v2915_v23 = vsub.f32 %v2910_v19, %v2913_v1  ;;  %v2985_v19 = vrot.slane %v2983_v4, 1  ;;  %v2993_v1 = vmul.f32 %v5881_v41, %v6804_v26 }
 0x408   : > { %v2920_v34 = vsub.f32 %v2915_v23, %v2918_v40  ;;  %v2990_v23 = vrot.slane %v2988_v55, 2  ;;  %v2998_v40 = vmul.f32 %v5869_v61, %v6804_v26 }
 0x40a   : > { %v2925_v45 = vsub.f32 %v2920_v34, %v2923_v47  ;;  %v2995_v34 = vrot.slane %v2993_v1, 3 }
 0x40c   : > { %v2930_v44 = vsub.f32 %v2925_v45, %v2928_v15  ;;  %v3000_v45 = vrot.slane %v2998_v40, 4  ;;  %v3008_v15 = vmul.f32 %v5852_v46, %v6804_v26  ;;  %v6808_v40 = vld [vmem:[#allocation81_spill] sm:$0xff] }
 0x40e   : > { %v5929_v27 = vmul.f32 %v6800_v24, %v2930_v44 }
 0x410   : > { %v2932_v42 = vmul.f32 %v5929_v27, %v6801_v0  ;;  %v2981_v63 = vmul.f32 %v5929_v27, %v6804_v26  ;;  %v3013_v0 = vmul.f32 %v5848_v13, %v6804_v26 }
 0x412   : > { %v2933_v62 = vsub.f32 %v5637_v54, %v2932_v42  ;;  %v3010_v42 = vrot.slane %v3008_v15, 6 }
 0x414   : > { %v2938_v50 = vsub.f32 %v2933_v62, %v2936_v12  ;;  %v3015_v62 = vrot.slane %v3013_v0, 7 }
 0x416   : > { %v2943_v38 = vsub.f32 %v2938_v50, %v2941_v57  ;;  %v3019_v50 = vrot.slane %v6805_v20, 6 }
 0x418   : > { %v2948_v17 = vsub.f32 %v2943_v38, %v2946_v31  ;;  %v6806_v38 = vld [vmem:[#allocation72_spill] sm:$0xff] }
 0x41a   : > { %v2953_v54 = vsub.f32 %v2948_v17, %v2951_v6 }
 0x41c   : > { %v2958_v29 = vsub.f32 %v2953_v54, %v2956_v7  ;;  %v6807_v54 = vld [vmem:[#allocation90_spill] sm:$0xff] }
 0x41d   : > { %v3037_v7 = vmul.f32 %v5911_v5, %v6807_v54  ;;  %v3062_v4 = vmul.f32 %v5852_v46, %v6807_v54  ;;  %v3067_v55 = vmul.f32 %v5848_v13, %v6807_v54 }
 0x41e   : > { %v2963_v48 = vsub.f32 %v2958_v29, %v2961_v28  ;;  %v3035_v29 = vmul.f32 %v5929_v27, %v6807_v54  ;;  %v3042_v28 = vmul.f32 %v5895_v8, %v6807_v54 }
 0x420   : > { %v2968_v22 = vsub.f32 %v2963_v48, %v2966_v53  ;;  %v3039_v53 = vrot.slane %v3037_v7, 1 }
 0x422   : > { %v2972_v21 = vmul.f32 %v2970_v39, %v2968_v22  ;;  %v3047_v22 = vmul.f32 %v5881_v41, %v6807_v54  ;;  %v3044_v39 = vrot.slane %v3042_v28, 2 }
 0x424   : > { %v5949_v37 = vrot.slane %v2972_v21, 1 }
 0x426   : > { %v2976_v30 = vmul.f32 %v5949_v37, %v6803_v36  ;;  %v3030_v58 = vmul.f32 %v5949_v37, %v6806_v38  ;;  %v3049_v36 = vrot.slane %v3047_v22, 3 }
 0x428   : > { %v2978_v49 = vrot.slane %v2976_v30, 7  ;;  %v3032_v43 = vrot.slane %v3030_v58, 7  ;;  %v3057_v30 = vmul.f32 %v5859_v16, %v6807_v54 }
 0x42a   : > { %v2980_v60 = vsub.f32 %v5589_v2, %v2978_v49  ;;  %v3003_v2 = vmul.f32 %v5859_v16, %v6804_v26 }
 0x42c   : > { %v2982_v51 = vsub.f32 %v2980_v60, %v2981_v63  ;;  %v3005_v24 = vrot.slane %v3003_v2, 5  ;;  %v3059_v63 = vrot.slane %v3057_v30, 5  ;;  %v6811_v30 = vld [vmem:[#allocation65_spill] sm:$0xff] }
 0x42e   : > { %v2987_v33 = vsub.f32 %v2982_v51, %v2985_v19  ;;  %v3064_v19 = vrot.slane %v3062_v4, 6 }
 0x430   : > { %v2992_v11 = vsub.f32 %v2987_v33, %v2990_v23  ;;  %v3069_v33 = vrot.slane %v3067_v55, 7 }
 0x432   : > { %v2997_v47 = vsub.f32 %v2992_v11, %v2995_v34  ;;  %v3073_v11 = vrot.slane %v6808_v40, 5 }
 0x434   : > { %v3002_v44 = vsub.f32 %v2997_v47, %v3000_v45  ;;  %v6809_v47 = vld [vmem:[#allocation53_spill] sm:$0xff] }
 0x436   : > { %v3007_v35 = vsub.f32 %v3002_v44, %v3005_v24  ;;  %v3089_v24 = vmul.f32 %v5949_v37, %v6809_v47 }
 0x438   : > { %v3012_v52 = vsub.f32 %v3007_v35, %v3010_v42 }
 0x43a   : > { %v3017_v12 = vsub.f32 %v3012_v52, %v3015_v62  ;;  %v3091_v52 = vrot.slane %v3089_v24, 7  ;;  %v6810_v62 = vld [vmem:[#allocation87_spill] sm:$0xff] }
 0x43b   : > { %v3106_v58 = vmul.f32 %v5881_v41, %v6810_v62  ;;  %v3116_v7 = vmul.f32 %v5859_v16, %v6810_v62  ;;  %v3121_v28 = vmul.f32 %v5852_v46, %v6810_v62  ;;  %v3126_v22 = vmul.f32 %v5848_v13, %v6810_v62 }
 0x43c   : > { %v3021_v57 = vmul.f32 %v3019_v50, %v3017_v12  ;;  %v3096_v12 = vmul.f32 %v5911_v5, %v6810_v62  ;;  %v3094_v50 = vmul.f32 %v5929_v27, %v6810_v62 }
 0x43e   : > { %v5971_v9 = vrot.slane %v3021_v57, 2  ;;  %v3101_v57 = vmul.f32 %v5895_v8, %v6810_v62 }
 0x440   : > { %v3025_v31 = vmul.f32 %v5971_v9, %v6806_v38  ;;  %v3084_v15 = vmul.f32 %v5971_v9, %v6809_v47 }
 0x442   : > { %v3027_v17 = vrot.slane %v3025_v31, 6  ;;  %v3086_v35 = vrot.slane %v3084_v15, 6  ;;  %v3098_v31 = vrot.slane %v3096_v12, 1 }
 0x444   : > { %v3029_v6 = vsub.f32 %v5556_v18, %v3027_v17  ;;  %v3052_v18 = vmul.f32 %v5869_v61, %v6807_v54  ;;  %v3108_v54 = vrot.slane %v3106_v58, 3 }
 0x446   : > { %v3034_v59 = vsub.f32 %v3029_v6, %v3032_v43  ;;  %v3054_v26 = vrot.slane %v3052_v18, 4  ;;  %v3111_v6 = vmul.f32 %v5869_v61, %v6810_v62 }
 0x448   : > { %v3036_v48 = vsub.f32 %v3034_v59, %v3035_v29  ;;  %v3113_v29 = vrot.slane %v3111_v6, 4 }
 0x44a   : > { %v3041_v3 = vsub.f32 %v3036_v48, %v3039_v53  ;;  %v3118_v53 = vrot.slane %v3116_v7, 5 }
 0x44c   : > { %v3046_v21 = vsub.f32 %v3041_v3, %v3044_v39  ;;  %v3123_v39 = vrot.slane %v3121_v28, 6 }
 0x44e   : > { %v3051_v49 = vsub.f32 %v3046_v21, %v3049_v36  ;;  %v3128_v21 = vrot.slane %v3126_v22, 7 }
 0x450   : > { %v3056_v60 = vsub.f32 %v3051_v49, %v3054_v26  ;;  %v3132_v49 = vrot.slane %v6811_v30, 4 }
 0x452   : > { %v3061_v51 = vsub.f32 %v3056_v60, %v3059_v63  ;;  %v6812_v60 = vld [vmem:[#allocation32_spill] sm:$0xff] }
 0x454   : > { %v3066_v1 = vsub.f32 %v3061_v51, %v3064_v19  ;;  %v3148_v19 = vmul.f32 %v5971_v9, %v6812_v60 }
 0x456   : > { %v3071_v23 = vsub.f32 %v3066_v1, %v3069_v33 }
 0x458   : > { %v3075_v34 = vmul.f32 %v3073_v11, %v3071_v23  ;;  %v3153_v23 = vmul.f32 %v5949_v37, %v6812_v60  ;;  %v3150_v11 = vrot.slane %v3148_v19, 6 }
 0x45a   : > { %v5995_v2 = vrot.slane %v3075_v34, 3  ;;  %v6813_v34 = vld [vmem:[#allocation80_spill] sm:$0xff]  ;;  %v3155_v15 = vrot.slane %v3153_v23, 7 }
 0x45b   : > { %v3170_v12 = vmul.f32 %v5881_v41, %v6813_v34 }
 0x45c   : > { %v3079_v45 = vmul.f32 %v5995_v2, %v6809_v47  ;;  %v3143_v55 = vmul.f32 %v5995_v2, %v6812_v60  ;;  %v3160_v47 = vmul.f32 %v5911_v5, %v6813_v34 }
 0x45d   : > { %v3172_v6 = vrot.slane %v3170_v12, 3 }
 0x45e   : > { %v3081_v44 = vrot.slane %v3079_v45, 5  ;;  %v3145_v33 = vrot.slane %v3143_v55, 5 }
 0x460   : > { %v3083_v0 = vsub.f32 %v5502_v14, %v3081_v44  ;;  %v3103_v14 = vrot.slane %v3101_v57, 2  ;;  %v3165_v44 = vmul.f32 %v5895_v8, %v6813_v34 }
 0x462   : > { %v3088_v42 = vsub.f32 %v3083_v0, %v3086_v35  ;;  %v3158_v0 = vmul.f32 %v5929_v27, %v6813_v34 }
 0x464   : > { %v3093_v20 = vsub.f32 %v3088_v42, %v3091_v52  ;;  %v3162_v42 = vrot.slane %v3160_v47, 1 }
 0x466   : > { %v3095_v38 = vsub.f32 %v3093_v20, %v3094_v50  ;;  %v3175_v50 = vmul.f32 %v5869_v61, %v6813_v34 }
 0x468   : > { %v3100_v17 = vsub.f32 %v3095_v38, %v3098_v31  ;;  %v3167_v31 = vrot.slane %v3165_v44, 2  ;;  %v3177_v7 = vrot.slane %v3175_v50, 4  ;;  %v6816_v44 = vld [vmem:[#allocation74_spill] sm:$0xff] }
 0x46a   : > { %v3105_v43 = vsub.f32 %v3100_v17, %v3103_v14 }
 0x46c   : > { %v3110_v59 = vsub.f32 %v3105_v43, %v3108_v54  ;;  %v3180_v43 = vmul.f32 %v5859_v16, %v6813_v34 }
 0x46e   : > { %v3115_v48 = vsub.f32 %v3110_v59, %v3113_v29  ;;  %v3185_v59 = vmul.f32 %v5852_v46, %v6813_v34  ;;  %v3182_v28 = vrot.slane %v3180_v43, 5  ;;  %v3259_v43 = vmul.f32 %v5848_v13, %v6816_v44 }
 0x470   : > { %v3120_v3 = vsub.f32 %v3115_v48, %v3118_v53  ;;  %v3190_v48 = vmul.f32 %v5848_v13, %v6813_v34  ;;  %v3187_v22 = vrot.slane %v3185_v59, 6 }
 0x472   : > { %v3125_v18 = vsub.f32 %v3120_v3, %v3123_v39  ;;  %v3192_v39 = vrot.slane %v3190_v48, 7  ;;  %v6817_v48 = vld [vmem:[#allocation29_spill] sm:$0xff] }
 0x474   : > { %v3130_v36 = vsub.f32 %v3125_v18, %v3128_v21  ;;  %v6814_v21 = vld [vmem:[#allocation44_spill] sm:$0xff] }
 0x476   : > { %v3134_v26 = vmul.f32 %v3132_v49, %v3130_v36  ;;  %v3196_v36 = vrot.slane %v6814_v21, 3 }
 0x478   : > { %v6021_v4 = vrot.slane %v3134_v26, 4  ;;  %v6815_v26 = vld [vmem:[#allocation23_spill] sm:$0xff] }
 0x47a   : > { %v3138_v63 = vmul.f32 %v6021_v4, %v6812_v60 }
 0x47c   : > { %v3140_v51 = vrot.slane %v3138_v63, 4  ;;  %v3207_v63 = vmul.f32 %v6021_v4, %v6815_v26 }
 0x47e   : > { %v3142_v1 = vsub.f32 %v5462_v25, %v3140_v51  ;;  %v3432_v25 = vsel %vm3418_vm4, %v5929_v27, %v5911_v5  ;;  %v3212_v51 = vmul.f32 %v5995_v2, %v6815_v26 }
 0x47f   : > { %v3433_v35 = vsel %vm3420_vm5, %v3432_v25, %v5895_v8  ;;  %v3229_v25 = vmul.f32 %v5911_v5, %v6816_v44 }
 0x480   : > { %v3147_v40 = vsub.f32 %v3142_v1, %v3145_v33  ;;  %v3434_v52 = vsel %vm3422_vm6, %v3433_v35, %v5881_v41  ;;  %v3209_v1 = vrot.slane %v3207_v63, 4  ;;  %v3217_v33 = vmul.f32 %v5971_v9, %v6815_v26 }
 0x481   : > { %v3435_v20 = vsel %vm3424_vm7, %v3434_v52, %v5869_v61  ;;  %v3239_v52 = vmul.f32 %v5881_v41, %v6816_v44 }
 0x482   : > { %v3152_v45 = vsub.f32 %v3147_v40, %v3150_v11  ;;  %v3436_v57 = vsel %vm3426_vm8, %v3435_v20, %v5859_v16  ;;  %v3214_v40 = vrot.slane %v3212_v51, 5  ;;  %v3222_v11 = vmul.f32 %v5949_v37, %v6815_v26 }
 0x483   : > { %v3437_v58 = vsel %vm3428_vm9, %v3436_v57, %v5852_v46  ;;  %v3219_v47 = vrot.slane %v3217_v33, 6  ;;  %v3244_v20 = vmul.f32 %v5869_v61, %v6816_v44  ;;  %v3241_v57 = vrot.slane %v3239_v52, 3 }
 0x484   : > { %v3157_v24 = vsub.f32 %v3152_v45, %v3155_v15  ;;  %v3438_v17 = vsel %vm3430_vm10, %v3437_v58, %v5848_v13  ;;  %v3224_v15 = vrot.slane %v3222_v11, 7 }
 0x485   : > { %3441 = vst.msk [vmem:[%s6062_s18 + $0x8] sm:$0xff] %vm3439_vm11, %v3438_v17  ;;  %v3246_v58 = vrot.slane %v3244_v20, 4  ;;  %v3254_v17 = vmul.f32 %v5852_v46, %v6816_v44 }
 0x486   : > { %v3159_v62 = vsub.f32 %v3157_v24, %v3158_v0  ;;  %v3234_v0 = vmul.f32 %v5895_v8, %v6816_v44 }
 0x488   : > { %v3164_v38 = vsub.f32 %v3159_v62, %v3162_v42  ;;  %v3231_v42 = vrot.slane %v3229_v25, 1  ;;  %v3236_v12 = vrot.slane %v3234_v0, 2 }
 0x48a   : > { %v3169_v14 = vsub.f32 %v3164_v38, %v3167_v31  ;;  %v3249_v38 = vmul.f32 %v5859_v16, %v6816_v44 }
 0x48c   : > { %v3174_v54 = vsub.f32 %v3169_v14, %v3172_v6  ;;  %v3251_v6 = vrot.slane %v3249_v38, 5 }
 0x48e   : > { %v3179_v29 = vsub.f32 %v3174_v54, %v3177_v7  ;;  %v3256_v7 = vrot.slane %v3254_v17, 6 }
 0x490   : > { %v3184_v53 = vsub.f32 %v3179_v29, %v3182_v28  ;;  %v3261_v29 = vrot.slane %v3259_v43, 7 }
 0x492   : > { %v3189_v3 = vsub.f32 %v3184_v53, %v3187_v22  ;;  %v3265_v53 = vrot.slane %v6817_v48, 2 }
 0x494   : > { %v3194_v18 = vsub.f32 %v3189_v3, %v3192_v39  ;;  %v6818_v39 = vld [vmem:[#allocation15_spill] sm:$0xff] }
 0x495   : > { %v3286_v63 = vmul.f32 %v5995_v2, %v6818_v39 }
 0x496   : > { %v3198_v30 = vmul.f32 %v3196_v36, %v3194_v18 }
 0x497   : > { %v3288_v33 = vrot.slane %v3286_v63, 5 }
 0x498   : > { %v6071_v49 = vrot.slane %v3198_v30, 5  ;;  %v3281_v30 = vmul.f32 %v6021_v4, %v6818_v39 }
 0x49a   : > { %v3202_v60 = vmul.f32 %v6071_v49, %v6815_v26  ;;  %v3276_v21 = vmul.f32 %v6071_v49, %v6818_v39  ;;  %v3283_v51 = vrot.slane %v3281_v30, 4 }
 0x49c   : > { %v3204_v55 = vrot.slane %v3202_v60, 3  ;;  %v3278_v60 = vrot.slane %v3276_v21, 3 }
 0x49e   : > { %v3206_v19 = vsub.f32 %v5418_v10, %v3204_v55  ;;  %v3227_v10 = vmul.f32 %v5929_v27, %v6816_v44 }
 0x4a0   : > { %v3211_v23 = vsub.f32 %v3206_v19, %v3209_v1  ;;  %v3291_v19 = vmul.f32 %v5971_v9, %v6818_v39 }
 0x4a2   : > { %v3216_v34 = vsub.f32 %v3211_v23, %v3214_v40  ;;  %v3296_v23 = vmul.f32 %v5949_v37, %v6818_v39  ;;  %v3293_v11 = vrot.slane %v3291_v19, 6 }
 0x4a4   : > { %v3221_v45 = vsub.f32 %v3216_v34, %v3219_v47  ;;  %v3298_v47 = vrot.slane %v3296_v23, 7 }
 0x4a6   : > { %v3226_v24 = vsub.f32 %v3221_v45, %v3224_v15  ;;  %v6819_v45 = vld [vmem:[#allocation66_spill] sm:$0xff] }
 0x4a7   : > { %v3301_v44 = vmul.f32 %v5929_v27, %v6819_v45  ;;  %v3308_v25 = vmul.f32 %v5895_v8, %v6819_v45  ;;  %v3313_v0 = vmul.f32 %v5881_v41, %v6819_v45  ;;  %v3318_v52 = vmul.f32 %v5869_v61, %v6819_v45 }
 0x4a8   : > { %v3228_v35 = vsub.f32 %v3226_v24, %v3227_v10  ;;  %v3323_v20 = vmul.f32 %v5859_v16, %v6819_v45  ;;  %v3328_v38 = vmul.f32 %v5852_v46, %v6819_v45  ;;  %v3333_v17 = vmul.f32 %v5848_v13, %v6819_v45 }
 0x4aa   : > { %v3233_v62 = vsub.f32 %v3228_v35, %v3231_v42  ;;  %v3310_v42 = vrot.slane %v3308_v25, 2 }
 0x4ac   : > { %v3238_v50 = vsub.f32 %v3233_v62, %v3236_v12  ;;  %v3315_v12 = vrot.slane %v3313_v0, 3 }
 0x4ae   : > { %v3243_v31 = vsub.f32 %v3238_v50, %v3241_v57  ;;  %v3320_v57 = vrot.slane %v3318_v52, 4 }
 0x4b0   : > { %v3248_v14 = vsub.f32 %v3243_v31, %v3246_v58  ;;  %v3325_v58 = vrot.slane %v3323_v20, 5 }
 0x4b2   : > { %v3253_v54 = vsub.f32 %v3248_v14, %v3251_v6  ;;  %v3330_v6 = vrot.slane %v3328_v38, 6 }
 0x4b4   : > { %v3258_v59 = vsub.f32 %v3253_v54, %v3256_v7  ;;  %v3335_v54 = vrot.slane %v3333_v17, 7 }
 0x4b6   : > { %v3263_v28 = vsub.f32 %v3258_v59, %v3261_v29  ;;  %v6820_v59 = vld [vmem:[#allocation20_spill] sm:$0xff] }
 0x4b7   : > { %v3339_v29 = vrot.slane %v6820_v59, 1 }
 0x4b8   : > { %v3267_v22 = vmul.f32 %v3265_v53, %v3263_v28  ;;  %v6821_v53 = vld [vmem:[#allocation12_spill] sm:$0xff] }
 0x4b9   : > { %v3355_v21 = vmul.f32 %v6071_v49, %v6821_v53 }
 0x4ba   : > { %v6101_v3 = vrot.slane %v3267_v22, 6 }
 0x4bb   : > { %v3357_v63 = vrot.slane %v3355_v21, 3 }
 0x4bc   : > { %v3271_v18 = vmul.f32 %v6101_v3, %v6818_v39  ;;  %v3350_v39 = vmul.f32 %v6101_v3, %v6821_v53 }
 0x4be   : > { %v3273_v36 = vrot.slane %v3271_v18, 2  ;;  %v3352_v30 = vrot.slane %v3350_v39, 2 }
 0x4c0   : > { %v3275_v26 = vsub.f32 %v5396_v56, %v3273_v36  ;;  %v3303_v56 = vmul.f32 %v5911_v5, %v6819_v45  ;;  %v6822_v45 = vld [vmem:[#allocation50_spill] sm:$0xff] }
 0x4c1   : > { %v3387_v25 = vmul.f32 %v5895_v8, %v6822_v45  ;;  %v3392_v0 = vmul.f32 %v5881_v41, %v6822_v45  ;;  %v3397_v52 = vmul.f32 %v5869_v61, %v6822_v45  ;;  %v3407_v8 = vmul.f32 %v5852_v46, %v6822_v45 }
 0x4c2   : > { %v3280_v55 = vsub.f32 %v3275_v26, %v3278_v60  ;;  %v3305_v10 = vrot.slane %v3303_v56, 1  ;;  %v3360_v26 = vmul.f32 %v6021_v4, %v6821_v53  ;;  %v3382_v56 = vmul.f32 %v5911_v5, %v6822_v45 }
 0x4c3   : > { %v3402_v5 = vmul.f32 %v5859_v16, %v6822_v45  ;;  %v3399_v20 = vrot.slane %v3397_v52, 4  ;;  %v3412_v41 = vmul.f32 %v5848_v13, %v6822_v45 }
 0x4c4   : > { %v3285_v1 = vsub.f32 %v3280_v55, %v3283_v51  ;;  %v3365_v55 = vmul.f32 %v5995_v2, %v6821_v53  ;;  %v3362_v19 = vrot.slane %v3360_v26, 4 }
 0x4c6   : > { %v3290_v40 = vsub.f32 %v3285_v1, %v3288_v33  ;;  %v3370_v1 = vmul.f32 %v5971_v9, %v6821_v53  ;;  %v3367_v23 = vrot.slane %v3365_v55, 5 }
 0x4c8   : > { %v3295_v34 = vsub.f32 %v3290_v40, %v3293_v11  ;;  %v3375_v40 = vmul.f32 %v5949_v37, %v6821_v53  ;;  %v3372_v11 = vrot.slane %v3370_v1, 6 }
 0x4ca   : > { %v3300_v15 = vsub.f32 %v3295_v34, %v3298_v47  ;;  %v3377_v47 = vrot.slane %v3375_v40, 7 }
 0x4cc   : > { %v3302_v24 = vsub.f32 %v3300_v15, %v3301_v44  ;;  %v3380_v44 = vmul.f32 %v5929_v27, %v6822_v45 }
 0x4ce   : > { %v3307_v35 = vsub.f32 %v3302_v24, %v3305_v10  ;;  %v3384_v10 = vrot.slane %v3382_v56, 1 }
 0x4d0   : > { %v3312_v62 = vsub.f32 %v3307_v35, %v3310_v42  ;;  %v3389_v42 = vrot.slane %v3387_v25, 2 }
 0x4d2   : > { %v3317_v50 = vsub.f32 %v3312_v62, %v3315_v12  ;;  %v3394_v12 = vrot.slane %v3392_v0, 3 }
 0x4d4   : > { %v3322_v31 = vsub.f32 %v3317_v50, %v3320_v57  ;;  %v3404_v57 = vrot.slane %v3402_v5, 5 }
 0x4d6   : > { %v3327_v14 = vsub.f32 %v3322_v31, %v3325_v58  ;;  %v3409_v31 = vrot.slane %v3407_v8, 6  ;;  %v3414_v58 = vrot.slane %v3412_v41, 7 }
 0x4d8   : > { %v3332_v43 = vsub.f32 %v3327_v14, %v3330_v6  ;;  %v6823_v14 = vld [vmem:[#allocation13_spill] sm:$0xff] }
 0x4da   : > { %v3337_v7 = vsub.f32 %v3332_v43, %v3335_v54 }
 0x4dc   : > { %v3341_v28 = vmul.f32 %v3339_v29, %v3337_v7 }
 0x4de   : > { %v3343_v48 = vrot.slane %v3341_v28, 7 }
 0x4e0   : > { %v3345_v22 = vmul.f32 %v3343_v48, %v6821_v53 }
 0x4e2   : > { %v3347_v18 = vrot.slane %v3345_v22, 1 }
 0x4e4   : > { %v3349_v36 = vsub.f32 %v5164_v32, %v3347_v18 }
 0x4e6   : > { %v3354_v60 = vsub.f32 %v3349_v36, %v3352_v30 }
 0x4e8   : > { %v3359_v51 = vsub.f32 %v3354_v60, %v3357_v63 }
 0x4ea   : > { %v3364_v33 = vsub.f32 %v3359_v51, %v3362_v19 }
 0x4ec   : > { %v3369_v32 = vsub.f32 %v3364_v33, %v3367_v23 }
 0x4ee   : > { %v3374_v34 = vsub.f32 %v3369_v32, %v3372_v11 }
 0x4f0   : > { %v3379_v15 = vsub.f32 %v3374_v34, %v3377_v47 }
 0x4f2   : > { %v3381_v24 = vsub.f32 %v3379_v15, %v3380_v44 }
 0x4f4   : > { %v3386_v35 = vsub.f32 %v3381_v24, %v3384_v10 }
 0x4f6   : > { %v3391_v62 = vsub.f32 %v3386_v35, %v3389_v42 }
 0x4f8   : > { %v3396_v27 = vsub.f32 %v3391_v62, %v3394_v12 }
 0x4fa   : > { %v3401_v50 = vsub.f32 %v3396_v27, %v3399_v20 }
 0x4fc   : > { %v3406_v38 = vsub.f32 %v3401_v50, %v3404_v57 }
 0x4fe   : > { %v3411_v61 = vsub.f32 %v3406_v38, %v3409_v31 }
 0x500   : > { %v3416_v17 = vsub.f32 %v3411_v61, %v3414_v58 }
 0x502   : > { %v3417_v16 = vmul.f32 %v6823_v14, %v3416_v17 }
 0x504   : > { %v3419_v6 = vsel %vm3418_vm4, %v3417_v16, %v3343_v48 }
 0x505   : > { %v3421_v46 = vsel %vm3420_vm5, %v3419_v6, %v6101_v3 }
 0x506   : > { %v3423_v13 = vsel %vm3422_vm6, %v3421_v46, %v6071_v49 }
 0x507   : > { %v3425_v43 = vsel %vm3424_vm7, %v3423_v13, %v6021_v4 }
 0x508   : > { %v3427_v54 = vsel %vm3426_vm8, %v3425_v43, %v5995_v2 }
 0x509   : > { %v3429_v3 = vsel %vm3428_vm9, %v3427_v54, %v5971_v9 }
 0x50a   : > { %v3431_v49 = vsel %vm3430_vm10, %v3429_v3, %v5949_v37 }
 0x50b   : > { %3440 = vst.msk [vmem:[%s6062_s18] sm:$0xff] %vm3439_vm11, %v3431_v49 }
 0x50c   : > { %3901 = shalt.err (!%p3898_p3)
}
 0x50d   : > { %s3902_s14 = scalar_lea.hbm %s6178_s29, 256  ;;  %s3906_s16 = scalar_lea.hbm %s6237_s6, 512 }
 0x50e   : > { %p3903_p4 = scmp.ne.s32.totalorder %s6178_s29, %s3902_s14  ;;  %p3907_p9 = scmp.lt.u32.totalorder %s6178_s29, %s6237_s6 }
 0x50f   : > { %p3908_p10 = scmp.lt.u32.totalorder %s3906_s16, %s3902_s14  ;;  %p3910_p12 = scmp.lt.u32.totalorder %s3902_s14, %s6178_s29 }
 0x510   : > { %p3904_p7 = pnand %p3903_p4, %p4032_p5 }
 0x511   : > { %p3909_p11 = por %p3908_p10, %p3907_p9 }
 0x512   : > { %p3905_p8 = pneg %p3904_p7 }
 0x513   : > { %p3911_p13 = por %p3910_p12, %p3909_p11 }
 0x515   : > { %p3912_p0 = pnand %p3911_p13, %p3905_p8 }
 0x517   : > { %3915 = shalt.err (!%p3912_p0)
}
 0x518   : > { %s3957_s19 = smov 128   ;;  %s3958_s26 = smov 8  }
 0x519   : > { %3809 = dma.vmem_to_hbm [thread:$0]  (%p4032_p5), %s6180_s20, 256, %s6178_s29, %s6190_s25, %s3957_s19, %s3957_s19, %s3958_s26  }
 0x51a PF: > { %p3815_p1 = scmp.ge.s32.totalorder %s3950_s24, 2  ;;  %s3471_s28 = sand.u32 1, %s3938_s21  }
 0x51b   : > { %s3472_s10 = scalar_lea.sflag [#allocation3], %s3471_s28 }
 0x51c   : > { %p3812_p2 = pnand %p3815_p1, %p4036_p6 }
 0x51e   : > { %3933 = dma.done.wait (!%p3812_p2), %s3472_s10, 256  }
 0x51f   : > { %3935 = vsyncadd (!%p3812_p2), %s3472_s10, 4294967040  ;;  %p16_p3 = scmp.ge.s32.totalorder %s4019_s27, 4   ;;  %s6824_s21 = smov %s3942_s22 }
 0x520   : > { %s6825_s22 = smov %s3946_s23  ;;  %s6826_s23 = smov %s4030_s30 }
 0x521   : > { %s6827_s24 = smov %s4019_s27  ;;  %18 = sbr.rel (!%p16_p3) target bundleno = 3 (0x3), region = 94 }
 0x528   :  { %3477 = vsyncpa [#allocation3], 1 }
 0x529   :  { %3479 = vsyncpa [#allocation3 + $0x1], 1 }

</bundles_post_ra>
